<compile_context>
chip_gen: v6e
topology: v6e:2x2x1
jax: 0.10.0
libtpu: 0.0.40
codegen_flags: <defaults>
</compile_context>

<pallas_src>
import jax
import jax.numpy as jnp
from jax.experimental import pallas as pl
from jax.experimental.pallas import tpu as pltpu

IN_FEATURES = 768
HIDDEN1 = 384
HIDDEN2 = 192        # true forward() output width
HIDDEN2_PAD = 256    # lane-dense padded width used inside the kernel

TM = 256             # rows per grid step (multiple of 128; fits VMEM easily)


def _recsys_kernel(x_ref, w1_ref, b1_ref, w2_ref, b2_ref, o_ref, h_ref):
    # Layer 1: bf16 x bf16 matmul on the MXU with f32 accumulation,
    # bias + ReLU in f32.
    h = jnp.dot(x_ref[...], w1_ref[...], preferred_element_type=jnp.float32)
    h = jnp.maximum(h + b1_ref[...], 0.0)
    # Stage the (TM, 384) f32 intermediate through an explicit VMEM scratch
    # (deterministic layout; avoids regalloc-driven spills at TM=256).
    h_ref[...] = h
    # Layer 2 (output padded to 256 lanes; padded columns carry zeros).
    o = jnp.dot(h_ref[...].astype(w2_ref.dtype), w2_ref[...],
                preferred_element_type=jnp.float32)
    o = jnp.maximum(o + b2_ref[...], 0.0)
    o_ref[...] = o.astype(o_ref.dtype)


def recsys_forward(x, w1, b1, w2, b2):
    """x: any shape reshapable to (-1, 768). Returns (M, 192) in x's dtype."""
    x2 = x.reshape(-1, IN_FEATURES)
    M = x2.shape[0]
    out_dtype = x2.dtype

    # Pad rows up to a multiple of TM (no batch-size restriction).
    grid_m = pl.cdiv(M, TM)
    M_pad = grid_m * TM
    if M_pad != M:
        x2 = jnp.pad(x2, ((0, M_pad - M), (0, 0)))

    # bf16 activations/weights for the MXU; biases stay f32 for the epilogue.
    xb = x2.astype(jnp.bfloat16)
    w1b = w1.astype(jnp.bfloat16)
    b1f = b1.astype(jnp.float32)
    # Zero-pad layer-2 output width 192 -> 256 for lane-dense stores and a
    # full MXU N pass; padded lanes are sliced away below.
    w2p = jnp.pad(w2.astype(jnp.bfloat16), ((0, 0), (0, HIDDEN2_PAD - HIDDEN2)))
    b2p = jnp.pad(b2.astype(jnp.float32), ((0, 0), (0, HIDDEN2_PAD - HIDDEN2)))

    cost = pl.CostEstimate(
        flops=2 * M_pad * (IN_FEATURES * HIDDEN1 + HIDDEN1 * HIDDEN2_PAD),
        transcendentals=0,
        bytes_accessed=(xb.size * 2 + w1b.size * 2 + w2p.size * 2
                        + b1f.size * 4 + b2p.size * 4
                        + M_pad * HIDDEN2_PAD * 4),
    )

    out = pl.pallas_call(
        _recsys_kernel,
        out_shape=jax.ShapeDtypeStruct((M_pad, HIDDEN2_PAD), jnp.float32),
        grid_spec=pltpu.PrefetchScalarGridSpec(
            num_scalar_prefetch=0,
            grid=(grid_m,),
            in_specs=[
                # x: the only streaming input (double-buffered by default).
                pl.BlockSpec((TM, IN_FEATURES), lambda i: (i, 0)),
                # Weights / biases: grid-invariant index maps -> DMA'd once,
                # not re-fetched per grid step.
                pl.BlockSpec((IN_FEATURES, HIDDEN1), lambda i: (0, 0)),
                pl.BlockSpec((1, HIDDEN1), lambda i: (0, 0)),
                pl.BlockSpec((HIDDEN1, HIDDEN2_PAD), lambda i: (0, 0)),
                pl.BlockSpec((1, HIDDEN2_PAD), lambda i: (0, 0)),
            ],
            out_specs=pl.BlockSpec((TM, HIDDEN2_PAD), lambda i: (i, 0)),
            scratch_shapes=[pltpu.VMEM((TM, HIDDEN1), jnp.float32)],
        ),
        compiler_params=pltpu.CompilerParams(
            dimension_semantics=("parallel",)),
        cost_estimate=cost,
    )(xb, w1b, b1f, w2p, b2p)

    return out[:M, :HIDDEN2].astype(out_dtype)


def init_params(key, dtype=jnp.float32):
    """Deterministic synthetic params (nn.Linear-style uniform init)."""
    k1, k2, k3, k4 = jax.random.split(key, 4)
    bound1 = 1.0 / (IN_FEATURES ** 0.5)
    bound2 = 1.0 / (HIDDEN1 ** 0.5)
    w1 = jax.random.uniform(k1, (IN_FEATURES, HIDDEN1), dtype,
                            minval=-bound1, maxval=bound1)
    b1 = jax.random.uniform(k2, (1, HIDDEN1), dtype,
                            minval=-bound1, maxval=bound1)
    w2 = jax.random.uniform(k3, (HIDDEN1, HIDDEN2), dtype,
                            minval=-bound2, maxval=bound2)
    b2 = jax.random.uniform(k4, (1, HIDDEN2), dtype,
                            minval=-bound2, maxval=bound2)
    # TODO(synk): linear3 (192 -> output_size) is defined in __init__ but never
    # used in forward(), so it is intentionally omitted here.
    return w1, b1, w2, b2


if __name__ == "__main__":
    key = jax.random.PRNGKey(0)
    kx, kp = jax.random.split(key)

    # Input: (2, 4, 768) -> view(-1, 768) -> (8, 768)
    x = jax.random.normal(kx, (2, 4, IN_FEATURES), jnp.float32)
    w1, b1, w2, b2 = init_params(kp)

    out = recsys_forward(x, w1, b1, w2, b2)
    out = jax.block_until_ready(out)

    # Reference check in plain JAX, mirroring the kernel's bf16 matmul inputs
    # with f32 accumulation.
    x2 = x.reshape(-1, IN_FEATURES)
    xb = x2.astype(jnp.bfloat16).astype(jnp.float32)
    w1b = w1.astype(jnp.bfloat16).astype(jnp.float32)
    w2b = w2.astype(jnp.bfloat16).astype(jnp.float32)
    h = jnp.maximum(
        jnp.dot(xb, w1b, precision=jax.lax.Precision.HIGHEST) + b1, 0.0)
    hb = h.astype(jnp.bfloat16).astype(jnp.float32)
    ref = jnp.maximum(
        jnp.dot(hb, w2b, precision=jax.lax.Precision.HIGHEST) + b2, 0.0)

    assert out.shape == (8, HIDDEN2)
    assert jnp.allclose(out, ref, atol=1e-2, rtol=1e-2)

    print("KERNEL_OK")
</pallas_src>

<mosaic_0001>
module attributes {stable_mosaic.version = 11 : i64} {
  func.func @_recsys_kernel(%arg0: i32, %arg1: memref<256x768xbf16, #tpu.memory_space<vmem>>, %arg2: memref<768x384xbf16, #tpu.memory_space<vmem>>, %arg3: memref<1x384xf32, #tpu.memory_space<vmem>>, %arg4: memref<384x256xbf16, #tpu.memory_space<vmem>>, %arg5: memref<1x256xf32, #tpu.memory_space<vmem>>, %arg6: memref<256x256xf32, #tpu.memory_space<vmem>>, %arg7: memref<256x384xf32, #tpu.memory_space<vmem>>) attributes {dimension_semantics = [#tpu.dimension_semantics<parallel>], iteration_bounds = array<i64: 1>, scalar_prefetch = 0 : i64, scratch_operands = 1 : i64, tpu.core_type = #tpu.core_type<tc>, window_params = [{transform_indices = @transform_0, window_bounds = array<i64: 256, 768>}, {pipeline_mode = #tpu.pipeline_mode<synchronous>, transform_indices = @transform_1, window_bounds = array<i64: 768, 384>}, {pipeline_mode = #tpu.pipeline_mode<synchronous>, transform_indices = @transform_2, window_bounds = array<i64: 1, 384>}, {pipeline_mode = #tpu.pipeline_mode<synchronous>, transform_indices = @transform_3, window_bounds = array<i64: 384, 256>}, {pipeline_mode = #tpu.pipeline_mode<synchronous>, transform_indices = @transform_4, window_bounds = array<i64: 1, 256>}, {transform_indices = @transform_5, window_bounds = array<i64: 256, 256>}]} {
    %c0 = arith.constant 0 : index
    %c0_0 = arith.constant 0 : index
    %0 = vector.load %arg1[%c0, %c0_0] : memref<256x768xbf16, #tpu.memory_space<vmem>>, vector<256x768xbf16>
    %c0_1 = arith.constant 0 : index
    %c0_2 = arith.constant 0 : index
    %1 = vector.load %arg2[%c0_1, %c0_2] : memref<768x384xbf16, #tpu.memory_space<vmem>>, vector<768x384xbf16>
    %cst = arith.constant dense<0.000000e+00> : vector<256x384xf32>
    %2 = tpu.matmul %0, %1, %cst {dimension_numbers = #tpu.dot_dimension_numbers<[1], [0], [0], [1], [0, 0, 1, 1], [], []>} : vector<256x768xbf16>, vector<768x384xbf16>, vector<256x384xf32> -> vector<256x384xf32>
    %c0_3 = arith.constant 0 : index
    %c0_4 = arith.constant 0 : index
    %3 = vector.load %arg3[%c0_3, %c0_4] : memref<1x384xf32, #tpu.memory_space<vmem>>, vector<1x384xf32>
    %4 = vector.broadcast %3 : vector<1x384xf32> to vector<256x384xf32>
    %5 = arith.addf %2, %4 : vector<256x384xf32>
    %cst_5 = arith.constant 0.000000e+00 : f32
    %6 = vector.broadcast %cst_5 : f32 to vector<256x384xf32>
    %7 = arith.maximumf %5, %6 : vector<256x384xf32>
    %c0_6 = arith.constant 0 : index
    %c0_7 = arith.constant 0 : index
    %8 = vector.load %arg7[%c0_6, %c0_7] : memref<256x384xf32, #tpu.memory_space<vmem>>, vector<256x384xf32>
    tpu.vector_store %arg7[%c0_6, %c0_7], %7 {strides = array<i32>} : memref<256x384xf32, #tpu.memory_space<vmem>>, vector<256x384xf32>,
    %c0_8 = arith.constant 0 : index
    %c0_9 = arith.constant 0 : index
    %9 = vector.load %arg7[%c0_8, %c0_9] : memref<256x384xf32, #tpu.memory_space<vmem>>, vector<256x384xf32>
    %10 = arith.truncf %9 : vector<256x384xf32> to vector<256x384xbf16>
    %c0_10 = arith.constant 0 : index
    %c0_11 = arith.constant 0 : index
    %11 = vector.load %arg4[%c0_10, %c0_11] : memref<384x256xbf16, #tpu.memory_space<vmem>>, vector<384x256xbf16>
    %cst_12 = arith.constant dense<0.000000e+00> : vector<256x256xf32>
    %12 = tpu.matmul %10, %11, %cst_12 {dimension_numbers = #tpu.dot_dimension_numbers<[1], [0], [0], [1], [0, 0, 1, 1], [], []>} : vector<256x384xbf16>, vector<384x256xbf16>, vector<256x256xf32> -> vector<256x256xf32>
    %c0_13 = arith.constant 0 : index
    %c0_14 = arith.constant 0 : index
    %13 = vector.load %arg5[%c0_13, %c0_14] : memref<1x256xf32, #tpu.memory_space<vmem>>, vector<1x256xf32>
    %14 = vector.broadcast %13 : vector<1x256xf32> to vector<256x256xf32>
    %15 = arith.addf %12, %14 : vector<256x256xf32>
    %cst_15 = arith.constant 0.000000e+00 : f32
    %16 = vector.broadcast %cst_15 : f32 to vector<256x256xf32>
    %17 = arith.maximumf %15, %16 : vector<256x256xf32>
    %c0_16 = arith.constant 0 : index
    %c0_17 = arith.constant 0 : index
    %18 = vector.load %arg6[%c0_16, %c0_17] : memref<256x256xf32, #tpu.memory_space<vmem>>, vector<256x256xf32>
    tpu.vector_store %arg6[%c0_16, %c0_17], %17 {strides = array<i32>} : memref<256x256xf32, #tpu.memory_space<vmem>>, vector<256x256xf32>,
    return
  }
  func.func @transform_0(%arg0: i32) -> (i32, i32) {
    %c0_i32 = arith.constant 0 : i32
    %c0_i32_0 = arith.constant 0 : i32
    return %arg0, %c0_i32 : i32, i32
  }
  func.func @transform_1(%arg0: i32) -> (i32, i32) {
    %c0_i32 = arith.constant 0 : i32
    %c0_i32_0 = arith.constant 0 : i32
    %c0_i32_1 = arith.constant 0 : i32
    return %c0_i32, %c0_i32_0 : i32, i32
  }
  func.func @transform_2(%arg0: i32) -> (i32, i32) {
    %c0_i32 = arith.constant 0 : i32
    %c0_i32_0 = arith.constant 0 : i32
    %c0_i32_1 = arith.constant 0 : i32
    return %c0_i32, %c0_i32_0 : i32, i32
  }
  func.func @transform_3(%arg0: i32) -> (i32, i32) {
    %c0_i32 = arith.constant 0 : i32
    %c0_i32_0 = arith.constant 0 : i32
    %c0_i32_1 = arith.constant 0 : i32
    return %c0_i32, %c0_i32_0 : i32, i32
  }
  func.func @transform_4(%arg0: i32) -> (i32, i32) {
    %c0_i32 = arith.constant 0 : i32
    %c0_i32_0 = arith.constant 0 : i32
    %c0_i32_1 = arith.constant 0 : i32
    return %c0_i32, %c0_i32_0 : i32, i32
  }
  func.func @transform_5(%arg0: i32) -> (i32, i32) {
    %c0_i32 = arith.constant 0 : i32
    %c0_i32_0 = arith.constant 0 : i32
    return %arg0, %c0_i32 : i32, i32
  }
}

</mosaic_0001>

<bundles_post_ra>
// kernel: tpu_custom_call.1
= control target key start
LH: loop header
LB: loop body
LE: loop exit
PB: predicated region body
PF: predicated region fallthrough
CT: control target
= control target key end

     0   :  { %10 = vsyncpa [#allocation4], 0  ;;  %s6081_s0 = inlined_call_operand.hbm [shape: bf16[256,768], index: 0, kind: input, shape index: {}]   ;;  %s6082_s1 = inlined_call_operand.hbm [shape: bf16[768,384], index: 1, kind: input, shape index: {}]   ;;  %s6083_s2 = inlined_call_operand.vmem [shape: f32[1,384], index: 2, kind: input, shape index: {}]   ;;  %s6084_s3 = inlined_call_operand.hbm [shape: bf16[384,256], index: 3, kind: input, shape index: {}]   ;;  %s6085_s4 = inlined_call_operand.vmem [shape: f32[1,256], index: 4, kind: input, shape index: {}]   ;;  %s6086_s5 = inlined_call_operand.hbm [shape: f32[256,256], index: 5, kind: output, shape index: {}]  }
   0x1   :  { %11 = vsyncpa [#allocation7], 0 }
   0x2   :  { %12 = vsyncpa [#allocation5], 0  ;;  %s5011_s18 = smov [#allocation6]  }
   0x3   :  { %s30_s19 = sshll.u32 %s5011_s18, 4  ;;  %s31_s19 = int_to_ptr.vmem [resolvable:$true] %s30_s19 }
   0x4   :  { %s4933_s20 = scalar_lea.vmem %s31_s19, 18432  ;;  %p4938_p1 = scmp.lt.s32.totalorder %s31_s19, %s31_s19 }
   0x5   :  { %p4934_p0 = scmp.ne.s32.totalorder %s31_s19, %s4933_s20  ;;  %p4939_p2 = scmp.lt.s32.totalorder %s4933_s20, %s4933_s20 }
   0x7   :  { %p4940_p3 = por %p4939_p2, %p4938_p1 }
   0x9   :  { %p4941_p4 = pnand %p4940_p3, %p4934_p0 }
   0xb   :  { %4944 = shalt.err (!%p4941_p4)
}
   0xc   :  { %s5012_s21 = smov 192   ;;  %s5013_s22 = smov 12  }
   0xd   :  { %36 = dma.hbm_to_vmem [thread:$0]  %s6082_s1, 18432, %s31_s19, [#allocation7], %s5012_s21, %s5012_s21, %s5013_s22  }
   0xe   :  { %s5014_s25 = smov [#allocation3]  }
   0xf   :  { %s18_s26 = sshll.u32 %s5014_s25, 4  ;;  %s19_s26 = int_to_ptr.vmem [resolvable:$true] %s18_s26 }
  0x10   :  { %s4953_s27 = scalar_lea.vmem %s19_s26, 12288  ;;  %p4958_p6 = scmp.lt.s32.totalorder %s19_s26, %s19_s26 }
  0x11   :  { %p4954_p5 = scmp.ne.s32.totalorder %s19_s26, %s4953_s27  ;;  %p4959_p7 = scmp.lt.s32.totalorder %s4953_s27, %s4953_s27 }
  0x13   :  { %p4960_p8 = por %p4959_p7, %p4958_p6 }
  0x15   :  { %p4961_p9 = pnand %p4960_p8, %p4954_p5 }
  0x17   :  { %4964 = shalt.err (!%p4961_p9)
}
  0x18   :  { %s5015_s28 = smov 384   ;;  %s5016_s29 = smov 24  }
  0x19   :  { %24 = dma.hbm_to_vmem [thread:$0]  %s6081_s0, 12288, %s19_s26, [#allocation4], %s5015_s28, %s5015_s28, %s5016_s29  }
  0x1a   :  { %s5017_s7 = smov [#allocation8]  }
  0x1b   :  { %s44_s8 = sshll.u32 %s5017_s7, 4  ;;  %s45_s8 = int_to_ptr.vmem [resolvable:$true] %s44_s8 }
  0x1c   :  { %s4973_s1 = scalar_lea.vmem %s45_s8, 6144  ;;  %p4978_p11 = scmp.lt.s32.totalorder %s45_s8, %s45_s8 }
  0x1d   :  { %p4974_p10 = scmp.ne.s32.totalorder %s45_s8, %s4973_s1  ;;  %p4979_p12 = scmp.lt.s32.totalorder %s4973_s1, %s4973_s1 }
  0x1f   :  { %p4980_p13 = por %p4979_p12, %p4978_p11 }
  0x21   :  { %p4981_p0 = pnand %p4980_p13, %p4974_p10 }
  0x23   :  { %4984 = shalt.err (!%p4981_p0)
}
  0x24   :  { %s5018_s9 = smov 128   ;;  %s5019_s10 = smov 8  }
  0x25   :  { %50 = dma.hbm_to_vmem [thread:$0]  %s6084_s3, 6144, %s45_s8, [#allocation7], %s5018_s9, %s5018_s9, %s5019_s10  }
  0x26   :  { %5005 = dma.done.wait [#allocation4], 12288  }
  0x27   :  { %5006 = vsyncadd [#allocation4], 4294955008 }
  0x28   :  { %5007 = dma.done.wait [#allocation7], 24576  }
  0x29   :  { %5008 = vsyncadd [#allocation7], 4294942720  ;;  %v4483_v0 = vld [vmem:[#allocation6 + $0xac] ss:$12 sps:$4 sm:$0xff]   ;;  %v4487_v2 = vld [vmem:[#allocation6 + $0xa8] ss:$12 sps:$4 sm:$0xff]  }
  0x2a   :  { %v4485_v1 = vld [vmem:[#allocation6 + $0x22c] ss:$12 sps:$4 sm:$0xff]   ;;  %1616 = vmatprep.subr.bf16.mxu0 %v4483_v0  ;;  %v4488_v3 = vld [vmem:[#allocation6 + $0x228] ss:$12 sps:$4 sm:$0xff]   ;;  %v4493_v6 = vld [vmem:[#allocation6 + $0x90] ss:$12 sps:$4 sm:$0xff]  }
  0x2b   :  { %1809 = vmatprep.subr.bf16.mxu1 %v4485_v1  ;;  %v4489_v4 = vld [vmem:[#allocation6 + $0x94] ss:$12 sps:$4 sm:$0xff]   ;;  %1617 = vmatpush1.bf16.msra.mxu0 %v4487_v2  ;;  %v4494_v7 = vld [vmem:[#allocation6 + $0x210] ss:$12 sps:$4 sm:$0xff]   ;;  %v4499_v10 = vld [vmem:[#allocation6 + $0x78] ss:$12 sps:$4 sm:$0xff]  }
  0x2c   :  { %1810 = vmatpush1.bf16.msra.mxu1 %v4488_v3  ;;  %v4491_v5 = vld [vmem:[#allocation6 + $0x214] ss:$12 sps:$4 sm:$0xff]   ;;  %1618 = vmatprep.subr.bf16.mxu0 %v4489_v4  ;;  %v4495_v8 = vld [vmem:[#allocation6 + $0x7c] ss:$12 sps:$4 sm:$0xff]   ;;  %v4500_v11 = vld [vmem:[#allocation6 + $0x1f8] ss:$12 sps:$4 sm:$0xff]  }
  0x2d   :  { %1811 = vmatprep.subr.bf16.mxu1 %v4491_v5  ;;  %v4497_v9 = vld [vmem:[#allocation6 + $0x1fc] ss:$12 sps:$4 sm:$0xff]   ;;  %v4501_v12 = vld [vmem:[#allocation6 + $0x64] ss:$12 sps:$4 sm:$0xff]   ;;  %v4505_v14 = vld [vmem:[#allocation6 + $0x60] ss:$12 sps:$4 sm:$0xff]  }
  0x2e   :  { %v4503_v13 = vld [vmem:[#allocation6 + $0x1e4] ss:$12 sps:$4 sm:$0xff]   ;;  %v4506_v15 = vld [vmem:[#allocation6 + $0x1e0] ss:$12 sps:$4 sm:$0xff]   ;;  %v4511_v18 = vld [vmem:[#allocation6 + $0x48] ss:$12 sps:$4 sm:$0xff]  }
  0x2f   :  { %1619 = vmatpush1.bf16.msra.mxu0 %v4493_v6  ;;  %v4507_v16 = vld [vmem:[#allocation6 + $0x4c] ss:$12 sps:$4 sm:$0xff]   ;;  %v4512_v19 = vld [vmem:[#allocation6 + $0x1c8] ss:$12 sps:$4 sm:$0xff]   ;;  %v4517_v22 = vld [vmem:[#allocation6 + $0x30] ss:$12 sps:$4 sm:$0xff]  }
  0x30   :  { %1812 = vmatpush1.bf16.msra.mxu1 %v4494_v7  ;;  %1620 = vmatprep.subr.bf16.mxu0 %v4495_v8  ;;  %v4509_v17 = vld [vmem:[#allocation6 + $0x1cc] ss:$12 sps:$4 sm:$0xff]   ;;  %v4513_v20 = vld [vmem:[#allocation6 + $0x34] ss:$12 sps:$4 sm:$0xff]   ;;  %v4518_v23 = vld [vmem:[#allocation6 + $0x1b0] ss:$12 sps:$4 sm:$0xff]  }
  0x31   :  { %1813 = vmatprep.subr.bf16.mxu1 %v4497_v9  ;;  %v4515_v21 = vld [vmem:[#allocation6 + $0x1b4] ss:$12 sps:$4 sm:$0xff]   ;;  %v4519_v24 = vld [vmem:[#allocation6 + $0x1c] ss:$12 sps:$4 sm:$0xff]   ;;  %v4523_v26 = vld [vmem:[#allocation6 + $0x18] ss:$12 sps:$4 sm:$0xff]  }
  0x32   :  { %v4521_v25 = vld [vmem:[#allocation6 + $0x19c] ss:$12 sps:$4 sm:$0xff]   ;;  %v4524_v27 = vld [vmem:[#allocation6 + $0x198] ss:$12 sps:$4 sm:$0xff]   ;;  %v4529_v30 = vld [vmem:[#allocation6] ss:$12 sps:$4 sm:$0xff]  }
  0x33   :  { %1621 = vmatpush1.bf16.msra.mxu0 %v4499_v10  ;;  %v4525_v28 = vld [vmem:[#allocation6 + $0x4] ss:$12 sps:$4 sm:$0xff]   ;;  %v4530_v31 = vld [vmem:[#allocation6 + $0x180] ss:$12 sps:$4 sm:$0xff]   ;;  %v4535_v34 = vld [vmem:[#allocation6 + $0x168] ss:$12 sps:$4 sm:$0xff]  }
  0x34   :  { %1814 = vmatpush1.bf16.msra.mxu1 %v4500_v11  ;;  %1622 = vmatprep.subr.bf16.mxu0 %v4501_v12  ;;  %v4527_v29 = vld [vmem:[#allocation6 + $0x184] ss:$12 sps:$4 sm:$0xff]   ;;  %v4531_v32 = vld [vmem:[#allocation6 + $0x16c] ss:$12 sps:$4 sm:$0xff]   ;;  %v4536_v35 = vld [vmem:[#allocation6 + $0x2e8] ss:$12 sps:$4 sm:$0xff]  }
  0x35   :  { %1815 = vmatprep.subr.bf16.mxu1 %v4503_v13  ;;  %v4533_v33 = vld [vmem:[#allocation6 + $0x2ec] ss:$12 sps:$4 sm:$0xff]   ;;  %v4537_v36 = vld [vmem:[#allocation6 + $0x154] ss:$12 sps:$4 sm:$0xff]   ;;  %v4541_v38 = vld [vmem:[#allocation6 + $0x150] ss:$12 sps:$4 sm:$0xff]  }
  0x36   :  { %v4539_v37 = vld [vmem:[#allocation6 + $0x2d4] ss:$12 sps:$4 sm:$0xff]   ;;  %v4542_v39 = vld [vmem:[#allocation6 + $0x2d0] ss:$12 sps:$4 sm:$0xff]   ;;  %v4547_v42 = vld [vmem:[#allocation6 + $0x138] ss:$12 sps:$4 sm:$0xff]  }
  0x37   :  { %1623 = vmatpush1.bf16.msra.mxu0 %v4505_v14  ;;  %v4543_v40 = vld [vmem:[#allocation6 + $0x13c] ss:$12 sps:$4 sm:$0xff]   ;;  %v4548_v43 = vld [vmem:[#allocation6 + $0x2b8] ss:$12 sps:$4 sm:$0xff]   ;;  %v4553_v46 = vld [vmem:[#allocation6 + $0x120] ss:$12 sps:$4 sm:$0xff]  }
  0x38   :  { %1816 = vmatpush1.bf16.msra.mxu1 %v4506_v15  ;;  %1624 = vmatprep.subr.bf16.mxu0 %v4507_v16  ;;  %v4545_v41 = vld [vmem:[#allocation6 + $0x2bc] ss:$12 sps:$4 sm:$0xff]   ;;  %v4549_v44 = vld [vmem:[#allocation6 + $0x124] ss:$12 sps:$4 sm:$0xff]   ;;  %v4554_v47 = vld [vmem:[#allocation6 + $0x2a0] ss:$12 sps:$4 sm:$0xff]  }
  0x39   :  { %1817 = vmatprep.subr.bf16.mxu1 %v4509_v17  ;;  %v4551_v45 = vld [vmem:[#allocation6 + $0x2a4] ss:$12 sps:$4 sm:$0xff]   ;;  %v4555_v48 = vld [vmem:[#allocation6 + $0x10c] ss:$12 sps:$4 sm:$0xff]   ;;  %v4559_v52 = vld [vmem:[#allocation6 + $0x108] ss:$12 sps:$4 sm:$0xff]  }
  0x3a   :  { %v4581_v49 = vld [vmem:[#allocation3 + $0x4] ss:$24 sps:$4 sm:$0xff]   ;;  %v4557_v50 = vld [vmem:[#allocation6 + $0x28c] ss:$12 sps:$4 sm:$0xff]   ;;  %v4560_v53 = vld [vmem:[#allocation6 + $0x288] ss:$12 sps:$4 sm:$0xff]  }
  0x3b   :  { %1625 = vmatpush1.bf16.msra.mxu0 %v4511_v18  ;;  %v4584_v51 = vld [vmem:[#allocation3 + $0xc] ss:$24 sps:$4 sm:$0xff]   ;;  %1648 = vmatprep.mubr.bf16.mxu0 %v4581_v49  ;;  %v4561_v54 = vld [vmem:[#allocation6 + $0xf4] ss:$12 sps:$4 sm:$0xff]   ;;  %v4565_v56 = vld [vmem:[#allocation6 + $0xf0] ss:$12 sps:$4 sm:$0xff]  }
  0x3c   :  { %1818 = vmatpush1.bf16.msra.mxu1 %v4512_v19  ;;  %1626 = vmatprep.subr.bf16.mxu0 %v4513_v20  ;;  %v4563_v55 = vld [vmem:[#allocation6 + $0x274] ss:$12 sps:$4 sm:$0xff]   ;;  %v4566_v57 = vld [vmem:[#allocation6 + $0x270] ss:$12 sps:$4 sm:$0xff]   ;;  %v4571_v60 = vld [vmem:[#allocation6 + $0xd8] ss:$12 sps:$4 sm:$0xff]  }
  0x3d   :  { %1819 = vmatprep.subr.bf16.mxu1 %v4515_v21  ;;  %1841 = vmatprep.mubr.bf16.mxu1 %v4584_v51  ;;  %v4567_v58 = vld [vmem:[#allocation6 + $0xdc] ss:$12 sps:$4 sm:$0xff]   ;;  %v4572_v61 = vld [vmem:[#allocation6 + $0x258] ss:$12 sps:$4 sm:$0xff]   ;;  %v4577_v0 = vld [vmem:[#allocation6 + $0xc0] ss:$12 sps:$4 sm:$0xff]  }
  0x3e   :  { %v4569_v59 = vld [vmem:[#allocation6 + $0x25c] ss:$12 sps:$4 sm:$0xff]   ;;  %v4573_v62 = vld [vmem:[#allocation6 + $0xc4] ss:$12 sps:$4 sm:$0xff]   ;;  %v4578_v1 = vld [vmem:[#allocation6 + $0x240] ss:$12 sps:$4 sm:$0xff]  }
  0x3f   :  { %1627 = vmatpush1.bf16.msra.mxu0 %v4517_v22  ;;  %v4575_v63 = vld [vmem:[#allocation6 + $0x244] ss:$12 sps:$4 sm:$0xff]   ;;  %v4587_v2 = vld [vmem:[#allocation6 + $0x3ac] ss:$12 sps:$4 sm:$0xff]   ;;  %v4582_v5 = vld [vmem:[#allocation3 + $0x8] ss:$24 sps:$4 sm:$0xff]  }
  0x40   :  { %1820 = vmatpush1.bf16.msra.mxu1 %v4518_v23  ;;  %1628 = vmatprep.subr.bf16.mxu0 %v4519_v24  ;;  %v4588_v3 = vld [vmem:[#allocation6 + $0x170] ss:$12 sps:$4 sm:$0xff]   ;;  %v5063_v4 = vld [vmem:[#allocation3] ss:$24 sps:$4 sm:$0xff]   ;;  %v4585_v6 = vld [vmem:[#allocation6 + $0x3a8] ss:$12 sps:$4 sm:$0xff]  }
  0x41   :  { %1821 = vmatprep.subr.bf16.mxu1 %v4521_v25  ;;  %v4589_v7 = vld [vmem:[#allocation6 + $0xb0] ss:$12 sps:$4 sm:$0xff]   ;;  %v5065_v8 = vld [vmem:[#allocation3 + $0x34] ss:$24 sps:$4 sm:$0xff]   ;;  %v4608_v12 = vld [vmem:[#allocation6 + $0x158] ss:$12 sps:$4 sm:$0xff]  }
  0x42   :  { %v4592_v9 = vld [vmem:[#allocation3 + $0x3c] ss:$24 sps:$4 sm:$0xff]   ;;  %v4609_v14 = vld [vmem:[#allocation6 + $0x98] ss:$12 sps:$4 sm:$0xff]   ;;  %v4628_v15 = vld [vmem:[#allocation6 + $0x140] ss:$12 sps:$4 sm:$0xff]  }
  0x43   :  { %1629 = vmatpush1.bf16.msra.mxu0 %v4523_v26  ;;  %v4596_v10 = vld [vmem:[#allocation6 + $0x390] ss:$12 sps:$4 sm:$0xff]   ;;  %v4598_v11 = vld [vmem:[#allocation6 + $0x394] ss:$12 sps:$4 sm:$0xff]   ;;  %v4601_v19 = vld [vmem:[#allocation3 + $0x6c] ss:$24 sps:$4 sm:$0xff]  }
  0x44   :  { %1822 = vmatpush1.bf16.msra.mxu1 %v4524_v27  ;;  %1630 = vmatprep.subr.bf16.mxu0 %v4525_v28  ;;  %v4607_v13 = vld [vmem:[#allocation6 + $0x37c] ss:$12 sps:$4 sm:$0xff]   ;;  %v4595_v17 = vld [vmem:[#allocation3 + $0x38] ss:$24 sps:$4 sm:$0xff]   ;;  %v4629_v21 = vld [vmem:[#allocation6 + $0x80] ss:$12 sps:$4 sm:$0xff]  }
  0x45   :  { %1823 = vmatprep.subr.bf16.mxu1 %v4527_v29  ;;  %v5069_v16 = vld [vmem:[#allocation3 + $0x30] ss:$24 sps:$4 sm:$0xff]   ;;  %v5071_v18 = vld [vmem:[#allocation3 + $0x64] ss:$24 sps:$4 sm:$0xff]   ;;  %v4616_v23 = vld [vmem:[#allocation6 + $0x360] ss:$12 sps:$4 sm:$0xff]  }
  0x46   :  { %v4605_v20 = vld [vmem:[#allocation6 + $0x378] ss:$12 sps:$4 sm:$0xff]   ;;  %v4648_v26 = vld [vmem:[#allocation6 + $0x128] ss:$12 sps:$4 sm:$0xff]  }
  0x47   :  { %1631 = vmatpush1.bf16.msra.mxu0 %v4529_v30  ;;  %v4618_v22 = vld [vmem:[#allocation6 + $0x364] ss:$12 sps:$4 sm:$0xff]   ;;  %v4627_v24 = vld [vmem:[#allocation6 + $0x34c] ss:$12 sps:$4 sm:$0xff]   ;;  %v4649_v27 = vld [vmem:[#allocation6 + $0x68] ss:$12 sps:$4 sm:$0xff]  }
  0x48   :  { %1824 = vmatpush1.bf16.msra.mxu1 %v4530_v31  ;;  %1632 = vmatprep.subr.bf16.mxu0 %v4531_v32  ;;  %v5075_v25 = vld [vmem:[#allocation3 + $0x60] ss:$24 sps:$4 sm:$0xff]   ;;  %v5077_v29 = vld [vmem:[#allocation3 + $0x94] ss:$24 sps:$4 sm:$0xff]  }
  0x49   :  { %1825 = vmatprep.subr.bf16.mxu1 %v4533_v33  ;;  %v4604_v28 = vld [vmem:[#allocation3 + $0x68] ss:$24 sps:$4 sm:$0xff]   ;;  %v4612_v30 = vld [vmem:[#allocation3 + $0x9c] ss:$24 sps:$4 sm:$0xff]   ;;  %v4688_v51 = vld [vmem:[#allocation6 + $0xf8] ss:$12 sps:$4 sm:$0xff]  }
  0x4a   :  { %v4625_v31 = vld [vmem:[#allocation6 + $0x348] ss:$12 sps:$4 sm:$0xff]  }
  0x4b   :  { %1633 = vmatpush2.bf16.msra.mxu0 %v4535_v34  ;;  %v4638_v32 = vld [vmem:[#allocation6 + $0x334] ss:$12 sps:$4 sm:$0xff]   ;;  %v5081_v33 = vld [vmem:[#allocation3 + $0x90] ss:$24 sps:$4 sm:$0xff]  }
  0x4c   :  { %1826 = vmatpush2.bf16.msra.mxu1 %v4536_v35  ;;  %1634 = vmatprep.subr.bf16.mxu0 %v4537_v36  ;;  %v4615_v34 = vld [vmem:[#allocation3 + $0x98] ss:$24 sps:$4 sm:$0xff]   ;;  %v5083_v36 = vld [vmem:[#allocation3 + $0xc4] ss:$24 sps:$4 sm:$0xff]   ;;  %v4665_v49 = vld [vmem:[#allocation6 + $0x468] ss:$12 sps:$4 sm:$0xff]  }
  0x4d   :  { %1827 = vmatprep.subr.bf16.mxu1 %v4539_v37  ;;  %v4636_v35 = vld [vmem:[#allocation6 + $0x330] ss:$12 sps:$4 sm:$0xff]   ;;  %v4621_v37 = vld [vmem:[#allocation3 + $0xcc] ss:$24 sps:$4 sm:$0xff]  }
  0x4f   :  { %1635 = vmatpush2.bf16.msra.mxu0 %v4541_v38  ;;  %v4647_v38 = vld [vmem:[#allocation6 + $0x31c] ss:$12 sps:$4 sm:$0xff]  }
  0x50   :  { %1828 = vmatpush2.bf16.msra.mxu1 %v4542_v39  ;;  %1636 = vmatprep.subr.bf16.mxu0 %v4543_v40  ;;  %v4668_v39 = vld [vmem:[#allocation6 + $0x110] ss:$12 sps:$4 sm:$0xff]  }
  0x51   :  { %1829 = vmatprep.subr.bf16.mxu1 %v4545_v41  ;;  %v4669_v40 = vld [vmem:[#allocation6 + $0x50] ss:$12 sps:$4 sm:$0xff]   ;;  %v4645_v41 = vld [vmem:[#allocation6 + $0x318] ss:$12 sps:$4 sm:$0xff]  }
  0x53   :  { %1637 = vmatpush2.bf16.msra.mxu0 %v4547_v42  ;;  %v4658_v42 = vld [vmem:[#allocation6 + $0x304] ss:$12 sps:$4 sm:$0xff]  }
  0x54   :  { %1830 = vmatpush2.bf16.msra.mxu1 %v4548_v43  ;;  %1638 = vmatprep.subr.bf16.mxu0 %v4549_v44  ;;  %v5087_v43 = vld [vmem:[#allocation3 + $0xc0] ss:$24 sps:$4 sm:$0xff]  }
  0x55   :  { %1831 = vmatprep.subr.bf16.mxu1 %v4551_v45  ;;  %v4624_v44 = vld [vmem:[#allocation3 + $0xc8] ss:$24 sps:$4 sm:$0xff]  }
  0x56   :  { %v4656_v45 = vld [vmem:[#allocation6 + $0x300] ss:$12 sps:$4 sm:$0xff]  }
  0x57   :  { %1639 = vmatpush2.bf16.msra.mxu0 %v4553_v46  ;;  %v5089_v46 = vld [vmem:[#allocation3 + $0xf4] ss:$24 sps:$4 sm:$0xff]  }
  0x58   :  { %1832 = vmatpush2.bf16.msra.mxu1 %v4554_v47  ;;  %1640 = vmatprep.subr.bf16.mxu0 %v4555_v48  ;;  %v4667_v47 = vld [vmem:[#allocation6 + $0x46c] ss:$12 sps:$4 sm:$0xff]   ;;  %v4632_v48 = vld [vmem:[#allocation3 + $0xfc] ss:$24 sps:$4 sm:$0xff]  }
  0x59   :  { %1833 = vmatprep.subr.bf16.mxu1 %v4557_v50  ;;  %v4678_v50 = vld [vmem:[#allocation6 + $0x454] ss:$12 sps:$4 sm:$0xff]  }
  0x5b   :  { %1641 = vmatpush2.bf16.msra.mxu0 %v4559_v52  ;;  %v4689_v52 = vld [vmem:[#allocation6 + $0x38] ss:$12 sps:$4 sm:$0xff]  }
  0x5c   :  { %1834 = vmatpush2.bf16.msra.mxu1 %v4560_v53  ;;  %1642 = vmatprep.subr.bf16.mxu0 %v4561_v54  ;;  %v4676_v53 = vld [vmem:[#allocation6 + $0x450] ss:$12 sps:$4 sm:$0xff]  }
  0x5d   :  { %1835 = vmatprep.subr.bf16.mxu1 %v4563_v55  ;;  %v5093_v54 = vld [vmem:[#allocation3 + $0xf0] ss:$24 sps:$4 sm:$0xff]  }
  0x5e   :  { %v4687_v55 = vld [vmem:[#allocation6 + $0x43c] ss:$12 sps:$4 sm:$0xff]  }
  0x5f   :  { %1643 = vmatpush2.bf16.msra.mxu0 %v4565_v56  ;;  %v4635_v56 = vld [vmem:[#allocation3 + $0xf8] ss:$24 sps:$4 sm:$0xff]  }
  0x60   :  { %1836 = vmatpush2.bf16.msra.mxu1 %v4566_v57  ;;  %1644 = vmatprep.subr.bf16.mxu0 %v4567_v58  ;;  %v5095_v57 = vld [vmem:[#allocation3 + $0x124] ss:$24 sps:$4 sm:$0xff]  }
  0x61   :  { %1837 = vmatprep.subr.bf16.mxu1 %v4569_v59  ;;  %v4641_v58 = vld [vmem:[#allocation3 + $0x12c] ss:$24 sps:$4 sm:$0xff]  }
  0x62   :  { %v4685_v59 = vld [vmem:[#allocation6 + $0x438] ss:$12 sps:$4 sm:$0xff]  }
  0x63   :  { %1645 = vmatpush2.bf16.msra.mxu0 %v4571_v60  ;;  %v4698_v60 = vld [vmem:[#allocation6 + $0x424] ss:$12 sps:$4 sm:$0xff]  }
  0x64   :  { %1838 = vmatpush2.bf16.msra.mxu1 %v4572_v61  ;;  %1646 = vmatprep.subr.bf16.mxu0 %v4573_v62  ;;  %v4708_v61 = vld [vmem:[#allocation6 + $0xe0] ss:$12 sps:$4 sm:$0xff]  }
  0x65   :  { %1839 = vmatprep.subr.bf16.mxu1 %v4575_v63  ;;  %v4709_v62 = vld [vmem:[#allocation6 + $0x20] ss:$12 sps:$4 sm:$0xff]  }
  0x66   :  { %v4696_v63 = vld [vmem:[#allocation6 + $0x420] ss:$12 sps:$4 sm:$0xff]  }
  0x67   :  { %1647 = vmatpush2.bf16.msra.mxu0 %v4577_v0  ;;  %v5099_v0 = vld [vmem:[#allocation3 + $0x120] ss:$24 sps:$4 sm:$0xff]  }
  0x68   :  { %1840 = vmatpush2.bf16.msra.mxu1 %v4578_v1  ;;  %2002 = vmatprep.subr.bf16.mxu0 %v4587_v2  ;;  %v4707_v1 = vld [vmem:[#allocation6 + $0x40c] ss:$12 sps:$4 sm:$0xff]   ;;  %v4644_v2 = vld [vmem:[#allocation3 + $0x128] ss:$24 sps:$4 sm:$0xff]  }
  0x69   :  { %4134 = vmatprep.subr.bf16.mxu1 %v4588_v3  ;;  %v5101_v3 = vld [vmem:[#allocation3 + $0x154] ss:$24 sps:$4 sm:$0xff]  }
  0x6a   :  { %1649 = vmatmul.mubr.bf16.vlgmr.msra.gmra.mxu0 %v5063_v4 }
  0x6b   :  { %1842 = vmatmul.mubr.bf16.vlgmr.msra.gmra.mxu1 %v4582_v5  ;;  %2003 = vmatpush1.bf16.msra.mxu0 %v4585_v6  ;;  %v4652_v5 = vld [vmem:[#allocation3 + $0x15c] ss:$24 sps:$4 sm:$0xff]  }
  0x6c   :  { %4135 = vmatpush3.bf16.msra.mxu1 %v4589_v7  ;;  %1658 = vmatprep.mubr.bf16.mxu0 %v5065_v8  ;;  %v4705_v6 = vld [vmem:[#allocation6 + $0x408] ss:$12 sps:$4 sm:$0xff]  }
  0x6d   :  { %1851 = vmatprep.mubr.bf16.mxu1 %v4592_v9  ;;  %2004 = vmatprep.subr.bf16.mxu0 %v4598_v11  ;;  %v4718_v7 = vld [vmem:[#allocation6 + $0x3f4] ss:$12 sps:$4 sm:$0xff]   ;;  %v4716_v9 = vld [vmem:[#allocation6 + $0x3f0] ss:$12 sps:$4 sm:$0xff]  }
  0x6e   :  { %4136 = vmatprep.subr.bf16.mxu1 %v4608_v12  ;;  %v5105_v11 = vld [vmem:[#allocation3 + $0x150] ss:$24 sps:$4 sm:$0xff]  }
  0x6f   :  { %2005 = vmatpush1.bf16.msra.mxu0 %v4596_v10  ;;  %v4727_v10 = vld [vmem:[#allocation6 + $0x3dc] ss:$12 sps:$4 sm:$0xff]  }
  0x70   :  { %4137 = vmatpush3.bf16.msra.mxu1 %v4609_v14  ;;  %2006 = vmatprep.subr.bf16.mxu0 %v4607_v13  ;;  %v4728_v12 = vld [vmem:[#allocation6 + $0xc8] ss:$12 sps:$4 sm:$0xff]   ;;  %v4655_v14 = vld [vmem:[#allocation3 + $0x158] ss:$24 sps:$4 sm:$0xff]  }
  0x71   :  { %4138 = vmatprep.subr.bf16.mxu1 %v4628_v15  ;;  %v4729_v13 = vld [vmem:[#allocation6 + $0x8] ss:$12 sps:$4 sm:$0xff]   ;;  %v5107_v15 = vld [vmem:[#allocation3 + $0x184] ss:$24 sps:$4 sm:$0xff]  }
  0x72   :  { %1659 = vmatmul.mubr.bf16.gmra.mxu0 %v5069_v16 }
  0x73   :  { %1852 = vmatmul.mubr.bf16.gmra.mxu1 %v4595_v17  ;;  %1668 = vmatprep.mubr.bf16.mxu0 %v5071_v18  ;;  %v4661_v17 = vld [vmem:[#allocation3 + $0x18c] ss:$24 sps:$4 sm:$0xff]  }
  0x74   :  { %1861 = vmatprep.mubr.bf16.mxu1 %v4601_v19  ;;  %2007 = vmatpush1.bf16.msra.mxu0 %v4605_v20  ;;  %v4725_v19 = vld [vmem:[#allocation6 + $0x3d8] ss:$12 sps:$4 sm:$0xff]  }
  0x75   :  { %4139 = vmatpush3.bf16.msra.mxu1 %v4629_v21  ;;  %2008 = vmatprep.subr.bf16.mxu0 %v4618_v22  ;;  %v4738_v20 = vld [vmem:[#allocation6 + $0x3c4] ss:$12 sps:$4 sm:$0xff]   ;;  %v4736_v21 = vld [vmem:[#allocation6 + $0x3c0] ss:$12 sps:$4 sm:$0xff]  }
  0x76   :  { %4140 = vmatprep.subr.bf16.mxu1 %v4648_v26  ;;  %v5111_v22 = vld [vmem:[#allocation3 + $0x180] ss:$24 sps:$4 sm:$0xff]   ;;  %v4744_v26 = vld [vmem:[#allocation6 + $0x470] ss:$12 sps:$4 sm:$0xff]  }
  0x78   :  { %2009 = vmatpush1.bf16.msra.mxu0 %v4616_v23  ;;  %v4664_v23 = vld [vmem:[#allocation3 + $0x188] ss:$24 sps:$4 sm:$0xff]  }
  0x79   :  { %4141 = vmatpush3.bf16.msra.mxu1 %v4649_v27  ;;  %2010 = vmatprep.subr.bf16.mxu0 %v4627_v24  ;;  %v4742_v24 = vld [vmem:[#allocation6 + $0x2f0] ss:$12 sps:$4 sm:$0xff]   ;;  %v5113_v27 = vld [vmem:[#allocation3 + $0x1b4] ss:$24 sps:$4 sm:$0xff]  }
  0x7a   :  { %1669 = vmatmul.mubr.bf16.gmra.mxu0 %v5075_v25  ;;  %4142 = vmatprep.subr.bf16.mxu1 %v4668_v39  ;;  %v4692_v39 = vld [vmem:[#allocation3 + $0x21c] ss:$24 sps:$4 sm:$0xff]  }
  0x7b   :  { %1862 = vmatmul.mubr.bf16.gmra.mxu1 %v4604_v28  ;;  %1678 = vmatprep.mubr.bf16.mxu0 %v5077_v29  ;;  %v4672_v28 = vld [vmem:[#allocation3 + $0x1bc] ss:$24 sps:$4 sm:$0xff]  }
  0x7c   :  { %1871 = vmatprep.mubr.bf16.mxu1 %v4612_v30  ;;  %2011 = vmatpush1.bf16.msra.mxu0 %v4625_v31  ;;  %v5117_v30 = vld [vmem:[#allocation3 + $0x1b0] ss:$24 sps:$4 sm:$0xff]  }
  0x7d   :  { %2012 = vmatprep.subr.bf16.mxu0 %v4638_v32  ;;  %4143 = vmatpush3.bf16.msra.mxu1 %v4669_v40  ;;  %v4675_v31 = vld [vmem:[#allocation3 + $0x1b8] ss:$24 sps:$4 sm:$0xff]   ;;  %v5119_v32 = vld [vmem:[#allocation3 + $0x1e4] ss:$24 sps:$4 sm:$0xff]  }
  0x7e   :  { %4144 = vmatprep.subr.bf16.mxu1 %v4688_v51  ;;  %v5129_v40 = vld [vmem:[#allocation3 + $0x210] ss:$24 sps:$4 sm:$0xff]  }
  0x7f   :  { %v4715_v51 = vld [vmem:[#allocation3 + $0x278] ss:$24 sps:$4 sm:$0xff]  }
  0x80   :  { %2013 = vmatpush1.bf16.msra.mxu0 %v4636_v35  ;;  %v5123_v35 = vld [vmem:[#allocation3 + $0x1e0] ss:$24 sps:$4 sm:$0xff]  }
  0x81   :  { %2014 = vmatprep.subr.bf16.mxu0 %v4647_v38  ;;  %4145 = vmatpush3.bf16.msra.mxu1 %v4689_v52  ;;  %v5125_v38 = vld [vmem:[#allocation3 + $0x214] ss:$24 sps:$4 sm:$0xff]   ;;  %v5143_v52 = vld [vmem:[#allocation3 + $0x2a4] ss:$24 sps:$4 sm:$0xff]  }
  0x82   :  { %1679 = vmatmul.mubr.bf16.gmra.mxu0 %v5081_v33  ;;  %4146 = vmatprep.subr.bf16.mxu1 %v4708_v61  ;;  %v4735_v61 = vld [vmem:[#allocation3 + $0x2d8] ss:$24 sps:$4 sm:$0xff]  }
  0x83   :  { %1872 = vmatmul.mubr.bf16.gmra.mxu1 %v4615_v34  ;;  %1688 = vmatprep.mubr.bf16.mxu0 %v5083_v36  ;;  %v4681_v34 = vld [vmem:[#allocation3 + $0x1ec] ss:$24 sps:$4 sm:$0xff]  }
  0x84   :  { %1881 = vmatprep.mubr.bf16.mxu1 %v4621_v37  ;;  %2015 = vmatpush1.bf16.msra.mxu0 %v4645_v41  ;;  %v4684_v37 = vld [vmem:[#allocation3 + $0x1e8] ss:$24 sps:$4 sm:$0xff]   ;;  %v4695_v41 = vld [vmem:[#allocation3 + $0x218] ss:$24 sps:$4 sm:$0xff]  }
  0x85   :  { %2016 = vmatprep.subr.bf16.mxu0 %v4658_v42  ;;  %4147 = vmatpush3.bf16.msra.mxu1 %v4709_v62  ;;  %v5131_v42 = vld [vmem:[#allocation3 + $0x244] ss:$24 sps:$4 sm:$0xff]   ;;  %v5155_v62 = vld [vmem:[#allocation3 + $0x14] ss:$24 sps:$4 sm:$0xff]  }
  0x86   :  { %4148 = vmatprep.subr.bf16.mxu1 %v4728_v12  ;;  %v4755_v12 = vld [vmem:[#allocation6 + $0x398] ss:$12 sps:$4 sm:$0xff]  }
  0x88   :  { %2017 = vmatpush1.bf16.msra.mxu0 %v4656_v45  ;;  %v5135_v45 = vld [vmem:[#allocation3 + $0x240] ss:$24 sps:$4 sm:$0xff]  }
  0x89   :  { %2018 = vmatprep.subr.bf16.mxu0 %v4667_v47  ;;  %4149 = vmatpush3.bf16.msra.mxu1 %v4729_v13  ;;  %v4704_v47 = vld [vmem:[#allocation3 + $0x248] ss:$24 sps:$4 sm:$0xff]  }
  0x8a   :  { %1689 = vmatmul.mubr.bf16.gmra.mxu0 %v5087_v43  ;;  %4358 = vmatprep.subr.bf16.mxu1 %v4744_v26  ;;  %v4762_v13 = vld [vmem:[#allocation6 + $0x2c0] ss:$12 sps:$4 sm:$0xff]   ;;  %v4782_v26 = vld [vmem:[#allocation6 + $0x290] ss:$12 sps:$4 sm:$0xff]  }
  0x8b   :  { %1882 = vmatmul.mubr.bf16.gmra.mxu1 %v4624_v44  ;;  %1698 = vmatprep.mubr.bf16.mxu0 %v5089_v46  ;;  %v4701_v44 = vld [vmem:[#allocation3 + $0x24c] ss:$24 sps:$4 sm:$0xff]  }
  0x8c   :  { %1891 = vmatprep.mubr.bf16.mxu1 %v4632_v48  ;;  %2019 = vmatpush2.bf16.msra.mxu0 %v4665_v49  ;;  %v5137_v48 = vld [vmem:[#allocation3 + $0x274] ss:$24 sps:$4 sm:$0xff]  }
  0x8d   :  { %2020 = vmatprep.subr.bf16.mxu0 %v4678_v50  ;;  %v4712_v49 = vld [vmem:[#allocation3 + $0x27c] ss:$24 sps:$4 sm:$0xff]   ;;  %v5141_v50 = vld [vmem:[#allocation3 + $0x270] ss:$24 sps:$4 sm:$0xff]  }
  0x90   :  { %2021 = vmatpush2.bf16.msra.mxu0 %v4676_v53  ;;  %v4721_v53 = vld [vmem:[#allocation3 + $0x2ac] ss:$24 sps:$4 sm:$0xff]  }
  0x91   :  { %2022 = vmatprep.subr.bf16.mxu0 %v4687_v55  ;;  %v5147_v55 = vld [vmem:[#allocation3 + $0x2a0] ss:$24 sps:$4 sm:$0xff]  }
  0x92   :  { %1699 = vmatmul.mubr.bf16.gmra.mxu0 %v5093_v54 }
  0x93   :  { %1892 = vmatmul.mubr.bf16.gmra.mxu1 %v4635_v56  ;;  %1708 = vmatprep.mubr.bf16.mxu0 %v5095_v57  ;;  %v4724_v56 = vld [vmem:[#allocation3 + $0x2a8] ss:$24 sps:$4 sm:$0xff]  }
  0x94   :  { %1901 = vmatprep.mubr.bf16.mxu1 %v4641_v58  ;;  %2023 = vmatpush2.bf16.msra.mxu0 %v4685_v59  ;;  %v5149_v58 = vld [vmem:[#allocation3 + $0x2d4] ss:$24 sps:$4 sm:$0xff]  }
  0x95   :  { %2024 = vmatprep.subr.bf16.mxu0 %v4698_v60  ;;  %v4732_v59 = vld [vmem:[#allocation3 + $0x2dc] ss:$24 sps:$4 sm:$0xff]   ;;  %v5153_v60 = vld [vmem:[#allocation3 + $0x2d0] ss:$24 sps:$4 sm:$0xff]  }
  0x98   :  { %2025 = vmatpush2.bf16.msra.mxu0 %v4696_v63  ;;  %v4891_v63 = vld [vmem:[#allocation3 + $0x4] ss:$24 sps:$4 sm:$0xff]  }
  0x99   :  { %2026 = vmatprep.subr.bf16.mxu0 %v4707_v1  ;;  %v5159_v1 = vld [vmem:[#allocation3 + $0x10] ss:$24 sps:$4 sm:$0xff]  }
  0x9a   :  { %1709 = vmatmul.mubr.bf16.gmra.mxu0 %v5099_v0 }
  0x9b   :  { %1902 = vmatmul.mubr.bf16.gmra.mxu1 %v4644_v2  ;;  %1718 = vmatprep.mubr.bf16.mxu0 %v5101_v3  ;;  %v4743_v2 = vld [vmem:[#allocation6 + $0x230] ss:$12 sps:$4 sm:$0xff]  }
  0x9c   :  { %1911 = vmatprep.mubr.bf16.mxu1 %v4652_v5  ;;  %2027 = vmatpush2.bf16.msra.mxu0 %v4705_v6  ;;  %v4745_v5 = vld [vmem:[#allocation6 + $0x3b0] ss:$12 sps:$4 sm:$0xff]  }
  0x9d   :  { %2028 = vmatprep.subr.bf16.mxu0 %v4718_v7  ;;  %v5161_v6 = vld [vmem:[#allocation3 + $0x44] ss:$24 sps:$4 sm:$0xff]  }
  0x9e   :  { %v4752_v7 = vld [vmem:[#allocation6 + $0x2d8] ss:$12 sps:$4 sm:$0xff]  }
  0xa0   :  { %2029 = vmatpush2.bf16.msra.mxu0 %v4716_v9  ;;  %v4754_v9 = vld [vmem:[#allocation6 + $0x458] ss:$12 sps:$4 sm:$0xff]  }
  0xa1   :  { %2030 = vmatprep.subr.bf16.mxu0 %v4727_v10  ;;  %v4753_v10 = vld [vmem:[#allocation6 + $0x218] ss:$12 sps:$4 sm:$0xff]  }
  0xa2   :  { %1719 = vmatmul.mubr.bf16.gmra.mxu0 %v5105_v11 }
  0xa3   :  { %1912 = vmatmul.mubr.bf16.gmra.mxu1 %v4655_v14  ;;  %1728 = vmatprep.mubr.bf16.mxu0 %v5107_v15  ;;  %v4764_v14 = vld [vmem:[#allocation6 + $0x440] ss:$12 sps:$4 sm:$0xff]  }
  0xa4   :  { %1921 = vmatprep.mubr.bf16.mxu1 %v4661_v17  ;;  %2031 = vmatpush2.bf16.msra.mxu0 %v4725_v19  ;;  %v5167_v17 = vld [vmem:[#allocation3 + $0x40] ss:$24 sps:$4 sm:$0xff]   ;;  %v5169_v19 = vld [vmem:[#allocation3 + $0x74] ss:$24 sps:$4 sm:$0xff]  }
  0xa5   :  { %2032 = vmatprep.subr.bf16.mxu0 %v4738_v20  ;;  %v4765_v20 = vld [vmem:[#allocation6 + $0x380] ss:$12 sps:$4 sm:$0xff]  }
  0xa8   :  { %2033 = vmatpush2.bf16.msra.mxu0 %v4736_v21  ;;  %v4772_v21 = vld [vmem:[#allocation6 + $0x2a8] ss:$12 sps:$4 sm:$0xff]  }
  0xa9   :  { %4246 = vmatprep.subr.bf16.mxu0 %v4742_v24  ;;  %v4775_v24 = vld [vmem:[#allocation6 + $0x368] ss:$12 sps:$4 sm:$0xff]  }
  0xaa   :  { %1729 = vmatmul.mubr.bf16.gmra.mxu0 %v5111_v22 }
  0xab   :  { %1922 = vmatmul.mubr.bf16.gmra.mxu1 %v4664_v23  ;;  %1738 = vmatprep.mubr.bf16.mxu0 %v5113_v27  ;;  %v4774_v23 = vld [vmem:[#allocation6 + $0x428] ss:$12 sps:$4 sm:$0xff]  }
  0xac   :  { %1931 = vmatprep.mubr.bf16.mxu1 %v4672_v28  ;;  %v4784_v28 = vld [vmem:[#allocation6 + $0x410] ss:$12 sps:$4 sm:$0xff]  }
  0xb2   :  { %1739 = vmatmul.mubr.bf16.gmra.mxu0 %v5117_v30 }
  0xb3   :  { %1932 = vmatmul.mubr.bf16.gmra.mxu1 %v4675_v31  ;;  %1748 = vmatprep.mubr.bf16.mxu0 %v5119_v32  ;;  %v5175_v31 = vld [vmem:[#allocation3 + $0x70] ss:$24 sps:$4 sm:$0xff]  }
  0xb4   :  { %1941 = vmatprep.mubr.bf16.mxu1 %v4681_v34  ;;  %v5177_v34 = vld [vmem:[#allocation3 + $0xa4] ss:$24 sps:$4 sm:$0xff]  }
  0xba   :  { %1749 = vmatmul.mubr.bf16.gmra.mxu0 %v5123_v35 }
  0xbb   :  { %1942 = vmatmul.mubr.bf16.gmra.mxu1 %v4684_v37  ;;  %1758 = vmatprep.mubr.bf16.mxu0 %v5125_v38  ;;  %v4783_v37 = vld [vmem:[#allocation6 + $0x1d0] ss:$12 sps:$4 sm:$0xff]  }
  0xbc   :  { %1951 = vmatprep.mubr.bf16.mxu1 %v4692_v39  ;;  %v4792_v39 = vld [vmem:[#allocation6 + $0x278] ss:$12 sps:$4 sm:$0xff]  }
  0xc2   :  { %1759 = vmatmul.mubr.bf16.gmra.mxu0 %v5129_v40 }
  0xc3   :  { %1952 = vmatmul.mubr.bf16.gmra.mxu1 %v4695_v41  ;;  %1768 = vmatprep.mubr.bf16.mxu0 %v5131_v42  ;;  %v4793_v41 = vld [vmem:[#allocation6 + $0x1b8] ss:$12 sps:$4 sm:$0xff]  }
  0xc4   :  { %1961 = vmatprep.mubr.bf16.mxu1 %v4701_v44  ;;  %v4795_v44 = vld [vmem:[#allocation6 + $0x338] ss:$12 sps:$4 sm:$0xff]  }
  0xca   :  { %1769 = vmatmul.mubr.bf16.gmra.mxu0 %v5135_v45 }
  0xcb   :  { %1962 = vmatmul.mubr.bf16.gmra.mxu1 %v4704_v47  ;;  %1778 = vmatprep.mubr.bf16.mxu0 %v5137_v48  ;;  %v4802_v47 = vld [vmem:[#allocation6 + $0x260] ss:$12 sps:$4 sm:$0xff]  }
  0xcc   :  { %1971 = vmatprep.mubr.bf16.mxu1 %v4712_v49  ;;  %v4804_v49 = vld [vmem:[#allocation6 + $0x3e0] ss:$12 sps:$4 sm:$0xff]  }
  0xd2   :  { %1779 = vmatmul.mubr.bf16.gmra.mxu0 %v5141_v50 }
  0xd3   :  { %1972 = vmatmul.mubr.bf16.gmra.mxu1 %v4715_v51  ;;  %1788 = vmatprep.mubr.bf16.mxu0 %v5143_v52  ;;  %v5183_v51 = vld [vmem:[#allocation3 + $0xa0] ss:$24 sps:$4 sm:$0xff]  }
  0xd4   :  { %1981 = vmatprep.mubr.bf16.mxu1 %v4721_v53  ;;  %v5185_v53 = vld [vmem:[#allocation3 + $0xd4] ss:$24 sps:$4 sm:$0xff]  }
  0xda   :  { %1789 = vmatmul.mubr.bf16.gmra.mxu0 %v5147_v55 }
  0xdb   :  { %1982 = vmatmul.mubr.bf16.gmra.mxu1 %v4724_v56  ;;  %1798 = vmatprep.mubr.bf16.mxu0 %v5149_v58  ;;  %v4803_v56 = vld [vmem:[#allocation6 + $0x1a0] ss:$12 sps:$4 sm:$0xff]  }
  0xdc   :  { %1991 = vmatprep.mubr.bf16.mxu1 %v4732_v59  ;;  %v4812_v59 = vld [vmem:[#allocation6 + $0x248] ss:$12 sps:$4 sm:$0xff]  }
  0xe2   :  { %1799 = vmatmul.mubr.bf16.gmra.mxu0 %v5153_v60 }
  0xe3   :  { %1992 = vmatmul.mubr.bf16.gmra.mxu1 %v4735_v61  ;;  %2034 = vmatprep.mubr.bf16.mxu0 %v5155_v62  ;;  %v4813_v61 = vld [vmem:[#allocation6 + $0x188] ss:$12 sps:$4 sm:$0xff]  }
  0xe4   :  { %2227 = vmatprep.mubr.bf16.mxu1 %v4891_v63  ;;  %v4815_v63 = vld [vmem:[#allocation6 + $0x308] ss:$12 sps:$4 sm:$0xff]  }
  0xea   :  { %2035 = vmatmul.mubr.bf16.vlgmr.msra.gmra.mxu0 %v5159_v1 }
  0xeb   :  { %2228 = vmatmul.mubr.bf16.vlgmr.msra.gmra.mxu1 %v5063_v4  ;;  %4247 = vmatpush3.bf16.msra.mxu0 %v4743_v2  ;;  %v4763_v4 = vld [vmem:[#allocation6 + $0x200] ss:$12 sps:$4 sm:$0xff]   ;;  %v5191_v2 = vld [vmem:[#allocation3 + $0xd0] ss:$24 sps:$4 sm:$0xff]  }
  0xec   :  { %4359 = vmatpush3.bf16.msra.mxu1 %v4745_v5  ;;  %2044 = vmatprep.mubr.bf16.mxu0 %v5161_v6  ;;  %v5193_v5 = vld [vmem:[#allocation3 + $0x104] ss:$24 sps:$4 sm:$0xff]  }
  0xed   :  { %2235 = vmatprep.mubr.bf16.mxu1 %v5065_v8  ;;  %4248 = vmatprep.subr.bf16.mxu0 %v4752_v7  ;;  %v4773_v8 = vld [vmem:[#allocation6 + $0x1e8] ss:$12 sps:$4 sm:$0xff]  }
  0xee   :  { %4360 = vmatprep.subr.bf16.mxu1 %v4754_v9  ;;  %v5207_v7 = vld [vmem:[#allocation3 + $0x130] ss:$24 sps:$4 sm:$0xff]   ;;  %v5209_v9 = vld [vmem:[#allocation3 + $0x164] ss:$24 sps:$4 sm:$0xff]  }
  0xef   :  { %4249 = vmatpush3.bf16.msra.mxu0 %v4753_v10 }
  0xf0   :  { %4361 = vmatpush3.bf16.msra.mxu1 %v4755_v12  ;;  %4250 = vmatprep.subr.bf16.mxu0 %v4762_v13  ;;  %v5230_v12 = vld [vmem:[#allocation3 + $0x190] ss:$24 sps:$4 sm:$0xff]  }
  0xf1   :  { %4362 = vmatprep.subr.bf16.mxu1 %v4764_v14  ;;  %v5236_v14 = vld [vmem:[#allocation3 + $0x1c4] ss:$24 sps:$4 sm:$0xff]  }
  0xf2   :  { %2045 = vmatmul.mubr.bf16.gmra.mxu0 %v5167_v17 }
  0xf3   :  { %2236 = vmatmul.mubr.bf16.gmra.mxu1 %v5069_v16  ;;  %2054 = vmatprep.mubr.bf16.mxu0 %v5169_v19  ;;  %v4785_v16 = vld [vmem:[#allocation6 + $0x350] ss:$12 sps:$4 sm:$0xff]  }
  0xf4   :  { %2243 = vmatprep.mubr.bf16.mxu1 %v5071_v18  ;;  %4251 = vmatpush3.bf16.msra.mxu0 %v4763_v4  ;;  %v4794_v18 = vld [vmem:[#allocation6 + $0x3f8] ss:$12 sps:$4 sm:$0xff]  }
  0xf5   :  { %4363 = vmatpush3.bf16.msra.mxu1 %v4765_v20  ;;  %4252 = vmatprep.subr.bf16.mxu0 %v4772_v21 }
  0xf6   :  { %4364 = vmatprep.subr.bf16.mxu1 %v4774_v23 }
  0xf8   :  { %4253 = vmatpush3.bf16.msra.mxu0 %v4773_v8 }
  0xf9   :  { %4365 = vmatpush3.bf16.msra.mxu1 %v4775_v24  ;;  %4254 = vmatprep.subr.bf16.mxu0 %v4782_v26 }
  0xfa   :  { %4366 = vmatprep.subr.bf16.mxu1 %v4784_v28  ;;  %2055 = vmatmul.mubr.bf16.gmra.mxu0 %v5175_v31 }
  0xfb   :  { %2244 = vmatmul.mubr.bf16.gmra.mxu1 %v5075_v25  ;;  %2064 = vmatprep.mubr.bf16.mxu0 %v5177_v34  ;;  %v4805_v25 = vld [vmem:[#allocation6 + $0x320] ss:$12 sps:$4 sm:$0xff]  }
  0xfc   :  { %2251 = vmatprep.mubr.bf16.mxu1 %v5077_v29  ;;  %4255 = vmatpush3.bf16.msra.mxu0 %v4783_v37  ;;  %v4814_v29 = vld [vmem:[#allocation6 + $0x3c8] ss:$12 sps:$4 sm:$0xff]  }
  0xfd   :  { %4367 = vmatpush3.bf16.msra.mxu1 %v4785_v16  ;;  %4256 = vmatprep.subr.bf16.mxu0 %v4792_v39  ;;  %v5250_v16 = vld [vmem:[#allocation3 + $0x1c0] ss:$24 sps:$4 sm:$0xff]  }
  0xfe   :  { %4368 = vmatprep.subr.bf16.mxu1 %v4794_v18  ;;  %v5255_v18 = vld [vmem:[#allocation3 + $0x1f4] ss:$24 sps:$4 sm:$0xff]  }
 0x100   :  { %4257 = vmatpush3.bf16.msra.mxu0 %v4793_v41 }
 0x101   :  { %4369 = vmatpush3.bf16.msra.mxu1 %v4795_v44  ;;  %4258 = vmatprep.subr.bf16.mxu0 %v4802_v47 }
 0x102   :  { %4370 = vmatprep.subr.bf16.mxu1 %v4804_v49  ;;  %2065 = vmatmul.mubr.bf16.gmra.mxu0 %v5183_v51 }
 0x103   :  { %2252 = vmatmul.mubr.bf16.gmra.mxu1 %v5081_v33  ;;  %2074 = vmatprep.mubr.bf16.mxu0 %v5185_v53  ;;  %v5199_v33 = vld [vmem:[#allocation3 + $0x100] ss:$24 sps:$4 sm:$0xff]  }
 0x104   :  { %2259 = vmatprep.mubr.bf16.mxu1 %v5083_v36  ;;  %4259 = vmatpush3.bf16.msra.mxu0 %v4803_v56  ;;  %v5201_v36 = vld [vmem:[#allocation3 + $0x134] ss:$24 sps:$4 sm:$0xff]  }
 0x105   :  { %4371 = vmatpush3.bf16.msra.mxu1 %v4805_v25  ;;  %4260 = vmatprep.subr.bf16.mxu0 %v4812_v59 }
 0x106   :  { %4372 = vmatprep.subr.bf16.mxu1 %v4814_v29 }
 0x108   :  { %4261 = vmatpush3.bf16.msra.mxu0 %v4813_v61 }
 0x109   :  { %4373 = vmatpush3.bf16.msra.mxu1 %v4815_v63 }
 0x10a   :  { %2075 = vmatmul.mubr.bf16.gmra.mxu0 %v5191_v2 }
 0x10b   :  { %2260 = vmatmul.mubr.bf16.gmra.mxu1 %v5087_v43  ;;  %2084 = vmatprep.mubr.bf16.mxu0 %v5193_v5  ;;  %v353_v43 = vlaneseq }
 0x10c   :  { %2267 = vmatprep.mubr.bf16.mxu1 %v5089_v46  ;;  %v5215_v46 = vld [vmem:[#allocation3 + $0x160] ss:$24 sps:$4 sm:$0xff]  }
 0x10d   :  { %v5219_v10 = vshrl.u32 %v353_v43, 7 }
 0x10f   :  { %6100 = vst [vmem:[#allocation13_spill] sm:$0xff] %v5219_v10 }
 0x112   :  { %2085 = vmatmul.mubr.bf16.gmra.mxu0 %v5199_v33 }
 0x113   :  { %2268 = vmatmul.mubr.bf16.gmra.mxu1 %v5093_v54  ;;  %2094 = vmatprep.mubr.bf16.mxu0 %v5201_v36  ;;  %v5217_v54 = vld [vmem:[#allocation3 + $0x194] ss:$24 sps:$4 sm:$0xff]  }
 0x114   :  { %2275 = vmatprep.mubr.bf16.mxu1 %v5095_v57  ;;  %v6088_v57 = vsub.s32 0, %v5219_v10 }
 0x11a   :  { %2095 = vmatmul.mubr.bf16.gmra.mxu0 %v5207_v7 }
 0x11b   :  { %2276 = vmatmul.mubr.bf16.gmra.mxu1 %v5099_v0  ;;  %2104 = vmatprep.mubr.bf16.mxu0 %v5209_v9  ;;  %v351_v0 = vld [vmem:[%s6083_s2] sm:$0x7] }
 0x11c   :  { %2283 = vmatprep.mubr.bf16.mxu1 %v5101_v3  ;;  %v6087_v3 = vsub.s32 1, %v5219_v10  ;;  %v5234_v13 = vrot.slane %v351_v0, %v6088_v57  ;;  %v5330_v10 = vld [vmem:[#allocation3 + $0x280] ss:$24 sps:$4 sm:$0xff]  }
 0x11d   :  { %6103 = vst [vmem:[#allocation16_spill] sm:$0xff] %v5330_v10 }
 0x122   :  { %2105 = vmatmul.mubr.bf16.gmra.mxu0 %v5215_v46 }
 0x123   :  { %2284 = vmatmul.mubr.bf16.gmra.mxu1 %v5105_v11  ;;  %2114 = vmatprep.mubr.bf16.mxu0 %v5217_v54  ;;  %v4821_v11 = vld [vmem:[#allocation8 + $0x74] ss:$8 sps:$4 sm:$0xff]  }
 0x124   :  { %2291 = vmatprep.mubr.bf16.mxu1 %v5107_v15  ;;  %v5240_v15 = vrot.slane %v351_v0, %v6087_v3  ;;  %3314 = vmatprep.subr.bf16.mxu0 %v4821_v11 }
 0x12a   :  { %v1650_v4 = vpop.f32.mrf.mxu0  ;;  %2115 = vmatmul.mubr.bf16.gmra.mxu0 %v5230_v12 }
 0x12b   :  { %v1843_v20 = vpop.f32.mrf.mxu1  ;;  %2292 = vmatmul.mubr.bf16.gmra.mxu1 %v5111_v22  ;;  %v1651_v21 = vadd.f32 %v1650_v4, %v5234_v13  ;;  %2124 = vmatprep.mubr.bf16.mxu0 %v5236_v14  ;;  %v5270_v4 = vld [vmem:[#allocation3 + $0x1f0] ss:$24 sps:$4 sm:$0xff]  }
 0x12c   :  { %2299 = vmatprep.mubr.bf16.mxu1 %v5113_v27  ;;  %v1652_v23 = vpop.f32.mrf.mxu0 }
 0x12d   :  { %v1845_v8 = vpop.f32.mrf.mxu1  ;;  %v5247_v24 = vadd.f32 %v1843_v20, %v1651_v21  ;;  %v1653_v26 = vadd.f32 %v1652_v23, %v5240_v15  ;;  %v5275_v21 = vld [vmem:[#allocation3 + $0x224] ss:$24 sps:$4 sm:$0xff]  }
 0x12e   :  { %v1654_v28 = vpop.f32.mrf.mxu0 }
 0x12f   :  { %v1847_v37 = vpop.f32.mrf.mxu1  ;;  %v5252_v39 = vadd.f32 %v1845_v8, %v1653_v26  ;;  %v1655_v22 = vadd.f32 %v1654_v28, %v5234_v13 }
 0x130   :  { %v1656_v41 = vpop.f32.mrf.mxu0 }
 0x131   :  { %v1849_v44 = vpop.f32.mrf.mxu1  ;;  %v5257_v27 = vadd.f32 %v1847_v37, %v1655_v22  ;;  %v1657_v47 = vadd.f32 %v1656_v41, %v5240_v15 }
 0x132   :  { %v1660_v49 = vpop.f32.mrf.mxu0  ;;  %2125 = vmatmul.mubr.bf16.gmra.mxu0 %v5250_v16 }
 0x133   :  { %v1853_v56 = vpop.f32.mrf.mxu1  ;;  %2300 = vmatmul.mubr.bf16.gmra.mxu1 %v5117_v30  ;;  %v5262_v25 = vadd.f32 %v1849_v44, %v1657_v47  ;;  %v1661_v59 = vadd.f32 %v1660_v49, %v5234_v13  ;;  %2134 = vmatprep.mubr.bf16.mxu0 %v5255_v18 }
 0x134   :  { %2307 = vmatprep.mubr.bf16.mxu1 %v5119_v32  ;;  %v1662_v29 = vpop.f32.mrf.mxu0 }
 0x135   :  { %v1855_v61 = vpop.f32.mrf.mxu1  ;;  %v5267_v63 = vadd.f32 %v1853_v56, %v1661_v59  ;;  %v1663_v43 = vadd.f32 %v1662_v29, %v5240_v15  ;;  %v4836_v59 = vld [vmem:[#allocation8 + $0x174] ss:$8 sps:$4 sm:$0xff]  }
 0x136   :  { %v1664_v0 = vpop.f32.mrf.mxu0  ;;  %3507 = vmatprep.subr.bf16.mxu1 %v4836_v59 }
 0x137   :  { %v1857_v11 = vpop.f32.mrf.mxu1  ;;  %v5272_v20 = vadd.f32 %v1855_v61, %v1663_v43  ;;  %v1665_v30 = vadd.f32 %v1664_v0, %v5234_v13  ;;  %v5290_v43 = vld [vmem:[#allocation3 + $0x220] ss:$24 sps:$4 sm:$0xff]  }
 0x138   :  { %v1666_v23 = vpop.f32.mrf.mxu0 }
 0x139   :  { %v1859_v8 = vpop.f32.mrf.mxu1  ;;  %v5277_v26 = vadd.f32 %v1857_v11, %v1665_v30  ;;  %v1667_v32 = vadd.f32 %v1666_v23, %v5240_v15  ;;  %v5295_v11 = vld [vmem:[#allocation3 + $0x254] ss:$24 sps:$4 sm:$0xff]  }
 0x13a   :  { %v1670_v28 = vpop.f32.mrf.mxu0  ;;  %2135 = vmatmul.mubr.bf16.gmra.mxu0 %v5270_v4 }
 0x13b   :  { %v1863_v37 = vpop.f32.mrf.mxu1  ;;  %2308 = vmatmul.mubr.bf16.gmra.mxu1 %v5123_v35  ;;  %v5282_v22 = vadd.f32 %v1859_v8, %v1667_v32  ;;  %v1671_v41 = vadd.f32 %v1670_v28, %v5234_v13  ;;  %2144 = vmatprep.mubr.bf16.mxu0 %v5275_v21 }
 0x13c   :  { %2315 = vmatprep.mubr.bf16.mxu1 %v5125_v38  ;;  %v1672_v44 = vpop.f32.mrf.mxu0 }
 0x13d   :  { %v1865_v47 = vpop.f32.mrf.mxu1  ;;  %v5287_v49 = vadd.f32 %v1863_v37, %v1671_v41  ;;  %v1673_v56 = vadd.f32 %v1672_v44, %v5240_v15 }
 0x13e   :  { %v1674_v29 = vpop.f32.mrf.mxu0 }
 0x13f   :  { %v1867_v61 = vpop.f32.mrf.mxu1  ;;  %v5292_v35 = vadd.f32 %v1865_v47, %v1673_v56  ;;  %v1675_v0 = vadd.f32 %v1674_v29, %v5234_v13 }
 0x140   :  { %v1676_v30 = vpop.f32.mrf.mxu0 }
 0x141   :  { %v1869_v38 = vpop.f32.mrf.mxu1  ;;  %v5297_v23 = vadd.f32 %v1867_v61, %v1675_v0  ;;  %v1677_v8 = vadd.f32 %v1676_v30, %v5240_v15  ;;  %v5310_v0 = vld [vmem:[#allocation3 + $0x250] ss:$24 sps:$4 sm:$0xff]  }
 0x142   :  { %v1680_v32 = vpop.f32.mrf.mxu0  ;;  %2145 = vmatmul.mubr.bf16.gmra.mxu0 %v5290_v43  ;;  %6101 = vst [vmem:[#allocation14_spill] sm:$0xff] %v5310_v0 }
 0x143   :  { %v1873_v28 = vpop.f32.mrf.mxu1  ;;  %2316 = vmatmul.mubr.bf16.gmra.mxu1 %v5129_v40  ;;  %v5302_v37 = vadd.f32 %v1869_v38, %v1677_v8  ;;  %v1681_v41 = vadd.f32 %v1680_v32, %v5234_v13  ;;  %2154 = vmatprep.mubr.bf16.mxu0 %v5295_v11  ;;  %v5315_v38 = vld [vmem:[#allocation3 + $0x284] ss:$24 sps:$4 sm:$0xff]  }
 0x144   :  { %2323 = vmatprep.mubr.bf16.mxu1 %v5131_v42  ;;  %v1682_v44 = vpop.f32.mrf.mxu0  ;;  %6102 = vst [vmem:[#allocation15_spill] sm:$0xff] %v5315_v38 }
 0x145   :  { %v1875_v47 = vpop.f32.mrf.mxu1  ;;  %v5307_v56 = vadd.f32 %v1873_v28, %v1681_v41  ;;  %v1683_v59 = vadd.f32 %v1682_v44, %v5240_v15 }
 0x146   :  { %v1684_v29 = vpop.f32.mrf.mxu0 }
 0x147   :  { %v1877_v61 = vpop.f32.mrf.mxu1  ;;  %v5312_v30 = vadd.f32 %v1875_v47, %v1683_v59  ;;  %v1685_v40 = vadd.f32 %v1684_v29, %v5234_v13 }
 0x148   :  { %v1686_v8 = vpop.f32.mrf.mxu0 }
 0x149   :  { %v1879_v32 = vpop.f32.mrf.mxu1  ;;  %v5317_v3 = vadd.f32 %v1877_v61, %v1685_v40  ;;  %v1687_v42 = vadd.f32 %v1686_v8, %v5240_v15 }
 0x14a   :  { %v1690_v28 = vpop.f32.mrf.mxu0  ;;  %2155 = vmatmul.mubr.bf16.gmra.mxu0 %v5310_v0 }
 0x14b   :  { %v1883_v41 = vpop.f32.mrf.mxu1  ;;  %2324 = vmatmul.mubr.bf16.gmra.mxu1 %v5135_v45  ;;  %v5322_v44 = vadd.f32 %v1879_v32, %v1687_v42  ;;  %v1691_v47 = vadd.f32 %v1690_v28, %v5234_v13  ;;  %2164 = vmatprep.mubr.bf16.mxu0 %v5315_v38  ;;  %v5335_v32 = vld [vmem:[#allocation3 + $0x2b4] ss:$24 sps:$4 sm:$0xff]  }
 0x14c   :  { %2331 = vmatprep.mubr.bf16.mxu1 %v5137_v48  ;;  %v1692_v59 = vpop.f32.mrf.mxu0  ;;  %6105 = vst [vmem:[#allocation18_spill] sm:$0xff] %v5335_v32 }
 0x14d   :  { %v1885_v29 = vpop.f32.mrf.mxu1  ;;  %v5327_v61 = vadd.f32 %v1883_v41, %v1691_v47  ;;  %v1693_v40 = vadd.f32 %v1692_v59, %v5240_v15 }
 0x14e   :  { %v1694_v8 = vpop.f32.mrf.mxu0 }
 0x14f   :  { %v1887_v57 = vpop.f32.mrf.mxu1  ;;  %v5332_v0 = vadd.f32 %v1885_v29, %v1693_v40  ;;  %v1695_v45 = vadd.f32 %v1694_v8, %v5234_v13 }
 0x150   :  { %v1696_v42 = vpop.f32.mrf.mxu0 }
 0x151   :  { %6104 = vst [vmem:[#allocation17_spill] sm:$0xff] %v5332_v0  ;;  %v1889_v28 = vpop.f32.mrf.mxu1  ;;  %v5337_v38 = vadd.f32 %v1887_v57, %v1695_v45  ;;  %v1697_v48 = vadd.f32 %v1696_v42, %v5240_v15  ;;  %v5350_v0 = vld [vmem:[#allocation3 + $0x2b0] ss:$24 sps:$4 sm:$0xff]  }
 0x152   :  { %v1700_v41 = vpop.f32.mrf.mxu0  ;;  %2165 = vmatmul.mubr.bf16.gmra.mxu0 %v5330_v10  ;;  %6107 = vst [vmem:[#allocation20_spill] sm:$0xff] %v5350_v0 }
 0x153   :  { %6106 = vst [vmem:[#allocation19_spill] sm:$0xff] %v5337_v38  ;;  %v1893_v47 = vpop.f32.mrf.mxu1  ;;  %2332 = vmatmul.mubr.bf16.gmra.mxu1 %v5141_v50  ;;  %v5342_v59 = vadd.f32 %v1889_v28, %v1697_v48  ;;  %v1701_v29 = vadd.f32 %v1700_v41, %v5234_v13  ;;  %2174 = vmatprep.mubr.bf16.mxu0 %v5335_v32  ;;  %v5355_v28 = vld [vmem:[#allocation3 + $0x2e4] ss:$24 sps:$4 sm:$0xff]  }
 0x154   :  { %2339 = vmatprep.mubr.bf16.mxu1 %v5143_v52  ;;  %v1702_v40 = vpop.f32.mrf.mxu0  ;;  %6109 = vst [vmem:[#allocation22_spill] sm:$0xff] %v5355_v28 }
 0x155   :  { %v1895_v8 = vpop.f32.mrf.mxu1  ;;  %v5347_v57 = vadd.f32 %v1893_v47, %v1701_v29  ;;  %v1703_v45 = vadd.f32 %v1702_v40, %v5240_v15 }
 0x156   :  { %v1704_v42 = vpop.f32.mrf.mxu0 }
 0x157   :  { %v1897_v38 = vpop.f32.mrf.mxu1  ;;  %v5352_v10 = vadd.f32 %v1895_v8, %v1703_v45  ;;  %v1705_v50 = vadd.f32 %v1704_v42, %v5234_v13 }
 0x158   :  { %v1706_v48 = vpop.f32.mrf.mxu0 }
 0x159   :  { %6108 = vst [vmem:[#allocation21_spill] sm:$0xff] %v5352_v10  ;;  %v1899_v41 = vpop.f32.mrf.mxu1  ;;  %v5357_v32 = vadd.f32 %v1897_v38, %v1705_v50  ;;  %v1707_v52 = vadd.f32 %v1706_v48, %v5240_v15  ;;  %v5370_v10 = vld [vmem:[#allocation3 + $0x2e0] ss:$24 sps:$4 sm:$0xff]  }
 0x15a   :  { %v1710_v47 = vpop.f32.mrf.mxu0  ;;  %2175 = vmatmul.mubr.bf16.gmra.mxu0 %v5350_v0  ;;  %6112 = vst [vmem:[#allocation25_spill] sm:$0xff] %v5370_v10 }
 0x15b   :  { %6110 = vst [vmem:[#allocation23_spill] sm:$0xff] %v5357_v32  ;;  %v1903_v29 = vpop.f32.mrf.mxu1  ;;  %2340 = vmatmul.mubr.bf16.gmra.mxu1 %v5147_v55  ;;  %v5362_v40 = vadd.f32 %v1899_v41, %v1707_v52  ;;  %v1711_v8 = vadd.f32 %v1710_v47, %v5234_v13  ;;  %2184 = vmatprep.mubr.bf16.mxu0 %v5355_v28 }
 0x15c   :  { %2347 = vmatprep.mubr.bf16.mxu1 %v5149_v58  ;;  %v1712_v45 = vpop.f32.mrf.mxu0 }
 0x15d   :  { %6111 = vst [vmem:[#allocation24_spill] sm:$0xff] %v5362_v40  ;;  %v1905_v42 = vpop.f32.mrf.mxu1  ;;  %v5367_v38 = vadd.f32 %v1903_v29, %v1711_v8  ;;  %v1713_v50 = vadd.f32 %v1712_v45, %v5240_v15  ;;  %v4892_v45 = vld [vmem:[#allocation3 + $0xc] ss:$24 sps:$4 sm:$0xff]  }
 0x15e   :  { %v1714_v48 = vpop.f32.mrf.mxu0 }
 0x15f   :  { %v1907_v32 = vpop.f32.mrf.mxu1  ;;  %v5372_v0 = vadd.f32 %v1905_v42, %v1713_v50  ;;  %v1715_v55 = vadd.f32 %v1714_v48, %v5234_v13 }
 0x160   :  { %v1716_v41 = vpop.f32.mrf.mxu0 }
 0x161   :  { %6113 = vst [vmem:[#allocation26_spill] sm:$0xff] %v5372_v0  ;;  %v1909_v52 = vpop.f32.mrf.mxu1  ;;  %v5375_v47 = vadd.f32 %v1907_v32, %v1715_v55  ;;  %v1717_v58 = vadd.f32 %v1716_v41, %v5240_v15  ;;  %v4851_v0 = vld [vmem:[#allocation8 + $0x164] ss:$8 sps:$4 sm:$0xff]  }
 0x162   :  { %v1720_v28 = vpop.f32.mrf.mxu0  ;;  %2185 = vmatmul.mubr.bf16.gmra.mxu0 %v5370_v10  ;;  %v4819_v10 = vld [vmem:[#allocation8 + $0x70] ss:$8 sps:$4 sm:$0xff]  }
 0x163   :  { %6114 = vst [vmem:[#allocation27_spill] sm:$0xff] %v5375_v47  ;;  %v1913_v40 = vpop.f32.mrf.mxu1  ;;  %2348 = vmatmul.mubr.bf16.gmra.mxu1 %v5153_v60  ;;  %v5380_v29 = vadd.f32 %v1909_v52, %v1717_v58  ;;  %v1721_v8 = vadd.f32 %v1720_v28, %v5234_v13  ;;  %2388 = vmatprep.mubr.bf16.mxu0 %v4892_v45  ;;  %v4834_v28 = vld [vmem:[#allocation8 + $0x170] ss:$8 sps:$4 sm:$0xff]   ;;  %v4824_v45 = vld [vmem:[#allocation8 + $0x64] ss:$8 sps:$4 sm:$0xff]  }
 0x164   :  { %2549 = vmatprep.mubr.bf16.mxu1 %v5155_v62  ;;  %v1722_v42 = vpop.f32.mrf.mxu0 }
 0x165   :  { %6115 = vst [vmem:[#allocation28_spill] sm:$0xff] %v5380_v29  ;;  %v1915_v50 = vpop.f32.mrf.mxu1  ;;  %v5384_v32 = vadd.f32 %v1913_v40, %v1721_v8  ;;  %v1723_v48 = vadd.f32 %v1722_v42, %v5240_v15 }
 0x166   :  { %v1724_v55 = vpop.f32.mrf.mxu0 }
 0x167   :  { %6116 = vst [vmem:[#allocation29_spill] sm:$0xff] %v5384_v32  ;;  %v1917_v41 = vpop.f32.mrf.mxu1  ;;  %v5387_v47 = vadd.f32 %v1915_v50, %v1723_v48  ;;  %v1725_v60 = vadd.f32 %v1724_v55, %v5234_v13  ;;  %v4893_v32 = vld [vmem:[#allocation3 + $0x8] ss:$24 sps:$4 sm:$0xff]   ;;  %v4894_v48 = vld [vmem:[#allocation3 + $0x3c] ss:$24 sps:$4 sm:$0xff]  }
 0x168   :  { %v1726_v52 = vpop.f32.mrf.mxu0 }
 0x169   :  { %6117 = vst [vmem:[#allocation30_spill] sm:$0xff] %v5387_v47  ;;  %v1919_v58 = vpop.f32.mrf.mxu1  ;;  %v5390_v29 = vadd.f32 %v1917_v41, %v1725_v60  ;;  %v1727_v62 = vadd.f32 %v1726_v52, %v5240_v15  ;;  %v4822_v60 = vld [vmem:[#allocation8 + $0x60] ss:$8 sps:$4 sm:$0xff]  }
 0x16a   :  { %v1730_v40 = vpop.f32.mrf.mxu0  ;;  %2389 = vmatmul.mubr.bf16.vlgmr.msra.gmra.mxu0 %v4893_v32  ;;  %v4849_v52 = vld [vmem:[#allocation8 + $0x160] ss:$8 sps:$4 sm:$0xff]  }
 0x16b   :  { %6118 = vst [vmem:[#allocation31_spill] sm:$0xff] %v5390_v29  ;;  %v1923_v8 = vpop.f32.mrf.mxu1  ;;  %2550 = vmatmul.mubr.bf16.vlgmr.msra.gmra.mxu1 %v5159_v1  ;;  %v5394_v42 = vadd.f32 %v1919_v58, %v1727_v62  ;;  %v1731_v50 = vadd.f32 %v1730_v40, %v5234_v13  ;;  %2396 = vmatprep.mubr.bf16.mxu0 %v4894_v48  ;;  %v4827_v1 = vld [vmem:[#allocation8 + $0x54] ss:$8 sps:$4 sm:$0xff]  }
 0x16c   :  { %2557 = vmatprep.mubr.bf16.mxu1 %v5161_v6  ;;  %v1732_v55 = vpop.f32.mrf.mxu0  ;;  %3315 = vmatpush1.bf16.msra.mxu0 %v4819_v10  ;;  %v4866_v58 = vld [vmem:[#allocation8 + $0x154] ss:$8 sps:$4 sm:$0xff]   ;;  %v4825_v10 = vld [vmem:[#allocation8 + $0x50] ss:$8 sps:$4 sm:$0xff]  }
 0x16d   :  { %6119 = vst [vmem:[#allocation32_spill] sm:$0xff] %v5394_v42  ;;  %v1925_v41 = vpop.f32.mrf.mxu1  ;;  %3508 = vmatpush1.bf16.msra.mxu1 %v4834_v28  ;;  %v5398_v29 = vadd.f32 %v1923_v8, %v1731_v50  ;;  %v1733_v32 = vadd.f32 %v1732_v55, %v5240_v15  ;;  %3316 = vmatprep.subr.bf16.mxu0 %v4824_v45  ;;  %v4864_v28 = vld [vmem:[#allocation8 + $0x150] ss:$8 sps:$4 sm:$0xff]   ;;  %v4830_v45 = vld [vmem:[#allocation8 + $0x44] ss:$8 sps:$4 sm:$0xff]  }
 0x16e   :  { %3509 = vmatprep.subr.bf16.mxu1 %v4851_v0  ;;  %v1734_v62 = vpop.f32.mrf.mxu0  ;;  %v4878_v0 = vld [vmem:[#allocation8 + $0x144] ss:$8 sps:$4 sm:$0xff]  }
 0x16f   :  { %6120 = vst [vmem:[#allocation33_spill] sm:$0xff] %v5398_v29  ;;  %v1927_v40 = vpop.f32.mrf.mxu1  ;;  %v5401_v42 = vadd.f32 %v1925_v41, %v1733_v32  ;;  %v1735_v6 = vadd.f32 %v1734_v62, %v5234_v13  ;;  %v4895_v41 = vld [vmem:[#allocation3 + $0x38] ss:$24 sps:$4 sm:$0xff]  }
 0x170   :  { %v1736_v48 = vpop.f32.mrf.mxu0  ;;  %3317 = vmatpush1.bf16.msra.mxu0 %v4822_v60 }
 0x171   :  { %v1929_v47 = vpop.f32.mrf.mxu1  ;;  %3510 = vmatpush1.bf16.msra.mxu1 %v4849_v52  ;;  %v5404_v8 = vadd.f32 %v1927_v40, %v1735_v6  ;;  %v1737_v50 = vadd.f32 %v1736_v48, %v5240_v15  ;;  %3318 = vmatprep.subr.bf16.mxu0 %v4827_v1  ;;  %v4896_v52 = vld [vmem:[#allocation3 + $0x6c] ss:$24 sps:$4 sm:$0xff]   ;;  %v4828_v1 = vld [vmem:[#allocation8 + $0x40] ss:$8 sps:$4 sm:$0xff]  }
 0x172   :  { %3511 = vmatprep.subr.bf16.mxu1 %v4866_v58  ;;  %v1740_v55 = vpop.f32.mrf.mxu0  ;;  %2397 = vmatmul.mubr.bf16.gmra.mxu0 %v4895_v41  ;;  %v4876_v58 = vld [vmem:[#allocation8 + $0x140] ss:$8 sps:$4 sm:$0xff]  }
 0x173   :  { %v1933_v29 = vpop.f32.mrf.mxu1  ;;  %2558 = vmatmul.mubr.bf16.gmra.mxu1 %v5167_v17  ;;  %v5408_v32 = vadd.f32 %v1929_v47, %v1737_v50  ;;  %v1741_v60 = vadd.f32 %v1740_v55, %v5234_v13  ;;  %2404 = vmatprep.mubr.bf16.mxu0 %v4896_v52  ;;  %v4833_v17 = vld [vmem:[#allocation8 + $0x34] ss:$8 sps:$4 sm:$0xff]  }
 0x174   :  { %2565 = vmatprep.mubr.bf16.mxu1 %v5169_v19  ;;  %v1742_v62 = vpop.f32.mrf.mxu0  ;;  %3319 = vmatpush1.bf16.msra.mxu0 %v4825_v10  ;;  %v4831_v10 = vld [vmem:[#allocation8 + $0x30] ss:$8 sps:$4 sm:$0xff]  }
 0x175   :  { %v1935_v40 = vpop.f32.mrf.mxu1  ;;  %3512 = vmatpush1.bf16.msra.mxu1 %v4864_v28  ;;  %v5412_v6 = vadd.f32 %v1933_v29, %v1741_v60  ;;  %v1743_v48 = vadd.f32 %v1742_v62, %v5240_v15  ;;  %3320 = vmatprep.subr.bf16.mxu0 %v4830_v45  ;;  %v4839_v60 = vld [vmem:[#allocation8 + $0x24] ss:$8 sps:$4 sm:$0xff]  }
 0x176   :  { %3513 = vmatprep.subr.bf16.mxu1 %v4878_v0  ;;  %v1744_v47 = vpop.f32.mrf.mxu0  ;;  %v4897_v0 = vld [vmem:[#allocation3 + $0x68] ss:$24 sps:$4 sm:$0xff]  }
 0x177   :  { %v1937_v50 = vpop.f32.mrf.mxu1  ;;  %v5415_v55 = vadd.f32 %v1935_v40, %v1743_v48  ;;  %v1745_v41 = vadd.f32 %v1744_v47, %v5234_v13  ;;  %v4898_v47 = vld [vmem:[#allocation3 + $0x9c] ss:$24 sps:$4 sm:$0xff]  }
 0x178   :  { %v1746_v19 = vpop.f32.mrf.mxu0  ;;  %3321 = vmatpush1.bf16.msra.mxu0 %v4828_v1 }
 0x179   :  { %v1939_v52 = vpop.f32.mrf.mxu1  ;;  %3514 = vmatpush1.bf16.msra.mxu1 %v4876_v58  ;;  %v5418_v28 = vadd.f32 %v1937_v50, %v1745_v41  ;;  %v1747_v29 = vadd.f32 %v1746_v19, %v5240_v15  ;;  %3322 = vmatprep.subr.bf16.mxu0 %v4833_v17  ;;  %v4837_v50 = vld [vmem:[#allocation8 + $0x20] ss:$8 sps:$4 sm:$0xff]   ;;  %v4842_v19 = vld [vmem:[#allocation8 + $0x14] ss:$8 sps:$4 sm:$0xff]  }
 0x17a   :  { %v1750_v45 = vpop.f32.mrf.mxu0  ;;  %2405 = vmatmul.mubr.bf16.gmra.mxu0 %v4897_v0  ;;  %v4879_v0 = vld [vmem:[#allocation8 + $0x130] ss:$8 sps:$4 sm:$0xff]  }
 0x17b   :  { %6121 = vst [vmem:[#allocation34_spill] sm:$0xff] %v5418_v28  ;;  %v1943_v62 = vpop.f32.mrf.mxu1  ;;  %2566 = vmatmul.mubr.bf16.gmra.mxu1 %v5175_v31  ;;  %v5422_v40 = vadd.f32 %v1939_v52, %v1747_v29  ;;  %v1751_v48 = vadd.f32 %v1750_v45, %v5234_v13  ;;  %2412 = vmatprep.mubr.bf16.mxu0 %v4898_v47  ;;  %v4881_v31 = vld [vmem:[#allocation8 + $0x134] ss:$8 sps:$4 sm:$0xff]   ;;  %v4899_v28 = vld [vmem:[#allocation3 + $0x98] ss:$24 sps:$4 sm:$0xff]  }
 0x17c   :  { %2573 = vmatprep.mubr.bf16.mxu1 %v5177_v34  ;;  %v1752_v1 = vpop.f32.mrf.mxu0  ;;  %3323 = vmatpush1.bf16.msra.mxu0 %v4831_v10  ;;  %v4840_v10 = vld [vmem:[#allocation8 + $0x10] ss:$8 sps:$4 sm:$0xff]  }
 0x17d   :  { %6122 = vst [vmem:[#allocation35_spill] sm:$0xff] %v5422_v40  ;;  %v1945_v58 = vpop.f32.mrf.mxu1  ;;  %v5426_v17 = vadd.f32 %v1943_v62, %v1751_v48  ;;  %v1753_v41 = vadd.f32 %v1752_v1, %v5240_v15  ;;  %3324 = vmatprep.subr.bf16.mxu0 %v4839_v60  ;;  %3515 = vmatprep.subr.bf16.mxu1 %v4881_v31  ;;  %v4845_v60 = vld [vmem:[#allocation8 + $0x4] ss:$8 sps:$4 sm:$0xff]  }
 0x17e   :  { %v1754_v52 = vpop.f32.mrf.mxu0  ;;  %3516 = vmatpush1.bf16.msra.mxu1 %v4879_v0  ;;  %v4900_v31 = vld [vmem:[#allocation3 + $0xcc] ss:$24 sps:$4 sm:$0xff]  }
 0x17f   :  { %6123 = vst [vmem:[#allocation36_spill] sm:$0xff] %v5426_v17  ;;  %v1947_v29 = vpop.f32.mrf.mxu1  ;;  %v5429_v40 = vadd.f32 %v1945_v58, %v1753_v41  ;;  %v1755_v45 = vadd.f32 %v1754_v52, %v5234_v13  ;;  %v4843_v52 = vld [vmem:[#allocation8] ss:$8 sps:$4 sm:$0xff]  }
 0x180   :  { %v1756_v34 = vpop.f32.mrf.mxu0  ;;  %3325 = vmatpush1.bf16.msra.mxu0 %v4837_v50 }
 0x181   :  { %v1949_v47 = vpop.f32.mrf.mxu1  ;;  %v5432_v62 = vadd.f32 %v1947_v29, %v1755_v45  ;;  %v1757_v48 = vadd.f32 %v1756_v34, %v5240_v15  ;;  %3326 = vmatprep.subr.bf16.mxu0 %v4842_v19 }
 0x182   :  { %v1760_v1 = vpop.f32.mrf.mxu0  ;;  %2413 = vmatmul.mubr.bf16.gmra.mxu0 %v4899_v28  ;;  %v4848_v28 = vld [vmem:[#allocation8 + $0xf4] ss:$8 sps:$4 sm:$0xff]  }
 0x183   :  { %v1953_v17 = vpop.f32.mrf.mxu1  ;;  %2574 = vmatmul.mubr.bf16.gmra.mxu1 %v5183_v51  ;;  %v5436_v58 = vadd.f32 %v1949_v47, %v1757_v48  ;;  %v1761_v41 = vadd.f32 %v1760_v1, %v5234_v13  ;;  %2420 = vmatprep.mubr.bf16.mxu0 %v4900_v31 }
 0x184   :  { %2581 = vmatprep.mubr.bf16.mxu1 %v5185_v53  ;;  %v1762_v50 = vpop.f32.mrf.mxu0  ;;  %3327 = vmatpush1.bf16.msra.mxu0 %v4840_v10  ;;  %v4846_v53 = vld [vmem:[#allocation8 + $0xf0] ss:$8 sps:$4 sm:$0xff]  }
 0x185   :  { %v1955_v0 = vpop.f32.mrf.mxu1  ;;  %v5440_v19 = vadd.f32 %v1953_v17, %v1761_v41  ;;  %v1763_v29 = vadd.f32 %v1762_v50, %v5240_v15  ;;  %3328 = vmatprep.subr.bf16.mxu0 %v4845_v60  ;;  %v4854_v17 = vld [vmem:[#allocation8 + $0xe4] ss:$8 sps:$4 sm:$0xff]   ;;  %v4901_v60 = vld [vmem:[#allocation3 + $0xc8] ss:$24 sps:$4 sm:$0xff]  }
 0x186   :  { %v1764_v45 = vpop.f32.mrf.mxu0 }
 0x187   :  { %v1957_v51 = vpop.f32.mrf.mxu1  ;;  %v5443_v34 = vadd.f32 %v1955_v0, %v1763_v29  ;;  %v1765_v47 = vadd.f32 %v1764_v45, %v5234_v13  ;;  %v4902_v45 = vld [vmem:[#allocation3 + $0xfc] ss:$24 sps:$4 sm:$0xff]  }
 0x188   :  { %v1766_v48 = vpop.f32.mrf.mxu0  ;;  %3329 = vmatpush1.bf16.msra.mxu0 %v4843_v52 }
 0x189   :  { %6124 = vst [vmem:[#allocation37_spill] sm:$0xff] %v5443_v34  ;;  %v1959_v1 = vpop.f32.mrf.mxu1  ;;  %v5446_v31 = vadd.f32 %v1957_v51, %v1765_v47  ;;  %v1767_v10 = vadd.f32 %v1766_v48, %v5240_v15  ;;  %3330 = vmatprep.subr.bf16.mxu0 %v4848_v28  ;;  %v4852_v47 = vld [vmem:[#allocation8 + $0xe0] ss:$8 sps:$4 sm:$0xff]   ;;  %v4903_v34 = vld [vmem:[#allocation3 + $0xf8] ss:$24 sps:$4 sm:$0xff]  }
 0x18a   :  { %v1770_v41 = vpop.f32.mrf.mxu0  ;;  %2421 = vmatmul.mubr.bf16.gmra.mxu0 %v4901_v60  ;;  %v4857_v60 = vld [vmem:[#allocation8 + $0xd4] ss:$8 sps:$4 sm:$0xff]  }
 0x18b   :  { %6125 = vst [vmem:[#allocation38_spill] sm:$0xff] %v5446_v31  ;;  %v1963_v50 = vpop.f32.mrf.mxu1  ;;  %2582 = vmatmul.mubr.bf16.gmra.mxu1 %v5191_v2  ;;  %v5450_v0 = vadd.f32 %v1959_v1, %v1767_v10  ;;  %v1771_v29 = vadd.f32 %v1770_v41, %v5234_v13  ;;  %2428 = vmatprep.mubr.bf16.mxu0 %v4902_v45  ;;  %v4882_v31 = vld [vmem:[#allocation8 + $0x120] ss:$8 sps:$4 sm:$0xff]   ;;  %v4884_v2 = vld [vmem:[#allocation8 + $0x124] ss:$8 sps:$4 sm:$0xff]  }
 0x18c   :  { %2589 = vmatprep.mubr.bf16.mxu1 %v5193_v5  ;;  %v1772_v52 = vpop.f32.mrf.mxu0  ;;  %3331 = vmatpush2.bf16.msra.mxu0 %v4846_v53  ;;  %v4855_v53 = vld [vmem:[#allocation8 + $0xd0] ss:$8 sps:$4 sm:$0xff]  }
 0x18d   :  { %6126 = vst [vmem:[#allocation39_spill] sm:$0xff] %v5450_v0  ;;  %v1965_v51 = vpop.f32.mrf.mxu1  ;;  %v5454_v28 = vadd.f32 %v1963_v50, %v1771_v29  ;;  %v1773_v48 = vadd.f32 %v1772_v52, %v5240_v15  ;;  %3332 = vmatprep.subr.bf16.mxu0 %v4854_v17  ;;  %3517 = vmatprep.subr.bf16.mxu1 %v4884_v2  ;;  %v4860_v17 = vld [vmem:[#allocation8 + $0xc4] ss:$8 sps:$4 sm:$0xff]  }
 0x18e   :  { %v1774_v1 = vpop.f32.mrf.mxu0  ;;  %3518 = vmatpush1.bf16.msra.mxu1 %v4882_v31  ;;  %v4904_v2 = vld [vmem:[#allocation3 + $0x12c] ss:$24 sps:$4 sm:$0xff]  }
 0x18f   :  { %6127 = vst [vmem:[#allocation40_spill] sm:$0xff] %v5454_v28  ;;  %v1967_v10 = vpop.f32.mrf.mxu1  ;;  %v5457_v0 = vadd.f32 %v1965_v51, %v1773_v48  ;;  %v1775_v41 = vadd.f32 %v1774_v1, %v5234_v13  ;;  %v4858_v1 = vld [vmem:[#allocation8 + $0xc0] ss:$8 sps:$4 sm:$0xff]  }
 0x190   :  { %v1776_v5 = vpop.f32.mrf.mxu0  ;;  %3333 = vmatpush2.bf16.msra.mxu0 %v4852_v47 }
 0x191   :  { %v1969_v45 = vpop.f32.mrf.mxu1  ;;  %v5460_v50 = vadd.f32 %v1967_v10, %v1775_v41  ;;  %v1777_v29 = vadd.f32 %v1776_v5, %v5240_v15  ;;  %3334 = vmatprep.subr.bf16.mxu0 %v4857_v60 }
 0x192   :  { %v1780_v52 = vpop.f32.mrf.mxu0  ;;  %2429 = vmatmul.mubr.bf16.gmra.mxu0 %v4903_v34  ;;  %v4863_v34 = vld [vmem:[#allocation8 + $0xb4] ss:$8 sps:$4 sm:$0xff]  }
 0x193   :  { %v1973_v28 = vpop.f32.mrf.mxu1  ;;  %2590 = vmatmul.mubr.bf16.gmra.mxu1 %v5199_v33  ;;  %v5464_v51 = vadd.f32 %v1969_v45, %v1777_v29  ;;  %v1781_v48 = vadd.f32 %v1780_v52, %v5234_v13  ;;  %2436 = vmatprep.mubr.bf16.mxu0 %v4904_v2 }
 0x194   :  { %2597 = vmatprep.mubr.bf16.mxu1 %v5201_v36  ;;  %v1782_v31 = vpop.f32.mrf.mxu0  ;;  %3335 = vmatpush2.bf16.msra.mxu0 %v4855_v53  ;;  %v4861_v36 = vld [vmem:[#allocation8 + $0xb0] ss:$8 sps:$4 sm:$0xff]  }
 0x195   :  { %v1975_v47 = vpop.f32.mrf.mxu1  ;;  %v5468_v60 = vadd.f32 %v1973_v28, %v1781_v48  ;;  %v1783_v10 = vadd.f32 %v1782_v31, %v5240_v15  ;;  %3336 = vmatprep.subr.bf16.mxu0 %v4860_v17  ;;  %v4869_v28 = vld [vmem:[#allocation8 + $0xa4] ss:$8 sps:$4 sm:$0xff]   ;;  %v4905_v17 = vld [vmem:[#allocation3 + $0x128] ss:$24 sps:$4 sm:$0xff]  }
 0x196   :  { %v1784_v41 = vpop.f32.mrf.mxu0 }
 0x197   :  { %v1977_v33 = vpop.f32.mrf.mxu1  ;;  %v5471_v5 = vadd.f32 %v1975_v47, %v1783_v10  ;;  %v1785_v45 = vadd.f32 %v1784_v41, %v5234_v13  ;;  %v4906_v41 = vld [vmem:[#allocation3 + $0x15c] ss:$24 sps:$4 sm:$0xff]  }
 0x198   :  { %v1786_v29 = vpop.f32.mrf.mxu0  ;;  %3337 = vmatpush2.bf16.msra.mxu0 %v4858_v1 }
 0x199   :  { %6128 = vst [vmem:[#allocation41_spill] sm:$0xff] %v5471_v5  ;;  %v1979_v52 = vpop.f32.mrf.mxu1  ;;  %v5474_v2 = vadd.f32 %v1977_v33, %v1785_v45  ;;  %v1787_v53 = vadd.f32 %v1786_v29, %v5240_v15  ;;  %3338 = vmatprep.subr.bf16.mxu0 %v4863_v34  ;;  %v4867_v45 = vld [vmem:[#allocation8 + $0xa0] ss:$8 sps:$4 sm:$0xff]   ;;  %v4907_v5 = vld [vmem:[#allocation3 + $0x158] ss:$24 sps:$4 sm:$0xff]  }
 0x19a   :  { %v1790_v48 = vpop.f32.mrf.mxu0  ;;  %2437 = vmatmul.mubr.bf16.gmra.mxu0 %v4905_v17  ;;  %v4872_v17 = vld [vmem:[#allocation8 + $0x94] ss:$8 sps:$4 sm:$0xff]  }
 0x19b   :  { %6129 = vst [vmem:[#allocation42_spill] sm:$0xff] %v5474_v2  ;;  %v1983_v31 = vpop.f32.mrf.mxu1  ;;  %2598 = vmatmul.mubr.bf16.gmra.mxu1 %v5207_v7  ;;  %v5478_v47 = vadd.f32 %v1979_v52, %v1787_v53  ;;  %v1791_v10 = vadd.f32 %v1790_v48, %v5234_v13  ;;  %2444 = vmatprep.mubr.bf16.mxu0 %v4906_v41  ;;  %v4885_v2 = vld [vmem:[#allocation8 + $0x110] ss:$8 sps:$4 sm:$0xff]   ;;  %v4887_v7 = vld [vmem:[#allocation8 + $0x114] ss:$8 sps:$4 sm:$0xff]  }
 0x19c   :  { %2605 = vmatprep.mubr.bf16.mxu1 %v5209_v9  ;;  %v1792_v1 = vpop.f32.mrf.mxu0  ;;  %3339 = vmatpush2.bf16.msra.mxu0 %v4861_v36  ;;  %v4870_v36 = vld [vmem:[#allocation8 + $0x90] ss:$8 sps:$4 sm:$0xff]  }
 0x19d   :  { %6130 = vst [vmem:[#allocation43_spill] sm:$0xff] %v5478_v47  ;;  %v1985_v33 = vpop.f32.mrf.mxu1  ;;  %v5482_v34 = vadd.f32 %v1983_v31, %v1791_v10  ;;  %v1793_v29 = vadd.f32 %v1792_v1, %v5240_v15  ;;  %3340 = vmatprep.subr.bf16.mxu0 %v4869_v28  ;;  %3519 = vmatprep.subr.bf16.mxu1 %v4887_v7  ;;  %v4875_v28 = vld [vmem:[#allocation8 + $0x84] ss:$8 sps:$4 sm:$0xff]  }
 0x19e   :  { %v1794_v52 = vpop.f32.mrf.mxu0  ;;  %3520 = vmatpush1.bf16.msra.mxu1 %v4885_v2  ;;  %v4908_v7 = vld [vmem:[#allocation3 + $0x18c] ss:$24 sps:$4 sm:$0xff]  }
 0x19f   :  { %6131 = vst [vmem:[#allocation44_spill] sm:$0xff] %v5482_v34  ;;  %v1987_v53 = vpop.f32.mrf.mxu1  ;;  %v5485_v47 = vadd.f32 %v1985_v33, %v1793_v29  ;;  %v1795_v48 = vadd.f32 %v1794_v52, %v5234_v13  ;;  %v4873_v52 = vld [vmem:[#allocation8 + $0x80] ss:$8 sps:$4 sm:$0xff]  }
 0x1a0   :  { %v1796_v9 = vpop.f32.mrf.mxu0  ;;  %3341 = vmatpush2.bf16.msra.mxu0 %v4867_v45 }
 0x1a1   :  { %v1989_v41 = vpop.f32.mrf.mxu1  ;;  %v5488_v31 = vadd.f32 %v1987_v53, %v1795_v48  ;;  %v1797_v10 = vadd.f32 %v1796_v9, %v5240_v15  ;;  %3342 = vmatprep.subr.bf16.mxu0 %v4872_v17 }
 0x1a2   :  { %v1800_v1 = vpop.f32.mrf.mxu0  ;;  %2445 = vmatmul.mubr.bf16.gmra.mxu0 %v4907_v5 }
 0x1a3   :  { %v1993_v34 = vpop.f32.mrf.mxu1  ;;  %2606 = vmatmul.mubr.bf16.gmra.mxu1 %v5215_v46  ;;  %v5492_v33 = vadd.f32 %v1989_v41, %v1797_v10  ;;  %v1801_v29 = vadd.f32 %v1800_v1, %v5234_v13  ;;  %2452 = vmatprep.mubr.bf16.mxu0 %v4908_v7 }
 0x1a4   :  { %2613 = vmatprep.mubr.bf16.mxu1 %v5217_v54  ;;  %v1802_v2 = vpop.f32.mrf.mxu0  ;;  %3343 = vmatpush2.bf16.msra.mxu0 %v4870_v36 }
 0x1a5   :  { %v1995_v45 = vpop.f32.mrf.mxu1  ;;  %v5496_v17 = vadd.f32 %v1993_v34, %v1801_v29  ;;  %v1803_v53 = vadd.f32 %v1802_v2, %v5240_v15  ;;  %3344 = vmatprep.subr.bf16.mxu0 %v4875_v28  ;;  %v4909_v34 = vld [vmem:[#allocation3 + $0x188] ss:$24 sps:$4 sm:$0xff]   ;;  %v4910_v29 = vld [vmem:[#allocation3 + $0x1bc] ss:$24 sps:$4 sm:$0xff]   ;;  %v4890_v2 = vld [vmem:[#allocation8 + $0x104] ss:$8 sps:$4 sm:$0xff]  }
 0x1a6   :  { %v1804_v5 = vpop.f32.mrf.mxu0  ;;  %3521 = vmatprep.subr.bf16.mxu1 %v4890_v2  ;;  %v4912_v2 = vld [vmem:[#allocation3 + $0x1ec] ss:$24 sps:$4 sm:$0xff]  }
 0x1a7   :  { %v1997_v48 = vpop.f32.mrf.mxu1  ;;  %v5499_v46 = vadd.f32 %v1995_v45, %v1803_v53  ;;  %v1805_v9 = vadd.f32 %v1804_v5, %v5234_v13  ;;  %v4888_v13 = vld [vmem:[#allocation8 + $0x100] ss:$8 sps:$4 sm:$0xff]  }
 0x1a8   :  { %v1806_v41 = vpop.f32.mrf.mxu0  ;;  %3345 = vmatpush2.bf16.msra.mxu0 %v4873_v52  ;;  %3522 = vmatpush1.bf16.msra.mxu1 %v4888_v13 }
 0x1a9   :  { %v1999_v10 = vpop.f32.mrf.mxu1  ;;  %v5502_v1 = vadd.f32 %v1997_v48, %v1805_v9  ;;  %v1807_v54 = vadd.f32 %v1806_v41, %v5240_v15 }
 0x1aa   :  { %v2036_v36 = vpop.f32.mrf.mxu0  ;;  %2453 = vmatmul.mubr.bf16.gmra.mxu0 %v4909_v34 }
 0x1ab   :  { %v4150_v7 = vpop.f32.mrf.mxu1  ;;  %2614 = vmatmul.mubr.bf16.gmra.mxu1 %v5230_v12  ;;  %v5506_v28 = vadd.f32 %v1999_v10, %v1807_v54  ;;  %2460 = vmatprep.mubr.bf16.mxu0 %v4910_v29  ;;  %v2037_v53 = vadd.f32 %v2036_v36, %v5247_v24  ;;  %v4911_v36 = vld [vmem:[#allocation3 + $0x1b8] ss:$24 sps:$4 sm:$0xff]  }
 0x1ac   :  { %2621 = vmatprep.mubr.bf16.mxu1 %v5236_v14  ;;  %v2038_v45 = vpop.f32.mrf.mxu0 }
 0x1ad   :  { %6132 = vst [vmem:[#allocation45_spill] sm:$0xff] %v5506_v28  ;;  %v4151_v52 = vpop.f32.mrf.mxu1  ;;  %v2039_v12 = vadd.f32 %v2038_v45, %v5252_v39  ;;  %v2678_v54 = vmax.f32 %v2037_v53, 0.0 }
 0x1ae   :  { %v5510_v5 = vadd.f32 %v4151_v52, %v4150_v7  ;;  %v2040_v15 = vpop.f32.mrf.mxu0 }
 0x1af   :  { %v4153_v48 = vpop.f32.mrf.mxu1  ;;  %v2041_v9 = vadd.f32 %v2040_v15, %v5257_v27  ;;  %v2679_v7 = vmax.f32 %v2039_v12, 0.0 }
 0x1b0   :  { %v2042_v41 = vpop.f32.mrf.mxu0 }
 0x1b1   :  { %v4154_v10 = vpop.f32.mrf.mxu1  ;;  %v2681_v14 = vmax.f32 %v2041_v9, 0.0  ;;  %v2043_v34 = vadd.f32 %v2042_v41, %v5262_v25 }
 0x1b2   :  { %v5515_v29 = vadd.f32 %v4154_v10, %v4153_v48  ;;  %v2046_v28 = vpop.f32.mrf.mxu0  ;;  %2461 = vmatmul.mubr.bf16.gmra.mxu0 %v4911_v36 }
 0x1b3   :  { %v4156_v24 = vpop.f32.mrf.mxu1  ;;  %2622 = vmatmul.mubr.bf16.gmra.mxu1 %v5250_v16  ;;  %v5518_v13 = vpack.c.bf16 %v2681_v14, %v2678_v54  ;;  %v2682_v39 = vmax.f32 %v2043_v34, 0.0  ;;  %2468 = vmatprep.mubr.bf16.mxu0 %v4912_v2  ;;  %v2047_v25 = vadd.f32 %v2046_v28, %v5267_v63  ;;  %v4913_v28 = vld [vmem:[#allocation3 + $0x1e8] ss:$24 sps:$4 sm:$0xff]  }
 0x1b4   :  { %2629 = vmatprep.mubr.bf16.mxu1 %v5255_v18  ;;  %v2048_v27 = vpop.f32.mrf.mxu0 }
 0x1b5   :  { %v4157_v45 = vpop.f32.mrf.mxu1  ;;  %v5524_v53 = vpack.c.bf16 %v2682_v39, %v2679_v7  ;;  %v2049_v16 = vadd.f32 %v2048_v27, %v5272_v20  ;;  %v2684_v10 = vmax.f32 %v2047_v25, 0.0  ;;  %v4914_v7 = vld [vmem:[#allocation3 + $0x21c] ss:$24 sps:$4 sm:$0xff]  }
 0x1b6   :  { %v5522_v52 = vadd.f32 %v4157_v45, %v4156_v24  ;;  %v2050_v15 = vpop.f32.mrf.mxu0 }
 0x1b7   :  { %v4159_v48 = vpop.f32.mrf.mxu1  ;;  %v2051_v12 = vadd.f32 %v2050_v15, %v5277_v26  ;;  %v2685_v24 = vmax.f32 %v2049_v16, 0.0 }
 0x1b8   :  { %v2052_v9 = vpop.f32.mrf.mxu0 }
 0x1b9   :  { %v4160_v41 = vpop.f32.mrf.mxu1  ;;  %v2687_v54 = vmax.f32 %v2051_v12, 0.0  ;;  %v2053_v18 = vadd.f32 %v2052_v9, %v5282_v22 }
 0x1ba   :  { %v5529_v14 = vadd.f32 %v4160_v41, %v4159_v48  ;;  %v2056_v34 = vpop.f32.mrf.mxu0  ;;  %2469 = vmatmul.mubr.bf16.gmra.mxu0 %v4913_v28 }
 0x1bb   :  { %v4162_v63 = vpop.f32.mrf.mxu1  ;;  %2630 = vmatmul.mubr.bf16.gmra.mxu1 %v5270_v4  ;;  %v5532_v36 = vpack.c.bf16 %v2687_v54, %v2684_v10  ;;  %v2688_v20 = vmax.f32 %v2053_v18, 0.0  ;;  %2476 = vmatprep.mubr.bf16.mxu0 %v4914_v7  ;;  %v2057_v22 = vadd.f32 %v2056_v34, %v5287_v49  ;;  %v4915_v54 = vld [vmem:[#allocation3 + $0x218] ss:$24 sps:$4 sm:$0xff]  }
 0x1bc   :  { %2637 = vmatprep.mubr.bf16.mxu1 %v5275_v21  ;;  %v2058_v26 = vpop.f32.mrf.mxu0 }
 0x1bd   :  { %v4163_v39 = vpop.f32.mrf.mxu1  ;;  %v5538_v27 = vpack.c.bf16 %v2688_v20, %v2685_v24  ;;  %v2059_v4 = vadd.f32 %v2058_v26, %v5292_v35  ;;  %v2690_v12 = vmax.f32 %v2057_v22, 0.0 }
 0x1be   :  { %v5536_v2 = vadd.f32 %v4163_v39, %v4162_v63  ;;  %v2060_v45 = vpop.f32.mrf.mxu0  ;;  %v4916_v63 = vld [vmem:[#allocation3 + $0x24c] ss:$24 sps:$4 sm:$0xff]  }
 0x1bf   :  { %v4165_v25 = vpop.f32.mrf.mxu1  ;;  %v2061_v15 = vadd.f32 %v2060_v45, %v5297_v23  ;;  %v2691_v18 = vmax.f32 %v2059_v4, 0.0 }
 0x1c0   :  { %v2062_v48 = vpop.f32.mrf.mxu0 }
 0x1c1   :  { %v4166_v16 = vpop.f32.mrf.mxu1  ;;  %v2693_v9 = vmax.f32 %v2061_v15, 0.0  ;;  %v2063_v21 = vadd.f32 %v2062_v48, %v5302_v37 }
 0x1c2   :  { %v5543_v41 = vadd.f32 %v4166_v16, %v4165_v25  ;;  %v2066_v10 = vpop.f32.mrf.mxu0  ;;  %2477 = vmatmul.mubr.bf16.gmra.mxu0 %v4915_v54  ;;  %v4917_v16 = vld [vmem:[#allocation3 + $0x248] ss:$24 sps:$4 sm:$0xff]  }
 0x1c3   :  { %v4168_v49 = vpop.f32.mrf.mxu1  ;;  %2638 = vmatmul.mubr.bf16.gmra.mxu1 %v5290_v43  ;;  %v5546_v34 = vpack.c.bf16 %v2693_v9, %v2690_v12  ;;  %v2694_v35 = vmax.f32 %v2063_v21, 0.0  ;;  %2484 = vmatprep.mubr.bf16.mxu0 %v4916_v63  ;;  %v2067_v37 = vadd.f32 %v2066_v10, %v5307_v56  ;;  %v6133_v12 = vld [vmem:[#allocation14_spill] sm:$0xff]  ;;  %v4918_v10 = vld [vmem:[#allocation3 + $0x27c] ss:$24 sps:$4 sm:$0xff]  }
 0x1c4   :  { %2645 = vmatprep.mubr.bf16.mxu1 %v5295_v11  ;;  %v2068_v23 = vpop.f32.mrf.mxu0 }
 0x1c5   :  { %v4169_v28 = vpop.f32.mrf.mxu1  ;;  %v5552_v20 = vpack.c.bf16 %v2694_v35, %v2691_v18  ;;  %v2069_v43 = vadd.f32 %v2068_v23, %v5312_v30  ;;  %v2696_v25 = vmax.f32 %v2067_v37, 0.0 }
 0x1c6   :  { %v5550_v24 = vadd.f32 %v4169_v28, %v4168_v49  ;;  %v2070_v7 = vpop.f32.mrf.mxu0  ;;  %v6135_v28 = vld [vmem:[#allocation17_spill] sm:$0xff] }
 0x1c7   :  { %v4171_v26 = vpop.f32.mrf.mxu1  ;;  %v2071_v39 = vadd.f32 %v2070_v7, %v5317_v3  ;;  %v2697_v9 = vmax.f32 %v2069_v43, 0.0  ;;  %v6134_v3 = vld [vmem:[#allocation15_spill] sm:$0xff] }
 0x1c8   :  { %v2072_v22 = vpop.f32.mrf.mxu0  ;;  %v6136_v7 = vld [vmem:[#allocation19_spill] sm:$0xff] }
 0x1c9   :  { %v4172_v45 = vpop.f32.mrf.mxu1  ;;  %v2699_v4 = vmax.f32 %v2071_v39, 0.0  ;;  %v2073_v11 = vadd.f32 %v2072_v22, %v5322_v44 }
 0x1ca   :  { %v5557_v15 = vadd.f32 %v4172_v45, %v4171_v26  ;;  %v2076_v48 = vpop.f32.mrf.mxu0  ;;  %2485 = vmatmul.mubr.bf16.gmra.mxu0 %v4917_v16 }
 0x1cb   :  { %v4174_v56 = vpop.f32.mrf.mxu1  ;;  %2646 = vmatmul.mubr.bf16.gmra.mxu1 %v6133_v12  ;;  %v5560_v21 = vpack.c.bf16 %v2699_v4, %v2696_v25  ;;  %v2700_v30 = vmax.f32 %v2073_v11, 0.0  ;;  %2492 = vmatprep.mubr.bf16.mxu0 %v4918_v10  ;;  %v2077_v44 = vadd.f32 %v2076_v48, %v5327_v61  ;;  %v4919_v11 = vld [vmem:[#allocation3 + $0x278] ss:$24 sps:$4 sm:$0xff]  }
 0x1cc   :  { %2653 = vmatprep.mubr.bf16.mxu1 %v6134_v3  ;;  %v2078_v49 = vpop.f32.mrf.mxu0  ;;  %v6138_v48 = vld [vmem:[#allocation16_spill] sm:$0xff] }
 0x1cd   :  { %v4175_v54 = vpop.f32.mrf.mxu1  ;;  %v5566_v35 = vpack.c.bf16 %v2700_v30, %v2697_v9  ;;  %v2079_v37 = vadd.f32 %v2078_v49, %v6135_v28  ;;  %v2702_v22 = vmax.f32 %v2077_v44, 0.0  ;;  %v4920_v9 = vld [vmem:[#allocation3 + $0x2ac] ss:$24 sps:$4 sm:$0xff]  }
 0x1ce   :  { %v5564_v18 = vadd.f32 %v4175_v54, %v4174_v56  ;;  %v2080_v63 = vpop.f32.mrf.mxu0  ;;  %v6139_v30 = vld [vmem:[#allocation18_spill] sm:$0xff]  ;;  %v6142_v28 = vld [vmem:[#allocation21_spill] sm:$0xff] }
 0x1cf   :  { %v5568_v23 = vpop.f32.mrf.mxu1  ;;  %v2081_v26 = vadd.f32 %v2080_v63, %v6136_v7  ;;  %v2703_v56 = vmax.f32 %v2079_v37, 0.0  ;;  %v6143_v7 = vld [vmem:[#allocation23_spill] sm:$0xff] }
 0x1d0   :  { %v2082_v43 = vpop.f32.mrf.mxu0 }
 0x1d1   :  { %v5572_v39 = vpop.f32.mrf.mxu1  ;;  %v2705_v45 = vmax.f32 %v2081_v26, 0.0  ;;  %v2083_v25 = vadd.f32 %v2082_v43, %v5342_v59 }
 0x1d2   :  { %6137 = vst [vmem:[#allocation14_spill] sm:$0xff] %v5572_v39  ;;  %v2086_v4 = vpop.f32.mrf.mxu0  ;;  %2493 = vmatmul.mubr.bf16.gmra.mxu0 %v4919_v11  ;;  %v6145_v11 = vld [vmem:[#allocation24_spill] sm:$0xff] }
 0x1d3   :  { %v4180_v61 = vpop.f32.mrf.mxu1  ;;  %2654 = vmatmul.mubr.bf16.gmra.mxu1 %v6138_v48  ;;  %v5576_v16 = vpack.c.bf16 %v2705_v45, %v2702_v22  ;;  %v2706_v12 = vmax.f32 %v2083_v25, 0.0  ;;  %2500 = vmatprep.mubr.bf16.mxu0 %v4920_v9  ;;  %v2087_v49 = vadd.f32 %v2086_v4, %v5347_v57  ;;  %v4921_v4 = vld [vmem:[#allocation3 + $0x2a8] ss:$24 sps:$4 sm:$0xff]  }
 0x1d4   :  { %2661 = vmatprep.mubr.bf16.mxu1 %v6139_v30  ;;  %v2088_v10 = vpop.f32.mrf.mxu0 }
 0x1d5   :  { %v4181_v3 = vpop.f32.mrf.mxu1  ;;  %v5582_v59 = vpack.c.bf16 %v2706_v12, %v2703_v56  ;;  %v2089_v37 = vadd.f32 %v2088_v10, %v6142_v28  ;;  %v2708_v45 = vmax.f32 %v2087_v49, 0.0  ;;  %v4922_v10 = vld [vmem:[#allocation3 + $0x2dc] ss:$24 sps:$4 sm:$0xff]  }
 0x1d6   :  { %v5580_v54 = vadd.f32 %v4181_v3, %v4180_v61  ;;  %v2090_v44 = vpop.f32.mrf.mxu0  ;;  %v6146_v61 = vld [vmem:[#allocation20_spill] sm:$0xff]  ;;  %v6147_v3 = vld [vmem:[#allocation22_spill] sm:$0xff] }
 0x1d7   :  { %v5584_v63 = vpop.f32.mrf.mxu1  ;;  %v2091_v26 = vadd.f32 %v2090_v44, %v6143_v7  ;;  %v2709_v56 = vmax.f32 %v2089_v37, 0.0 }
 0x1d8   :  { %6140 = vst [vmem:[#allocation15_spill] sm:$0xff] %v5580_v54  ;;  %6141 = vst [vmem:[#allocation17_spill] sm:$0xff] %v5584_v63  ;;  %v2092_v43 = vpop.f32.mrf.mxu0 }
 0x1d9   :  { %v5588_v22 = vpop.f32.mrf.mxu1  ;;  %v2711_v25 = vmax.f32 %v2091_v26, 0.0  ;;  %v2093_v48 = vadd.f32 %v2092_v43, %v6145_v11 }
 0x1da   :  { %6144 = vst [vmem:[#allocation19_spill] sm:$0xff] %v5588_v22  ;;  %v2096_v9 = vpop.f32.mrf.mxu0  ;;  %2501 = vmatmul.mubr.bf16.gmra.mxu0 %v4921_v4  ;;  %v6150_v4 = vld [vmem:[#allocation26_spill] sm:$0xff]  ;;  %v6153_v22 = vld [vmem:[#allocation28_spill] sm:$0xff] }
 0x1db   :  { %v4186_v57 = vpop.f32.mrf.mxu1  ;;  %2662 = vmatmul.mubr.bf16.gmra.mxu1 %v6146_v61  ;;  %v5592_v12 = vpack.c.bf16 %v2711_v25, %v2708_v45  ;;  %v2712_v30 = vmax.f32 %v2093_v48, 0.0  ;;  %2508 = vmatprep.mubr.bf16.mxu0 %v4922_v10  ;;  %v2097_v49 = vadd.f32 %v2096_v9, %v5367_v38  ;;  %v6151_v45 = vld [vmem:[#allocation27_spill] sm:$0xff] }
 0x1dc   :  { %2669 = vmatprep.mubr.bf16.mxu1 %v6147_v3  ;;  %v2098_v44 = vpop.f32.mrf.mxu0  ;;  %v4923_v9 = vld [vmem:[#allocation3 + $0x2d8] ss:$24 sps:$4 sm:$0xff]  }
 0x1dd   :  { %v4187_v28 = vpop.f32.mrf.mxu1  ;;  %v5598_v26 = vpack.c.bf16 %v2712_v30, %v2709_v56  ;;  %v2099_v37 = vadd.f32 %v2098_v44, %v6150_v4  ;;  %v2714_v10 = vmax.f32 %v2097_v49, 0.0  ;;  %v6098_v44 = vmov 0   ;;  %v6155_v4 = vld [vmem:[#allocation29_spill] sm:$0xff] }
 0x1de   :  { %v5596_v7 = vadd.f32 %v4187_v28, %v4186_v57  ;;  %v2100_v43 = vpop.f32.mrf.mxu0  ;;  %v6154_v57 = vld [vmem:[#allocation25_spill] sm:$0xff] }
 0x1df   :  { %v5600_v11 = vpop.f32.mrf.mxu1  ;;  %v2101_v25 = vadd.f32 %v2100_v43, %v6151_v45  ;;  %v2715_v56 = vmax.f32 %v2099_v37, 0.0  ;;  %v6156_v37 = vld [vmem:[#allocation30_spill] sm:$0xff] }
 0x1e0   :  { %6148 = vst [vmem:[#allocation16_spill] sm:$0xff] %v5596_v7  ;;  %6149 = vst [vmem:[#allocation18_spill] sm:$0xff] %v5600_v11  ;;  %v2102_v48 = vpop.f32.mrf.mxu0  ;;  %v6158_v11 = vld [vmem:[#allocation32_spill] sm:$0xff] }
 0x1e1   :  { %v5604_v61 = vpop.f32.mrf.mxu1  ;;  %v2717_v3 = vmax.f32 %v2101_v25, 0.0  ;;  %v2103_v63 = vadd.f32 %v2102_v48, %v6153_v22 }
 0x1e2   :  { %6152 = vst [vmem:[#allocation21_spill] sm:$0xff] %v5604_v61  ;;  %v2106_v54 = vpop.f32.mrf.mxu0  ;;  %2509 = vmatmul.mubr.bf16.gmra.mxu0 %v4923_v9 }
 0x1e3   :  { %v4192_v38 = vpop.f32.mrf.mxu1  ;;  %2670 = vmatmul.mubr.bf16.gmra.mxu1 %v6154_v57  ;;  %v5608_v30 = vpack.c.bf16 %v2717_v3, %v2714_v10  ;;  %v2718_v28 = vmax.f32 %v2103_v63, 0.0  ;;  %3346 = vmatprep.mubr.bf16.mxu0 %v5524_v53  ;;  %v2107_v45 = vadd.f32 %v2106_v54, %v6155_v4  ;;  %v6157_v3 = vld [vmem:[#allocation31_spill] sm:$0xff]  ;;  %v6159_v4 = vld [vmem:[#allocation33_spill] sm:$0xff] }
 0x1e4   :  { %3539 = vmatprep.mubr.bf16.mxu1 %v6098_v44  ;;  %v2108_v43 = vpop.f32.mrf.mxu0 }
 0x1e5   :  { %v4193_v49 = vpop.f32.mrf.mxu1  ;;  %v5615_v25 = vpack.c.bf16 %v2718_v28, %v2715_v56  ;;  %v2109_v10 = vadd.f32 %v2108_v43, %v6156_v37  ;;  %v2720_v61 = vmax.f32 %v2107_v45, 0.0 }
 0x1e6   :  { %v5613_v22 = vadd.f32 %v4193_v49, %v4192_v38  ;;  %v2110_v48 = vpop.f32.mrf.mxu0 }
 0x1e7   :  { %v5617_v9 = vpop.f32.mrf.mxu1  ;;  %v2111_v63 = vadd.f32 %v2110_v48, %v6157_v3  ;;  %v2721_v38 = vmax.f32 %v2109_v10, 0.0 }
 0x1e8   :  { %v2112_v57 = vpop.f32.mrf.mxu0 }
 0x1e9   :  { %v5621_v53 = vpop.f32.mrf.mxu1  ;;  %v2723_v44 = vmax.f32 %v2111_v63, 0.0  ;;  %v2113_v7 = vadd.f32 %v2112_v57, %v6158_v11 }
 0x1ea   :  { %v2116_v39 = vpop.f32.mrf.mxu0  ;;  %3347 = vmatmul.mubr.bf16.vlgmr.msra.gmra.mxu0 %v5518_v13 }
 0x1eb   :  { %v4198_v54 = vpop.f32.mrf.mxu1  ;;  %v5625_v56 = vpack.c.bf16 %v2723_v44, %v2720_v61  ;;  %v2724_v28 = vmax.f32 %v2113_v7, 0.0  ;;  %3356 = vmatprep.mubr.bf16.mxu0 %v5538_v27  ;;  %v2117_v48 = vadd.f32 %v2116_v39, %v6159_v4 }
 0x1ec   :  { %v2118_v43 = vpop.f32.mrf.mxu0 }
 0x1ed   :  { %v4199_v49 = vpop.f32.mrf.mxu1  ;;  %v5631_v45 = vpack.c.bf16 %v2724_v28, %v2721_v38  ;;  %v2119_v63 = vadd.f32 %v2118_v43, %v5401_v42  ;;  %v2726_v7 = vmax.f32 %v2117_v48, 0.0 }
 0x1ee   :  { %v5629_v37 = vadd.f32 %v4199_v49, %v4198_v54  ;;  %v2120_v3 = vpop.f32.mrf.mxu0 }
 0x1ef   :  { %v5633_v11 = vpop.f32.mrf.mxu1  ;;  %v2121_v13 = vadd.f32 %v2120_v3, %v5404_v8  ;;  %v2727_v54 = vmax.f32 %v2119_v63, 0.0 }
 0x1f0   :  { %v2122_v61 = vpop.f32.mrf.mxu0 }
 0x1f1   :  { %v5637_v44 = vpop.f32.mrf.mxu1  ;;  %v2729_v27 = vmax.f32 %v2121_v13, 0.0  ;;  %v2123_v10 = vadd.f32 %v2122_v61, %v5408_v32 }
 0x1f2   :  { %6160 = vst [vmem:[#allocation23_spill] sm:$0xff] %v5637_v44  ;;  %v2126_v57 = vpop.f32.mrf.mxu0  ;;  %3357 = vmatmul.mubr.bf16.gmra.mxu0 %v5532_v36  ;;  %v6161_v36 = vld [vmem:[#allocation34_spill] sm:$0xff] }
 0x1f3   :  { %v4204_v39 = vpop.f32.mrf.mxu1  ;;  %v5641_v38 = vpack.c.bf16 %v2729_v27, %v2726_v7  ;;  %v2730_v28 = vmax.f32 %v2123_v10, 0.0  ;;  %3366 = vmatprep.mubr.bf16.mxu0 %v5552_v20  ;;  %v2127_v8 = vadd.f32 %v2126_v57, %v5412_v6  ;;  %v6162_v27 = vld [vmem:[#allocation35_spill] sm:$0xff] }
 0x1f4   :  { %v2128_v42 = vpop.f32.mrf.mxu0 }
 0x1f5   :  { %v4205_v43 = vpop.f32.mrf.mxu1  ;;  %v5647_v4 = vpack.c.bf16 %v2730_v28, %v2727_v54  ;;  %v2129_v3 = vadd.f32 %v2128_v42, %v5415_v55  ;;  %v2732_v7 = vmax.f32 %v2127_v8, 0.0  ;;  %v6163_v42 = vld [vmem:[#allocation36_spill] sm:$0xff] }
 0x1f6   :  { %v5645_v49 = vadd.f32 %v4205_v43, %v4204_v39  ;;  %v2130_v48 = vpop.f32.mrf.mxu0 }
 0x1f7   :  { %v5649_v32 = vpop.f32.mrf.mxu1  ;;  %v2131_v63 = vadd.f32 %v2130_v48, %v6161_v36  ;;  %v2733_v57 = vmax.f32 %v2129_v3, 0.0 }
 0x1f8   :  { %v2132_v13 = vpop.f32.mrf.mxu0 }
 0x1f9   :  { %v5653_v61 = vpop.f32.mrf.mxu1  ;;  %v2735_v20 = vmax.f32 %v2131_v63, 0.0  ;;  %v2133_v10 = vadd.f32 %v2132_v13, %v6162_v27 }
 0x1fa   :  { %v2136_v44 = vpop.f32.mrf.mxu0  ;;  %3367 = vmatmul.mubr.bf16.gmra.mxu0 %v5546_v34 }
 0x1fb   :  { %v4210_v6 = vpop.f32.mrf.mxu1  ;;  %v5657_v39 = vpack.c.bf16 %v2735_v20, %v2732_v7  ;;  %v2736_v54 = vmax.f32 %v2133_v10, 0.0  ;;  %3376 = vmatprep.mubr.bf16.mxu0 %v5566_v35  ;;  %v2137_v43 = vadd.f32 %v2136_v44, %v6163_v42 }
 0x1fc   :  { %v2138_v55 = vpop.f32.mrf.mxu0 }
 0x1fd   :  { %v4211_v28 = vpop.f32.mrf.mxu1  ;;  %v5663_v8 = vpack.c.bf16 %v2736_v54, %v2733_v57  ;;  %v2139_v13 = vadd.f32 %v2138_v55, %v5429_v40  ;;  %v2738_v20 = vmax.f32 %v2137_v43, 0.0 }
 0x1fe   :  { %v5661_v48 = vadd.f32 %v4211_v28, %v4210_v6  ;;  %v2140_v36 = vpop.f32.mrf.mxu0 }
 0x1ff   :  { %v5665_v63 = vpop.f32.mrf.mxu1  ;;  %v2141_v34 = vadd.f32 %v2140_v36, %v5432_v62  ;;  %v2739_v6 = vmax.f32 %v2139_v13, 0.0  ;;  %v6166_v36 = vld [vmem:[#allocation37_spill] sm:$0xff] }
 0x200   :  { %6164 = vst [vmem:[#allocation24_spill] sm:$0xff] %v5665_v63  ;;  %v2142_v3 = vpop.f32.mrf.mxu0 }
 0x201   :  { %v5669_v7 = vpop.f32.mrf.mxu1  ;;  %v2741_v35 = vmax.f32 %v2141_v34, 0.0  ;;  %v2143_v27 = vadd.f32 %v2142_v3, %v5436_v58 }
 0x202   :  { %6165 = vst [vmem:[#allocation20_spill] sm:$0xff] %v5669_v7  ;;  %v2146_v10 = vpop.f32.mrf.mxu0  ;;  %3377 = vmatmul.mubr.bf16.gmra.mxu0 %v5560_v21  ;;  %v6167_v21 = vld [vmem:[#allocation38_spill] sm:$0xff] }
 0x203   :  { %v4216_v44 = vpop.f32.mrf.mxu1  ;;  %v5673_v57 = vpack.c.bf16 %v2741_v35, %v2738_v20  ;;  %v2742_v54 = vmax.f32 %v2143_v27, 0.0  ;;  %3386 = vmatprep.mubr.bf16.mxu0 %v5582_v59  ;;  %v2147_v62 = vadd.f32 %v2146_v10, %v5440_v19  ;;  %v6168_v27 = vld [vmem:[#allocation39_spill] sm:$0xff] }
 0x204   :  { %v2148_v40 = vpop.f32.mrf.mxu0 }
 0x205   :  { %v4217_v55 = vpop.f32.mrf.mxu1  ;;  %v5679_v42 = vpack.c.bf16 %v2742_v54, %v2739_v6  ;;  %v2149_v34 = vadd.f32 %v2148_v40, %v6166_v36  ;;  %v2744_v35 = vmax.f32 %v2147_v62, 0.0 }
 0x206   :  { %v5677_v28 = vadd.f32 %v4217_v55, %v4216_v44  ;;  %v2150_v43 = vpop.f32.mrf.mxu0  ;;  %v6169_v55 = vld [vmem:[#allocation40_spill] sm:$0xff] }
 0x207   :  { %v5681_v58 = vpop.f32.mrf.mxu1  ;;  %v2151_v13 = vadd.f32 %v2150_v43, %v6167_v21  ;;  %v2745_v10 = vmax.f32 %v2149_v34, 0.0 }
 0x208   :  { %v2152_v3 = vpop.f32.mrf.mxu0 }
 0x209   :  { %v5685_v20 = vpop.f32.mrf.mxu1  ;;  %v2747_v59 = vmax.f32 %v2151_v13, 0.0  ;;  %v2153_v7 = vadd.f32 %v2152_v3, %v6168_v27 }
 0x20a   :  { %v2156_v63 = vpop.f32.mrf.mxu0  ;;  %3387 = vmatmul.mubr.bf16.gmra.mxu0 %v5576_v16 }
 0x20b   :  { %v4222_v19 = vpop.f32.mrf.mxu1  ;;  %v5689_v44 = vpack.c.bf16 %v2747_v59, %v2744_v35  ;;  %v2748_v6 = vmax.f32 %v2153_v7, 0.0  ;;  %3396 = vmatprep.mubr.bf16.mxu0 %v5598_v26  ;;  %v2157_v43 = vadd.f32 %v2156_v63, %v6169_v55 }
 0x20c   :  { %v2158_v54 = vpop.f32.mrf.mxu0 }
 0x20d   :  { %v4223_v40 = vpop.f32.mrf.mxu1  ;;  %v5695_v62 = vpack.c.bf16 %v2748_v6, %v2745_v10  ;;  %v2159_v3 = vadd.f32 %v2158_v54, %v5457_v0  ;;  %v2750_v7 = vmax.f32 %v2157_v43, 0.0 }
 0x20e   :  { %v5693_v36 = vadd.f32 %v4223_v40, %v4222_v19  ;;  %v2160_v21 = vpop.f32.mrf.mxu0 }
 0x20f   :  { %v5697_v13 = vpop.f32.mrf.mxu1  ;;  %v2161_v16 = vadd.f32 %v2160_v21, %v5460_v50  ;;  %v2751_v19 = vmax.f32 %v2159_v3, 0.0  ;;  %v6172_v21 = vld [vmem:[#allocation41_spill] sm:$0xff] }
 0x210   :  { %6170 = vst [vmem:[#allocation22_spill] sm:$0xff] %v5697_v13  ;;  %v2162_v34 = vpop.f32.mrf.mxu0 }
 0x211   :  { %v5701_v35 = vpop.f32.mrf.mxu1  ;;  %v2753_v26 = vmax.f32 %v2161_v16, 0.0  ;;  %v2163_v59 = vadd.f32 %v2162_v34, %v5464_v51 }
 0x212   :  { %6171 = vst [vmem:[#allocation26_spill] sm:$0xff] %v5701_v35  ;;  %v2166_v27 = vpop.f32.mrf.mxu0  ;;  %3397 = vmatmul.mubr.bf16.gmra.mxu0 %v5592_v12  ;;  %v6173_v12 = vld [vmem:[#allocation42_spill] sm:$0xff] }
 0x213   :  { %v4228_v63 = vpop.f32.mrf.mxu1  ;;  %v5705_v10 = vpack.c.bf16 %v2753_v26, %v2750_v7  ;;  %v2754_v6 = vmax.f32 %v2163_v59, 0.0  ;;  %3406 = vmatprep.mubr.bf16.mxu0 %v5615_v25  ;;  %v2167_v50 = vadd.f32 %v2166_v27, %v5468_v60  ;;  %v6174_v59 = vld [vmem:[#allocation43_spill] sm:$0xff] }
 0x214   :  { %v2168_v0 = vpop.f32.mrf.mxu0 }
 0x215   :  { %v4229_v54 = vpop.f32.mrf.mxu1  ;;  %v5711_v55 = vpack.c.bf16 %v2754_v6, %v2751_v19  ;;  %v2169_v16 = vadd.f32 %v2168_v0, %v6172_v21  ;;  %v2756_v26 = vmax.f32 %v2167_v50, 0.0 }
 0x216   :  { %v5709_v40 = vadd.f32 %v4229_v54, %v4228_v63  ;;  %v2170_v43 = vpop.f32.mrf.mxu0  ;;  %v6175_v54 = vld [vmem:[#allocation44_spill] sm:$0xff] }
 0x217   :  { %v5713_v51 = vpop.f32.mrf.mxu1  ;;  %v2171_v3 = vadd.f32 %v2170_v43, %v6173_v12  ;;  %v2757_v27 = vmax.f32 %v2169_v16, 0.0 }
 0x218   :  { %v2172_v34 = vpop.f32.mrf.mxu0 }
 0x219   :  { %v5717_v7 = vpop.f32.mrf.mxu1  ;;  %v2759_v25 = vmax.f32 %v2171_v3, 0.0  ;;  %v2173_v35 = vadd.f32 %v2172_v34, %v6174_v59 }
 0x21a   :  { %v2176_v13 = vpop.f32.mrf.mxu0  ;;  %3407 = vmatmul.mubr.bf16.gmra.mxu0 %v5608_v30 }
 0x21b   :  { %v4234_v60 = vpop.f32.mrf.mxu1  ;;  %v5721_v63 = vpack.c.bf16 %v2759_v25, %v2756_v26  ;;  %v2760_v19 = vmax.f32 %v2173_v35, 0.0  ;;  %3416 = vmatprep.mubr.bf16.mxu0 %v5631_v45  ;;  %v2177_v43 = vadd.f32 %v2176_v13, %v6175_v54 }
 0x21c   :  { %v2178_v6 = vpop.f32.mrf.mxu0 }
 0x21d   :  { %v4235_v0 = vpop.f32.mrf.mxu1  ;;  %v5727_v50 = vpack.c.bf16 %v2760_v19, %v2757_v27  ;;  %v2179_v34 = vadd.f32 %v2178_v6, %v5485_v47  ;;  %v2762_v35 = vmax.f32 %v2177_v43, 0.0 }
 0x21e   :  { %v5725_v21 = vadd.f32 %v4235_v0, %v4234_v60  ;;  %v2180_v12 = vpop.f32.mrf.mxu0 }
 0x21f   :  { %v5729_v3 = vpop.f32.mrf.mxu1  ;;  %v2181_v30 = vadd.f32 %v2180_v12, %v5488_v31  ;;  %v2763_v60 = vmax.f32 %v2179_v34, 0.0  ;;  %v6176_v31 = vld [vmem:[#allocation13_spill] sm:$0xff] }
 0x220   :  { %v2182_v16 = vpop.f32.mrf.mxu0  ;;  %v363_v0 = vsub.s32 2, %v6176_v31 }
 0x221   :  { %v5733_v26 = vpop.f32.mrf.mxu1  ;;  %v2765_v45 = vmax.f32 %v2181_v30, 0.0  ;;  %v2183_v25 = vadd.f32 %v2182_v16, %v5492_v33 }
 0x222   :  { %v2186_v59 = vpop.f32.mrf.mxu0  ;;  %3417 = vmatmul.mubr.bf16.gmra.mxu0 %v5625_v56 }
 0x223   :  { %v4240_v13 = vpop.f32.mrf.mxu1  ;;  %v5737_v27 = vpack.c.bf16 %v2765_v45, %v2762_v35  ;;  %v2766_v19 = vmax.f32 %v2183_v25, 0.0  ;;  %3426 = vmatprep.mubr.bf16.mxu0 %v5647_v4  ;;  %v2187_v54 = vadd.f32 %v2186_v59, %v5496_v17  ;;  %v4924_v4 = vld [vmem:[%s6083_s2] sm:$0x7] }
 0x224   :  { %v2188_v47 = vpop.f32.mrf.mxu0  ;;  %v5755_v45 = vrot.slane %v4924_v4, %v363_v0  ;;  %v6180_v59 = vld [vmem:[#allocation45_spill] sm:$0xff] }
 0x225   :  { %v4241_v6 = vpop.f32.mrf.mxu1  ;;  %v5744_v12 = vpack.c.bf16 %v2766_v19, %v2763_v60  ;;  %v2189_v56 = vadd.f32 %v2188_v47, %v5499_v46  ;;  %v2768_v17 = vmax.f32 %v2187_v54, 0.0 }
 0x226   :  { %v5742_v43 = vadd.f32 %v4241_v6, %v4240_v13  ;;  %v2190_v33 = vpop.f32.mrf.mxu0  ;;  %v2230_v0 = vadd.f32 %v5510_v5, %v5755_v45 }
 0x227   :  { %v5746_v30 = vpop.f32.mrf.mxu1  ;;  %v2191_v34 = vadd.f32 %v2190_v33, %v5502_v1  ;;  %v2769_v46 = vmax.f32 %v2189_v56, 0.0 }
 0x228   :  { %6177 = vst [vmem:[#allocation27_spill] sm:$0xff] %v5742_v43  ;;  %6178 = vst [vmem:[#allocation28_spill] sm:$0xff] %v5746_v30  ;;  %v2192_v16 = vpop.f32.mrf.mxu0 }
 0x229   :  { %v5750_v35 = vpop.f32.mrf.mxu1  ;;  %v2771_v25 = vmax.f32 %v2191_v34, 0.0  ;;  %v2193_v13 = vadd.f32 %v2192_v16, %v6180_v59 }
 0x22a   :  { %6179 = vst [vmem:[#allocation25_spill] sm:$0xff] %v5750_v35  ;;  %v4262_v60 = vpop.f32.mrf.mxu0  ;;  %3427 = vmatmul.mubr.bf16.gmra.mxu0 %v5641_v38  ;;  %v2233_v38 = vadd.f32 %v5515_v29, %v5755_v45 }
 0x22b   :  { %v4374_v19 = vpop.f32.mrf.mxu1  ;;  %v5759_v47 = vpack.c.bf16 %v2771_v25, %v2768_v17  ;;  %v2772_v1 = vmax.f32 %v2193_v13, 0.0  ;;  %3436 = vmatprep.mubr.bf16.mxu0 %v5663_v8 }
 0x22c   :  { %v4263_v6 = vpop.f32.mrf.mxu0 }
 0x22d   :  { %v4375_v33 = vpop.f32.mrf.mxu1  ;;  %v4264_v4 = vadd.f32 %v4263_v6, %v4262_v60  ;;  %v5764_v54 = vpack.c.bf16 %v2772_v1, %v2769_v46  ;;  %v2238_v1 = vadd.f32 %v5522_v52, %v5755_v45 }
 0x22e   :  { %v4265_v34 = vpop.f32.mrf.mxu0  ;;  %v4376_v56 = vadd.f32 %v4375_v33, %v4374_v19 }
 0x22f   :  { %v4377_v16 = vpop.f32.mrf.mxu1  ;;  %v2391_v59 = vadd.f32 %v4264_v4, %v2230_v0 }
 0x230   :  { %v4266_v31 = vpop.f32.mrf.mxu0 }
 0x231   :  { %v4378_v35 = vpop.f32.mrf.mxu1  ;;  %v4267_v17 = vadd.f32 %v4266_v31, %v4265_v34  ;;  %v2552_v13 = vadd.f32 %v4376_v56, %v2391_v59 }
 0x232   :  { %v4268_v25 = vpop.f32.mrf.mxu0  ;;  %3437 = vmatmul.mubr.bf16.gmra.mxu0 %v5657_v39  ;;  %v4379_v5 = vadd.f32 %v4378_v35, %v4377_v16  ;;  %v2241_v39 = vadd.f32 %v5529_v14, %v5755_v45  ;;  %v2246_v14 = vadd.f32 %v5536_v2, %v5755_v45 }
 0x233   :  { %v4380_v8 = vpop.f32.mrf.mxu1  ;;  %v2394_v30 = vadd.f32 %v4267_v17, %v2233_v38  ;;  %3446 = vmatprep.mubr.bf16.mxu0 %v5679_v42  ;;  %v2680_v19 = vmax.f32 %v2552_v13, 0.0  ;;  %v6181_v13 = vmov 0  }
 0x234   :  { %v4269_v60 = vpop.f32.mrf.mxu0 }
 0x235   :  { %v4381_v46 = vpop.f32.mrf.mxu1  ;;  %v2555_v6 = vadd.f32 %v4379_v5, %v2394_v30  ;;  %v4270_v0 = vadd.f32 %v4269_v60, %v4268_v25 }
 0x236   :  { %v4271_v4 = vpop.f32.mrf.mxu0  ;;  %v4382_v16 = vadd.f32 %v4381_v46, %v4380_v8 }
 0x237   :  { %v4383_v29 = vpop.f32.mrf.mxu1  ;;  %v2683_v31 = vmax.f32 %v2555_v6, 0.0  ;;  %v2399_v33 = vadd.f32 %v4270_v0, %v2238_v1 }
 0x238   :  { %v4272_v34 = vpop.f32.mrf.mxu0 }
 0x239   :  { %v4384_v43 = vpop.f32.mrf.mxu1  ;;  %v2968_v35 = vpack.c.bf16 %v2683_v31, %v2680_v19  ;;  %v4273_v42 = vadd.f32 %v4272_v34, %v4271_v4  ;;  %v2560_v52 = vadd.f32 %v4382_v16, %v2399_v33 }
 0x23a   :  { %v4274_v59 = vpop.f32.mrf.mxu0  ;;  %3447 = vmatmul.mubr.bf16.gmra.mxu0 %v5673_v57  ;;  %v4385_v56 = vadd.f32 %v4384_v43, %v4383_v29 }
 0x23b   :  { %v4386_v38 = vpop.f32.mrf.mxu1  ;;  %v2402_v30 = vadd.f32 %v4273_v42, %v2241_v39  ;;  %3456 = vmatprep.mubr.bf16.mxu0 %v5695_v62  ;;  %3540 = vmatmul.mubr.bf16.vlgmr.msra.gmra.mxu1 %v2968_v35  ;;  %v2686_v1 = vmax.f32 %v2560_v52, 0.0  ;;  %v2249_v62 = vadd.f32 %v5543_v41, %v5755_v45  ;;  %v2254_v41 = vadd.f32 %v5550_v24, %v5755_v45 }
 0x23c   :  { %v4275_v17 = vpop.f32.mrf.mxu0  ;;  %3549 = vmatprep.mubr.bf16.mxu1 %v6181_v13 }
 0x23d   :  { %v4387_v25 = vpop.f32.mrf.mxu1  ;;  %v2563_v5 = vadd.f32 %v4385_v56, %v2402_v30  ;;  %v4276_v8 = vadd.f32 %v4275_v17, %v4274_v59 }
 0x23e   :  { %v4277_v60 = vpop.f32.mrf.mxu0  ;;  %v4388_v29 = vadd.f32 %v4387_v25, %v4386_v38 }
 0x23f   :  { %v4389_v46 = vpop.f32.mrf.mxu1  ;;  %v2689_v6 = vmax.f32 %v2563_v5, 0.0  ;;  %v2407_v57 = vadd.f32 %v4276_v8, %v2246_v14 }
 0x240   :  { %v4278_v0 = vpop.f32.mrf.mxu0 }
 0x241   :  { %v4390_v4 = vpop.f32.mrf.mxu1  ;;  %v2971_v43 = vpack.c.bf16 %v2689_v6, %v2686_v1  ;;  %v4279_v19 = vadd.f32 %v4278_v0, %v4277_v60  ;;  %v2568_v2 = vadd.f32 %v4388_v29, %v2407_v57 }
 0x242   :  { %v4280_v31 = vpop.f32.mrf.mxu0  ;;  %3457 = vmatmul.mubr.bf16.gmra.mxu0 %v5689_v44  ;;  %v4391_v39 = vadd.f32 %v4390_v4, %v4389_v46  ;;  %v6182_v4 = vld [vmem:[#allocation14_spill] sm:$0xff] }
 0x243   :  { %v4392_v33 = vpop.f32.mrf.mxu1  ;;  %v2410_v34 = vadd.f32 %v4279_v19, %v2249_v62  ;;  %3466 = vmatprep.mubr.bf16.mxu0 %v5711_v55  ;;  %3550 = vmatmul.mubr.bf16.gmra.mxu1 %v2971_v43  ;;  %v2692_v30 = vmax.f32 %v2568_v2, 0.0  ;;  %v2257_v55 = vadd.f32 %v5557_v15, %v5755_v45  ;;  %v2262_v15 = vadd.f32 %v5564_v18, %v5755_v45 }
 0x244   :  { %v4281_v35 = vpop.f32.mrf.mxu0  ;;  %3559 = vmatprep.mubr.bf16.mxu1 %v6181_v13  ;;  %v4179_v62 = vadd.f32 %v6182_v4, %v5568_v23 }
 0x245   :  { %v4393_v16 = vpop.f32.mrf.mxu1  ;;  %v2571_v42 = vadd.f32 %v4391_v39, %v2410_v34  ;;  %v4282_v59 = vadd.f32 %v4281_v35, %v4280_v31 }
 0x246   :  { %v4283_v38 = vpop.f32.mrf.mxu0  ;;  %v4394_v5 = vadd.f32 %v4393_v16, %v4392_v33  ;;  %v2265_v39 = vadd.f32 %v4179_v62, %v5755_v45 }
 0x247   :  { %v4395_v52 = vpop.f32.mrf.mxu1  ;;  %v2695_v56 = vmax.f32 %v2571_v42, 0.0  ;;  %v2415_v44 = vadd.f32 %v4282_v59, %v2254_v41 }
 0x248   :  { %v4284_v17 = vpop.f32.mrf.mxu0 }
 0x249   :  { %v4396_v25 = vpop.f32.mrf.mxu1  ;;  %v2974_v14 = vpack.c.bf16 %v2695_v56, %v2692_v30  ;;  %v4285_v8 = vadd.f32 %v4284_v17, %v4283_v38  ;;  %v2576_v24 = vadd.f32 %v4394_v5, %v2415_v44  ;;  %v6183_v56 = vld [vmem:[#allocation15_spill] sm:$0xff]  ;;  %v6184_v17 = vld [vmem:[#allocation17_spill] sm:$0xff] }
 0x24a   :  { %v4286_v60 = vpop.f32.mrf.mxu0  ;;  %3467 = vmatmul.mubr.bf16.gmra.mxu0 %v5705_v10  ;;  %v4397_v6 = vadd.f32 %v4396_v25, %v4395_v52  ;;  %v2270_v44 = vadd.f32 %v6183_v56, %v5755_v45  ;;  %v6185_v25 = vld [vmem:[#allocation19_spill] sm:$0xff] }
 0x24b   :  { %v4398_v46 = vpop.f32.mrf.mxu1  ;;  %v2418_v1 = vadd.f32 %v4285_v8, %v2257_v55  ;;  %3476 = vmatprep.mubr.bf16.mxu0 %v5727_v50  ;;  %3560 = vmatmul.mubr.bf16.gmra.mxu1 %v2974_v14  ;;  %v2698_v31 = vmax.f32 %v2576_v24, 0.0  ;;  %v4185_v55 = vadd.f32 %v6185_v25, %v6184_v17 }
 0x24c   :  { %v4287_v57 = vpop.f32.mrf.mxu0  ;;  %3569 = vmatprep.mubr.bf16.mxu1 %v6181_v13 }
 0x24d   :  { %v4399_v0 = vpop.f32.mrf.mxu1  ;;  %v2579_v43 = vadd.f32 %v4397_v6, %v2418_v1  ;;  %v4288_v29 = vadd.f32 %v4287_v57, %v4286_v60  ;;  %v2273_v6 = vadd.f32 %v4185_v55, %v5755_v45 }
 0x24e   :  { %v4289_v19 = vpop.f32.mrf.mxu0  ;;  %v4400_v16 = vadd.f32 %v4399_v0, %v4398_v46 }
 0x24f   :  { %v4401_v10 = vpop.f32.mrf.mxu1  ;;  %v2701_v33 = vmax.f32 %v2579_v43, 0.0  ;;  %v2423_v2 = vadd.f32 %v4288_v29, %v2262_v15 }
 0x250   :  { %v4290_v34 = vpop.f32.mrf.mxu0 }
 0x251   :  { %v4402_v50 = vpop.f32.mrf.mxu1  ;;  %v2977_v35 = vpack.c.bf16 %v2701_v33, %v2698_v31  ;;  %v4291_v41 = vadd.f32 %v4290_v34, %v4289_v19  ;;  %v2584_v18 = vadd.f32 %v4400_v16, %v2423_v2  ;;  %v6186_v33 = vld [vmem:[#allocation16_spill] sm:$0xff]  ;;  %v6187_v34 = vld [vmem:[#allocation18_spill] sm:$0xff] }
 0x252   :  { %v4292_v42 = vpop.f32.mrf.mxu0  ;;  %3477 = vmatmul.mubr.bf16.gmra.mxu0 %v5721_v63  ;;  %v4403_v38 = vadd.f32 %v4402_v50, %v4401_v10  ;;  %v2278_v2 = vadd.f32 %v6186_v33, %v5755_v45  ;;  %v6188_v50 = vld [vmem:[#allocation21_spill] sm:$0xff] }
 0x253   :  { %v4404_v59 = vpop.f32.mrf.mxu1  ;;  %v2426_v23 = vadd.f32 %v4291_v41, %v2265_v39  ;;  %3486 = vmatprep.mubr.bf16.mxu0 %v5744_v12  ;;  %3570 = vmatmul.mubr.bf16.gmra.mxu1 %v2977_v35  ;;  %v2704_v60 = vmax.f32 %v2584_v18, 0.0  ;;  %v4191_v39 = vadd.f32 %v6188_v50, %v6187_v34  ;;  %v6189_v34 = vld [vmem:[#allocation23_spill] sm:$0xff] }
 0x254   :  { %v4293_v52 = vpop.f32.mrf.mxu0  ;;  %3579 = vmatprep.mubr.bf16.mxu1 %v6181_v13  ;;  %v4203_v50 = vadd.f32 %v6189_v34, %v5633_v11 }
 0x255   :  { %v4405_v30 = vpop.f32.mrf.mxu1  ;;  %v2587_v14 = vadd.f32 %v4403_v38, %v2426_v23  ;;  %v4294_v5 = vadd.f32 %v4293_v52, %v4292_v42  ;;  %v2281_v38 = vadd.f32 %v4191_v39, %v5755_v45 }
 0x256   :  { %v4295_v8 = vpop.f32.mrf.mxu0  ;;  %v4406_v0 = vadd.f32 %v4405_v30, %v4404_v59 }
 0x257   :  { %v4407_v63 = vpop.f32.mrf.mxu1  ;;  %v2707_v46 = vmax.f32 %v2587_v14, 0.0  ;;  %v2431_v24 = vadd.f32 %v4294_v5, %v2270_v44 }
 0x258   :  { %v4296_v1 = vpop.f32.mrf.mxu0 }
 0x259   :  { %v4408_v12 = vpop.f32.mrf.mxu1  ;;  %v2980_v57 = vpack.c.bf16 %v2707_v46, %v2704_v60  ;;  %v4297_v15 = vadd.f32 %v4296_v1, %v4295_v8  ;;  %v2592_v43 = vadd.f32 %v4406_v0, %v2431_v24  ;;  %v4197_v60 = vadd.f32 %v5621_v53, %v5617_v9 }
 0x25a   :  { %v4298_v4 = vpop.f32.mrf.mxu0  ;;  %3487 = vmatmul.mubr.bf16.gmra.mxu0 %v5737_v27  ;;  %v4409_v19 = vadd.f32 %v4408_v12, %v4407_v63  ;;  %v2286_v63 = vadd.f32 %v5613_v22, %v5755_v45 }
 0x25b   :  { %v4410_v62 = vpop.f32.mrf.mxu1  ;;  %v2434_v29 = vadd.f32 %v4297_v15, %v2273_v6  ;;  %3496 = vmatprep.mubr.bf16.mxu0 %v5764_v54  ;;  %3580 = vmatmul.mubr.bf16.gmra.mxu1 %v2980_v57  ;;  %v2710_v42 = vmax.f32 %v2592_v43, 0.0 }
 0x25c   :  { %v4299_v10 = vpop.f32.mrf.mxu0  ;;  %3589 = vmatprep.mubr.bf16.mxu1 %v6181_v13 }
 0x25d   :  { %v4411_v31 = vpop.f32.mrf.mxu1  ;;  %v2595_v35 = vadd.f32 %v4409_v19, %v2434_v29  ;;  %v4300_v16 = vadd.f32 %v4299_v10, %v4298_v4  ;;  %v2289_v4 = vadd.f32 %v4197_v60, %v5755_v45 }
 0x25e   :  { %v4301_v41 = vpop.f32.mrf.mxu0  ;;  %v4412_v30 = vadd.f32 %v4411_v31, %v4410_v62 }
 0x25f   :  { %v4413_v27 = vpop.f32.mrf.mxu1  ;;  %v2713_v59 = vmax.f32 %v2595_v35, 0.0  ;;  %v2439_v18 = vadd.f32 %v4300_v16, %v2278_v2  ;;  %v2294_v2 = vadd.f32 %v5629_v37, %v5755_v45 }
 0x260   :  { %v4302_v23 = vpop.f32.mrf.mxu0 }
 0x261   :  { %v4414_v54 = vpop.f32.mrf.mxu1  ;;  %v2983_v52 = vpack.c.bf16 %v2713_v59, %v2710_v42  ;;  %v4303_v56 = vadd.f32 %v4302_v23, %v4301_v41  ;;  %v2600_v25 = vadd.f32 %v4412_v30, %v2439_v18 }
 0x262   :  { %v4304_v44 = vpop.f32.mrf.mxu0  ;;  %3497 = vmatmul.mubr.bf16.gmra.mxu0 %v5759_v47  ;;  %v4415_v14 = vadd.f32 %v4414_v54, %v4413_v27  ;;  %v2297_v54 = vadd.f32 %v4203_v50, %v5755_v45 }
 0x263   :  { %v4416_v17 = vpop.f32.mrf.mxu1  ;;  %v2442_v55 = vadd.f32 %v4303_v56, %v2281_v38  ;;  %3590 = vmatmul.mubr.bf16.gmra.mxu1 %v2983_v52  ;;  %v2716_v6 = vmax.f32 %v2600_v25, 0.0 }
 0x264   :  { %v4305_v5 = vpop.f32.mrf.mxu0  ;;  %3599 = vmatprep.mubr.bf16.mxu1 %v6181_v13 }
 0x265   :  { %v4417_v8 = vpop.f32.mrf.mxu1  ;;  %v2603_v46 = vadd.f32 %v4415_v14, %v2442_v55  ;;  %v4306_v24 = vadd.f32 %v4305_v5, %v4304_v44  ;;  %v2302_v14 = vadd.f32 %v5645_v49, %v5755_v45  ;;  %v4209_v5 = vadd.f32 %v5653_v61, %v5649_v32 }
 0x266   :  { %v4307_v1 = vpop.f32.mrf.mxu0  ;;  %v4418_v43 = vadd.f32 %v4417_v8, %v4416_v17 }
 0x267   :  { %v4419_v12 = vpop.f32.mrf.mxu1  ;;  %v2719_v47 = vmax.f32 %v2603_v46, 0.0  ;;  %v2447_v57 = vadd.f32 %v4306_v24, %v2286_v63 }
 0x268   :  { %v4308_v0 = vpop.f32.mrf.mxu0 }
 0x269   :  { %v4420_v15 = vpop.f32.mrf.mxu1  ;;  %v2986_v62 = vpack.c.bf16 %v2719_v47, %v2716_v6  ;;  %v4309_v29 = vadd.f32 %v4308_v0, %v4307_v1  ;;  %v2608_v22 = vadd.f32 %v4418_v43, %v2447_v57  ;;  %v2305_v57 = vadd.f32 %v4209_v5, %v5755_v45 }
 0x26a   :  { %v4310_v19 = vpop.f32.mrf.mxu0  ;;  %v4421_v33 = vadd.f32 %v4420_v15, %v4419_v12 }
 0x26b   :  { %v4422_v10 = vpop.f32.mrf.mxu1  ;;  %v2450_v31 = vadd.f32 %v4309_v29, %v2289_v4  ;;  %3600 = vmatmul.mubr.bf16.gmra.mxu1 %v2986_v62  ;;  %v2722_v27 = vmax.f32 %v2608_v22, 0.0  ;;  %v6190_v22 = vld [vmem:[#allocation24_spill] sm:$0xff] }
 0x26c   :  { %v4311_v9 = vpop.f32.mrf.mxu0  ;;  %3609 = vmatprep.mubr.bf16.mxu1 %v6181_v13 }
 0x26d   :  { %v4423_v53 = vpop.f32.mrf.mxu1  ;;  %v2611_v39 = vadd.f32 %v4421_v33, %v2450_v31  ;;  %v4312_v35 = vadd.f32 %v4311_v9, %v4310_v19  ;;  %v6191_v31 = vld [vmem:[#allocation20_spill] sm:$0xff] }
 0x26e   :  { %v4313_v16 = vpop.f32.mrf.mxu0  ;;  %v4424_v52 = vadd.f32 %v4423_v53, %v4422_v10  ;;  %v2310_v10 = vadd.f32 %v5661_v48, %v5755_v45  ;;  %v4215_v33 = vadd.f32 %v6191_v31, %v6190_v22 }
 0x26f   :  { %v4425_v41 = vpop.f32.mrf.mxu1  ;;  %v2725_v42 = vmax.f32 %v2611_v39, 0.0  ;;  %v2455_v59 = vadd.f32 %v4312_v35, %v2294_v2 }
 0x270   :  { %v4314_v18 = vpop.f32.mrf.mxu0 }
 0x271   :  { %v4426_v23 = vpop.f32.mrf.mxu1  ;;  %v2989_v38 = vpack.c.bf16 %v2725_v42, %v2722_v27  ;;  %v4315_v30 = vadd.f32 %v4314_v18, %v4313_v16  ;;  %v2616_v37 = vadd.f32 %v4424_v52, %v2455_v59  ;;  %v2313_v27 = vadd.f32 %v4215_v33, %v5755_v45 }
 0x272   :  { %v4316_v56 = vpop.f32.mrf.mxu0  ;;  %v4427_v25 = vadd.f32 %v4426_v23, %v4425_v41 }
 0x273   :  { %v4428_v44 = vpop.f32.mrf.mxu1  ;;  %v2458_v17 = vadd.f32 %v4315_v30, %v2297_v54  ;;  %3610 = vmatmul.mubr.bf16.gmra.mxu1 %v2989_v38  ;;  %v2728_v24 = vmax.f32 %v2616_v37, 0.0  ;;  %v4221_v37 = vadd.f32 %v5685_v20, %v5681_v58 }
 0x274   :  { %v4317_v11 = vpop.f32.mrf.mxu0  ;;  %3619 = vmatprep.mubr.bf16.mxu1 %v6181_v13 }
 0x275   :  { %v4429_v55 = vpop.f32.mrf.mxu1  ;;  %v2619_v8 = vadd.f32 %v4427_v25, %v2458_v17  ;;  %v4318_v63 = vadd.f32 %v4317_v11, %v4316_v56 }
 0x276   :  { %v4319_v60 = vpop.f32.mrf.mxu0  ;;  %v4430_v15 = vadd.f32 %v4429_v55, %v4428_v44  ;;  %v2318_v44 = vadd.f32 %v5677_v28, %v5755_v45 }
 0x277   :  { %v4431_v46 = vpop.f32.mrf.mxu1  ;;  %v2731_v1 = vmax.f32 %v2619_v8, 0.0  ;;  %v2463_v12 = vadd.f32 %v4318_v63, %v2302_v14 }
 0x278   :  { %v4320_v6 = vpop.f32.mrf.mxu0 }
 0x279   :  { %v4432_v47 = vpop.f32.mrf.mxu1  ;;  %v2992_v0 = vpack.c.bf16 %v2731_v1, %v2728_v24  ;;  %v4321_v4 = vadd.f32 %v4320_v6, %v4319_v60  ;;  %v2624_v49 = vadd.f32 %v4430_v15, %v2463_v12  ;;  %v2326_v15 = vadd.f32 %v5693_v36, %v5755_v45 }
 0x27a   :  { %v4322_v62 = vpop.f32.mrf.mxu0  ;;  %v4433_v19 = vadd.f32 %v4432_v47, %v4431_v46  ;;  %v2321_v46 = vadd.f32 %v4221_v37, %v5755_v45 }
 0x27b   :  { %v4434_v43 = vpop.f32.mrf.mxu1  ;;  %v2466_v29 = vadd.f32 %v4321_v4, %v2305_v57  ;;  %3620 = vmatmul.mubr.bf16.gmra.mxu1 %v2992_v0  ;;  %v2734_v50 = vmax.f32 %v2624_v49, 0.0  ;;  %v6192_v4 = vld [vmem:[#allocation22_spill] sm:$0xff] }
 0x27c   :  { %v4323_v32 = vpop.f32.mrf.mxu0  ;;  %3629 = vmatprep.mubr.bf16.mxu1 %v6181_v13 }
 0x27d   :  { %v4435_v61 = vpop.f32.mrf.mxu1  ;;  %v2627_v9 = vadd.f32 %v4433_v19, %v2466_v29  ;;  %v4324_v53 = vadd.f32 %v4323_v32, %v4322_v62  ;;  %v6193_v62 = vld [vmem:[#allocation26_spill] sm:$0xff] }
 0x27e   :  { %v4325_v2 = vpop.f32.mrf.mxu0  ;;  %v4436_v59 = vadd.f32 %v4435_v61, %v4434_v43  ;;  %v4227_v43 = vadd.f32 %v6193_v62, %v6192_v4 }
 0x27f   :  { %v4437_v34 = vpop.f32.mrf.mxu1  ;;  %v2737_v39 = vmax.f32 %v2627_v9, 0.0  ;;  %v2471_v35 = vadd.f32 %v4324_v53, %v2310_v10 }
 0x280   :  { %v4326_v16 = vpop.f32.mrf.mxu0  ;;  %v2329_v9 = vadd.f32 %v4227_v43, %v5755_v45 }
 0x281   :  { %v4438_v41 = vpop.f32.mrf.mxu1  ;;  %v2995_v42 = vpack.c.bf16 %v2737_v39, %v2734_v50  ;;  %v4327_v18 = vadd.f32 %v4326_v16, %v4325_v2  ;;  %v2632_v48 = vadd.f32 %v4436_v59, %v2471_v35  ;;  %v4233_v59 = vadd.f32 %v5717_v7, %v5713_v51 }
 0x282   :  { %v4328_v23 = vpop.f32.mrf.mxu0  ;;  %v4439_v52 = vadd.f32 %v4438_v41, %v4437_v34 }
 0x283   :  { %v4440_v54 = vpop.f32.mrf.mxu1  ;;  %v2474_v38 = vadd.f32 %v4327_v18, %v2313_v27  ;;  %3630 = vmatmul.mubr.bf16.gmra.mxu1 %v2995_v42  ;;  %v2740_v14 = vmax.f32 %v2632_v48, 0.0  ;;  %v2334_v42 = vadd.f32 %v5709_v40, %v5755_v45  ;;  %v2337_v37 = vadd.f32 %v4233_v59, %v5755_v45 }
 0x284   :  { %v4329_v30 = vpop.f32.mrf.mxu0  ;;  %3639 = vmatprep.mubr.bf16.mxu1 %v6181_v13 }
 0x285   :  { %v4441_v56 = vpop.f32.mrf.mxu1  ;;  %v2635_v17 = vadd.f32 %v4439_v52, %v2474_v38  ;;  %v4330_v25 = vadd.f32 %v4329_v30, %v4328_v23 }
 0x286   :  { %v4331_v11 = vpop.f32.mrf.mxu0  ;;  %v4442_v1 = vadd.f32 %v4441_v56, %v4440_v54 }
 0x287   :  { %v4443_v55 = vpop.f32.mrf.mxu1  ;;  %v2743_v5 = vmax.f32 %v2635_v17, 0.0  ;;  %v2479_v8 = vadd.f32 %v4330_v25, %v2318_v44 }
 0x288   :  { %v4332_v63 = vpop.f32.mrf.mxu0 }
 0x289   :  { %v4444_v60 = vpop.f32.mrf.mxu1  ;;  %v2998_v24 = vpack.c.bf16 %v2743_v5, %v2740_v14  ;;  %v4333_v12 = vadd.f32 %v4332_v63, %v4331_v11  ;;  %v2640_v28 = vadd.f32 %v4442_v1, %v2479_v8  ;;  %v2342_v63 = vadd.f32 %v5725_v21, %v5755_v45 }
 0x28a   :  { %v4334_v6 = vpop.f32.mrf.mxu0  ;;  %v4445_v0 = vadd.f32 %v4444_v60, %v4443_v55  ;;  %v4239_v60 = vadd.f32 %v5733_v26, %v5729_v3 }
 0x28b   :  { %v4446_v47 = vpop.f32.mrf.mxu1  ;;  %v2482_v57 = vadd.f32 %v4333_v12, %v2321_v46  ;;  %3640 = vmatmul.mubr.bf16.gmra.mxu1 %v2998_v24  ;;  %v2746_v61 = vmax.f32 %v2640_v28, 0.0 }
 0x28c   :  { %v4335_v58 = vpop.f32.mrf.mxu0  ;;  %3649 = vmatprep.mubr.bf16.mxu1 %v6181_v13 }
 0x28d   :  { %v4447_v20 = vpop.f32.mrf.mxu1  ;;  %v2643_v49 = vadd.f32 %v4445_v0, %v2482_v57  ;;  %v4336_v29 = vadd.f32 %v4335_v58, %v4334_v6  ;;  %v2345_v58 = vadd.f32 %v4239_v60, %v5755_v45 }
 0x28e   :  { %v4337_v19 = vpop.f32.mrf.mxu0  ;;  %v4448_v2 = vadd.f32 %v4447_v20, %v4446_v47 }
 0x28f   :  { %v4449_v32 = vpop.f32.mrf.mxu1  ;;  %v2749_v10 = vmax.f32 %v2643_v49, 0.0  ;;  %v2487_v22 = vadd.f32 %v4336_v29, %v2326_v15 }
 0x290   :  { %v4338_v31 = vpop.f32.mrf.mxu0 }
 0x291   :  { %v4450_v33 = vpop.f32.mrf.mxu1  ;;  %v3001_v53 = vpack.c.bf16 %v2749_v10, %v2746_v61  ;;  %v4339_v34 = vadd.f32 %v4338_v31, %v4337_v19  ;;  %v2648_v36 = vadd.f32 %v4448_v2, %v2487_v22  ;;  %v6194_v19 = vld [vmem:[#allocation27_spill] sm:$0xff]  ;;  %v6195_v61 = vld [vmem:[#allocation28_spill] sm:$0xff]  ;;  %v6196_v10 = vld [vmem:[#allocation25_spill] sm:$0xff] }
 0x292   :  { %v4340_v50 = vpop.f32.mrf.mxu0  ;;  %v4451_v16 = vadd.f32 %v4450_v33, %v4449_v32  ;;  %v2350_v32 = vadd.f32 %v6194_v19, %v5755_v45  ;;  %v4245_v22 = vadd.f32 %v6196_v10, %v6195_v61 }
 0x293   :  { %v4452_v39 = vpop.f32.mrf.mxu1  ;;  %v2490_v35 = vadd.f32 %v4339_v34, %v2329_v9  ;;  %3650 = vmatmul.mubr.bf16.gmra.mxu1 %v3001_v53  ;;  %v2752_v38 = vmax.f32 %v2648_v36, 0.0 }
 0x294   :  { %v4341_v41 = vpop.f32.mrf.mxu0  ;;  %3659 = vmatprep.mubr.bf16.mxu1 %v6181_v13 }
 0x295   :  { %v4453_v27 = vpop.f32.mrf.mxu1  ;;  %v2651_v18 = vadd.f32 %v4451_v16, %v2490_v35  ;;  %v4342_v23 = vadd.f32 %v4341_v41, %v4340_v50  ;;  %v2353_v35 = vadd.f32 %v4245_v22, %v5755_v45 }
 0x296   :  { %v4343_v54 = vpop.f32.mrf.mxu0  ;;  %v4454_v25 = vadd.f32 %v4453_v27, %v4452_v39 }
 0x297   :  { %v4455_v48 = vpop.f32.mrf.mxu1  ;;  %v2755_v52 = vmax.f32 %v2651_v18, 0.0  ;;  %v2495_v30 = vadd.f32 %v4342_v23, %v2334_v42 }
 0x298   :  { %v4344_v56 = vpop.f32.mrf.mxu0 }
 0x299   :  { %v4456_v44 = vpop.f32.mrf.mxu1  ;;  %v3004_v17 = vpack.c.bf16 %v2755_v52, %v2752_v38  ;;  %v4345_v11 = vadd.f32 %v4344_v56, %v4343_v54  ;;  %v2656_v40 = vadd.f32 %v4454_v25, %v2495_v30 }
 0x29a   :  { %v4346_v55 = vpop.f32.mrf.mxu0  ;;  %v4457_v8 = vadd.f32 %v4456_v44, %v4455_v48 }
 0x29b   :  { %v4458_v14 = vpop.f32.mrf.mxu1  ;;  %v2498_v5 = vadd.f32 %v4345_v11, %v2337_v37  ;;  %3660 = vmatmul.mubr.bf16.gmra.mxu1 %v3004_v17  ;;  %v2758_v6 = vmax.f32 %v2656_v40, 0.0 }
 0x29c   :  { %v4347_v51 = vpop.f32.mrf.mxu0  ;;  %3669 = vmatprep.mubr.bf16.mxu1 %v6181_v13 }
 0x29d   :  { %v4459_v7 = vpop.f32.mrf.mxu1  ;;  %v2659_v46 = vadd.f32 %v4457_v8, %v2498_v5  ;;  %v4348_v24 = vadd.f32 %v4347_v51, %v4346_v55 }
 0x29e   :  { %v4349_v1 = vpop.f32.mrf.mxu0  ;;  %v4460_v15 = vadd.f32 %v4459_v7, %v4458_v14 }
 0x29f   :  { %v4461_v12 = vpop.f32.mrf.mxu1  ;;  %v2761_v47 = vmax.f32 %v2659_v46, 0.0  ;;  %v2503_v28 = vadd.f32 %v4348_v24, %v2342_v63 }
 0x2a0   :  { %v4350_v57 = vpop.f32.mrf.mxu0 }
 0x2a1   :  { %v4462_v0 = vpop.f32.mrf.mxu1  ;;  %v3007_v20 = vpack.c.bf16 %v2761_v47, %v2758_v6  ;;  %v4351_v4 = vadd.f32 %v4350_v57, %v4349_v1  ;;  %v2664_v21 = vadd.f32 %v4460_v15, %v2503_v28 }
 0x2a2   :  { %v4352_v62 = vpop.f32.mrf.mxu0  ;;  %v4463_v29 = vadd.f32 %v4462_v0, %v4461_v12 }
 0x2a3   :  { %v4464_v43 = vpop.f32.mrf.mxu1  ;;  %v2506_v49 = vadd.f32 %v4351_v4, %v2345_v58  ;;  %3670 = vmatmul.mubr.bf16.gmra.mxu1 %v3007_v20  ;;  %v2764_v2 = vmax.f32 %v2664_v21, 0.0  ;;  %v3062_v4 = vld [vmem:[%s6085_s4] sm:$0x3]  ;;  %s5021_s4 = smov [#allocation9]  }
 0x2a4   :  { %v4353_v3 = vpop.f32.mrf.mxu0  ;;  %3679 = vmatprep.mubr.bf16.mxu1 %v6181_v13  ;;  %s3833_s16 = sshll.u32 %s5021_s4, 4  ;;  %s3834_s16 = int_to_ptr.vmem [resolvable:$true] %s3833_s16 }
 0x2a5   :  { %v4465_v26 = vpop.f32.mrf.mxu1  ;;  %v2667_v31 = vadd.f32 %v4463_v29, %v2506_v49  ;;  %v4354_v33 = vadd.f32 %v4353_v3, %v4352_v62  ;;  %s4985_s17 = scalar_lea.vmem %s3834_s16, 8192  ;;  %p4990_p2 = scmp.lt.s32.totalorder %s3834_s16, %s3834_s16 }
 0x2a6   :  { %v4355_v9 = vpop.f32.mrf.mxu0  ;;  %v4466_v41 = vadd.f32 %v4465_v26, %v4464_v43  ;;  %v6197_v43 = vld [vmem:[#allocation13_spill] sm:$0xff]  ;;  %p4986_p1 = scmp.ne.s32.totalorder %s3834_s16, %s4985_s17  ;;  %p4991_p3 = scmp.lt.s32.totalorder %s4985_s17, %s4985_s17 }
 0x2a7   :  { %v4467_v53 = vpop.f32.mrf.mxu1  ;;  %v2767_v34 = vmax.f32 %v2667_v31, 0.0  ;;  %v2511_v50 = vadd.f32 %v4354_v33, %v2350_v32  ;;  %v6198_v21 = vsub.s32 0, %v6197_v43  ;;  %v6199_v29 = vsub.s32 1, %v6197_v43 }
 0x2a8   :  { %v4356_v39 = vpop.f32.mrf.mxu0  ;;  %p4992_p4 = por %p4991_p3, %p4990_p2 }
 0x2a9   :  { %v4468_v36 = vpop.f32.mrf.mxu1  ;;  %v3010_v16 = vpack.c.bf16 %v2767_v34, %v2764_v2  ;;  %v4357_v27 = vadd.f32 %v4356_v39, %v4355_v9  ;;  %v2672_v59 = vadd.f32 %v4466_v41, %v2511_v50  ;;  %v5921_v49 = vrot.slane %v3062_v4, %v6198_v21 }
 0x2aa   :  { %v3348_v42 = vpop.f32.mrf.mxu0  ;;  %v4469_v23 = vadd.f32 %v4468_v36, %v4467_v53  ;;  %v5925_v3 = vrot.slane %v3062_v4, %v6199_v29  ;;  %p4993_p5 = pnand %p4992_p4, %p4986_p1 }
 0x2ab   :  { %v2514_v18 = vadd.f32 %v4357_v27, %v2353_v35  ;;  %3680 = vmatmul.mubr.bf16.gmra.mxu1 %v3010_v16  ;;  %v2770_v52 = vmax.f32 %v2672_v59, 0.0  ;;  %v3349_v19 = vadd.f32 %v3348_v42, %v5921_v49 }
 0x2ac   :  { %v3350_v54 = vpop.f32.mrf.mxu0  ;;  %3689 = vmatprep.mubr.bf16.mxu1 %v6181_v13 }
 0x2ad   :  { %v2675_v48 = vadd.f32 %v4469_v23, %v2514_v18  ;;  %v3351_v61 = vadd.f32 %v3350_v54, %v5925_v3 }
 0x2ae   :  { %v3352_v38 = vpop.f32.mrf.mxu0 }
 0x2af   :  { %v2773_v30 = vmax.f32 %v2675_v48, 0.0  ;;  %v3353_v33 = vadd.f32 %v3352_v38, %v5921_v49 }
 0x2b0   :  { %v3354_v56 = vpop.f32.mrf.mxu0 }
 0x2b1   :  { %v3013_v44 = vpack.c.bf16 %v2773_v30, %v2770_v52  ;;  %v3355_v34 = vadd.f32 %v3354_v56, %v5925_v3 }
 0x2b2   :  { %v3358_v37 = vpop.f32.mrf.mxu0 }
 0x2b3   :  { %3690 = vmatmul.mubr.bf16.gmra.mxu1 %v3013_v44  ;;  %v3359_v16 = vadd.f32 %v3358_v37, %v5921_v49 }
 0x2b4   :  { %v3360_v45 = vpop.f32.mrf.mxu0 }
 0x2b5   :  { %v3361_v59 = vadd.f32 %v3360_v45, %v5925_v3 }
 0x2b6   :  { %v3362_v17 = vpop.f32.mrf.mxu0 }
 0x2b7   :  { %v3363_v38 = vadd.f32 %v3362_v17, %v5921_v49 }
 0x2b8   :  { %v3364_v25 = vpop.f32.mrf.mxu0 }
 0x2b9   :  { %v3365_v44 = vadd.f32 %v3364_v25, %v5925_v3 }
 0x2ba   :  { %v5868_v11 = vpop.f32.mrf.mxu0 }
 0x2bb   :  { %v3369_v21 = vadd.f32 %v5868_v11, %v5921_v49 }
 0x2bc   :  { %v5870_v55 = vpop.f32.mrf.mxu0 }
 0x2bd   :  { %v3371_v17 = vadd.f32 %v5870_v55, %v5925_v3 }
 0x2be   :  { %v5872_v14 = vpop.f32.mrf.mxu0 }
 0x2c0   :  { %v5874_v40 = vpop.f32.mrf.mxu0 }
 0x2c2   :  { %v5876_v13 = vpop.f32.mrf.mxu0 }
 0x2c4   :  { %v5878_v5 = vpop.f32.mrf.mxu0 }
 0x2c6   :  { %v5880_v8 = vpop.f32.mrf.mxu0 }
 0x2c8   :  { %v5882_v51 = vpop.f32.mrf.mxu0 }
 0x2ca   :  { %v5884_v7 = vpop.f32.mrf.mxu0 }
 0x2cc   :  { %v5886_v63 = vpop.f32.mrf.mxu0 }
 0x2ce   :  { %v5888_v60 = vpop.f32.mrf.mxu0 }
 0x2d0   :  { %v5890_v46 = vpop.f32.mrf.mxu0 }
 0x2d2   :  { %v5892_v24 = vpop.f32.mrf.mxu0 }
 0x2d4   :  { %v5894_v1 = vpop.f32.mrf.mxu0 }
 0x2d6   :  { %v5896_v12 = vpop.f32.mrf.mxu0 }
 0x2d8   :  { %v5898_v6 = vpop.f32.mrf.mxu0 }
 0x2da   :  { %v5900_v47 = vpop.f32.mrf.mxu0 }
 0x2dc   :  { %v5902_v28 = vpop.f32.mrf.mxu0 }
 0x2de   :  { %v5904_v57 = vpop.f32.mrf.mxu0 }
 0x2e0   :  { %v5906_v0 = vpop.f32.mrf.mxu0 }
 0x2e2   :  { %v5908_v58 = vpop.f32.mrf.mxu0 }
 0x2e4   :  { %v5910_v20 = vpop.f32.mrf.mxu0 }
 0x2e6   :  { %v5912_v15 = vpop.f32.mrf.mxu0 }
 0x2e8   :  { %v5917_v62 = vpop.f32.mrf.mxu0 }
 0x2ea   :  { %v5927_v26 = vpop.f32.mrf.mxu0 }
 0x2ec   :  { %v5931_v22 = vpop.f32.mrf.mxu0 }
 0x2ee   :  { %v5935_v36 = vpop.f32.mrf.mxu0 }
 0x2f0   :  { %v5939_v54 = vpop.f32.mrf.mxu0 }
 0x2f2   :  { %v5943_v43 = vpop.f32.mrf.mxu0 }
 0x2f4   :  { %v5949_v25 = vpop.f32.mrf.mxu0 }
 0x2f6   :  { %v5955_v55 = vpop.f32.mrf.mxu0 }
 0x2fb   :  { %v3541_v32 = vpop.f32.mrf.mxu1 }
 0x2fc   :  { %v3542_v10 = vadd.f32 %v3541_v32, %v3349_v19 }
 0x2fd   :  { %v3543_v31 = vpop.f32.mrf.mxu1 }
 0x2fe   :  { %v3700_v9 = vmax.f32 %v3542_v10, 0.0  ;;  %v3544_v53 = vadd.f32 %v3543_v31, %v3351_v61 }
 0x2ff   :  { %v3545_v2 = vpop.f32.mrf.mxu1 }
 0x300   :  { %3764 = vst [vmem:[#allocation9] sm:$0xff] %v3700_v9  ;;  %v3701_v50 = vmax.f32 %v3544_v53, 0.0  ;;  %v3546_v39 = vadd.f32 %v3545_v2, %v3353_v33  ;;  %v3373_v33 = vadd.f32 %v5872_v14, %v5921_v49  ;;  %v3375_v2 = vadd.f32 %v5874_v40, %v5925_v3  ;;  %v5961_v40 = vpop.f32.mrf.mxu0 }
 0x301   :  { %v3547_v35 = vpop.f32.mrf.mxu1 }
 0x302   :  { %3765 = vst [vmem:[#allocation9 + $0x8] sm:$0xff] %v3701_v50  ;;  %v3702_v41 = vmax.f32 %v3546_v39, 0.0  ;;  %v3548_v27 = vadd.f32 %v3547_v35, %v3355_v34  ;;  %v3379_v35 = vadd.f32 %v5876_v13, %v5921_v49 }
 0x303   :  { %v3551_v42 = vpop.f32.mrf.mxu1 }
 0x304   :  { %3766 = vst [vmem:[#allocation9 + $0x10] sm:$0xff] %v3702_v41  ;;  %v3703_v18 = vmax.f32 %v3548_v27, 0.0  ;;  %v3552_v23 = vadd.f32 %v3551_v42, %v3359_v16  ;;  %v3381_v27 = vadd.f32 %v5878_v5, %v5925_v3  ;;  %v5967_v5 = vpop.f32.mrf.mxu0 }
 0x305   :  { %v3553_v48 = vpop.f32.mrf.mxu1 }
 0x306   :  { %3767 = vst [vmem:[#allocation9 + $0x18] sm:$0xff] %v3703_v18  ;;  %v3704_v52 = vmax.f32 %v3552_v23, 0.0  ;;  %v3554_v30 = vadd.f32 %v3553_v48, %v3361_v59  ;;  %v3383_v23 = vadd.f32 %v5880_v8, %v5921_v49 }
 0x307   :  { %v3555_v56 = vpop.f32.mrf.mxu1 }
 0x308   :  { %3768 = vst [vmem:[#allocation9 + $0x20] sm:$0xff] %v3704_v52  ;;  %v3705_v37 = vmax.f32 %v3554_v30, 0.0  ;;  %v3556_v4 = vadd.f32 %v3555_v56, %v3363_v38  ;;  %v3385_v52 = vadd.f32 %v5882_v51, %v5925_v3  ;;  %v5973_v51 = vpop.f32.mrf.mxu0 }
 0x309   :  { %v3557_v45 = vpop.f32.mrf.mxu1 }
 0x30a   :  { %3769 = vst [vmem:[#allocation9 + $0x28] sm:$0xff] %v3705_v37  ;;  %v3706_v29 = vmax.f32 %v3556_v4, 0.0  ;;  %v3558_v19 = vadd.f32 %v3557_v45, %v3365_v44  ;;  %v3389_v37 = vadd.f32 %v5884_v7, %v5921_v49 }
 0x30b   :  { %v3561_v32 = vpop.f32.mrf.mxu1 }
 0x30c   :  { %3770 = vst [vmem:[#allocation9 + $0x30] sm:$0xff] %v3706_v29  ;;  %v3707_v61 = vmax.f32 %v3558_v19, 0.0  ;;  %v3562_v10 = vadd.f32 %v3561_v32, %v3369_v21  ;;  %v3391_v21 = vadd.f32 %v5886_v63, %v5925_v3  ;;  %v5979_v63 = vpop.f32.mrf.mxu0 }
 0x30d   :  { %v3563_v31 = vpop.f32.mrf.mxu1 }
 0x30e   :  { %3771 = vst [vmem:[#allocation9 + $0x38] sm:$0xff] %v3707_v61  ;;  %v3708_v9 = vmax.f32 %v3562_v10, 0.0  ;;  %v3564_v53 = vadd.f32 %v3563_v31, %v3371_v17  ;;  %v3393_v17 = vadd.f32 %v5888_v60, %v5921_v49  ;;  %v3395_v31 = vadd.f32 %v5890_v46, %v5925_v3  ;;  %v5985_v46 = vpop.f32.mrf.mxu0 }
 0x30f   :  { %v3565_v11 = vpop.f32.mrf.mxu1 }
 0x310   :  { %3772 = vst [vmem:[#allocation9 + $0x40] sm:$0xff] %v3708_v9  ;;  %v3709_v34 = vmax.f32 %v3564_v53, 0.0  ;;  %v3566_v50 = vadd.f32 %v3565_v11, %v3373_v33  ;;  %v3399_v11 = vadd.f32 %v5892_v24, %v5921_v49 }
 0x311   :  { %v3567_v39 = vpop.f32.mrf.mxu1 }
 0x312   :  { %3773 = vst [vmem:[#allocation9 + $0x48] sm:$0xff] %v3709_v34  ;;  %v3710_v16 = vmax.f32 %v3566_v50, 0.0  ;;  %v3568_v41 = vadd.f32 %v3567_v39, %v3375_v2  ;;  %v3401_v50 = vadd.f32 %v5894_v1, %v5925_v3  ;;  %v5991_v1 = vpop.f32.mrf.mxu0 }
 0x313   :  { %v3571_v14 = vpop.f32.mrf.mxu1 }
 0x314   :  { %3774 = vst [vmem:[#allocation9 + $0x50] sm:$0xff] %v3710_v16  ;;  %v3711_v42 = vmax.f32 %v3568_v41, 0.0  ;;  %v3572_v59 = vadd.f32 %v3571_v14, %v3379_v35  ;;  %v3403_v41 = vadd.f32 %v5896_v12, %v5921_v49 }
 0x315   :  { %v3573_v18 = vpop.f32.mrf.mxu1 }
 0x316   :  { %3775 = vst [vmem:[#allocation9 + $0x58] sm:$0xff] %v3711_v42  ;;  %v3712_v48 = vmax.f32 %v3572_v59, 0.0  ;;  %v3574_v38 = vadd.f32 %v3573_v18, %v3381_v27  ;;  %v3405_v42 = vadd.f32 %v5898_v6, %v5925_v3  ;;  %v5997_v6 = vpop.f32.mrf.mxu0 }
 0x317   :  { %v3575_v13 = vpop.f32.mrf.mxu1 }
 0x318   :  { %3776 = vst [vmem:[#allocation9 + $0x60] sm:$0xff] %v3712_v48  ;;  %v3713_v30 = vmax.f32 %v3574_v38, 0.0  ;;  %v3576_v56 = vadd.f32 %v3575_v13, %v3383_v23  ;;  %v3409_v48 = vadd.f32 %v5900_v47, %v5921_v49 }
 0x319   :  { %v3577_v44 = vpop.f32.mrf.mxu1 }
 0x31a   :  { %3777 = vst [vmem:[#allocation9 + $0x68] sm:$0xff] %v3713_v30  ;;  %v3714_v4 = vmax.f32 %v3576_v56, 0.0  ;;  %v3578_v45 = vadd.f32 %v3577_v44, %v3385_v52  ;;  %v3411_v52 = vadd.f32 %v5902_v28, %v5925_v3  ;;  %v6003_v28 = vpop.f32.mrf.mxu0 }
 0x31b   :  { %v3581_v8 = vpop.f32.mrf.mxu1 }
 0x31c   :  { %3778 = vst [vmem:[#allocation9 + $0x70] sm:$0xff] %v3714_v4  ;;  %v3715_v29 = vmax.f32 %v3578_v45, 0.0  ;;  %v3582_v19 = vadd.f32 %v3581_v8, %v3389_v37  ;;  %v3413_v37 = vadd.f32 %v5904_v57, %v5921_v49  ;;  %v3415_v8 = vadd.f32 %v5906_v0, %v5925_v3  ;;  %v6009_v0 = vpop.f32.mrf.mxu0 }
 0x31d   :  { %v3583_v32 = vpop.f32.mrf.mxu1 }
 0x31e   :  { %3779 = vst [vmem:[#allocation9 + $0x78] sm:$0xff] %v3715_v29  ;;  %v3716_v61 = vmax.f32 %v3582_v19, 0.0  ;;  %v3584_v10 = vadd.f32 %v3583_v32, %v3391_v21  ;;  %v3419_v32 = vadd.f32 %v5908_v58, %v5921_v49 }
 0x31f   :  { %v3585_v7 = vpop.f32.mrf.mxu1 }
 0x320   :  { %3780 = vst [vmem:[#allocation9 + $0x80] sm:$0xff] %v3716_v61  ;;  %v3717_v33 = vmax.f32 %v3584_v10, 0.0  ;;  %v3586_v9 = vadd.f32 %v3585_v7, %v3393_v17  ;;  %v3421_v10 = vadd.f32 %v5910_v20, %v5925_v3  ;;  %v6015_v20 = vpop.f32.mrf.mxu0 }
 0x321   :  { %v3587_v53 = vpop.f32.mrf.mxu1 }
 0x322   :  { %3781 = vst [vmem:[#allocation9 + $0x88] sm:$0xff] %v3717_v33  ;;  %v3718_v2 = vmax.f32 %v3586_v9, 0.0  ;;  %v3588_v34 = vadd.f32 %v3587_v53, %v3395_v31  ;;  %v3423_v9 = vadd.f32 %v5912_v15, %v5921_v49 }
 0x323   :  { %v3591_v60 = vpop.f32.mrf.mxu1 }
 0x324   :  { %3782 = vst [vmem:[#allocation9 + $0x90] sm:$0xff] %v3718_v2  ;;  %v3719_v39 = vmax.f32 %v3588_v34, 0.0  ;;  %v3592_v35 = vadd.f32 %v3591_v60, %v3399_v11  ;;  %v3425_v2 = vadd.f32 %v5917_v62, %v5925_v3  ;;  %v6021_v62 = vpop.f32.mrf.mxu0 }
 0x325   :  { %v3593_v16 = vpop.f32.mrf.mxu1 }
 0x326   :  { %3783 = vst [vmem:[#allocation9 + $0x98] sm:$0xff] %v3719_v39  ;;  %v3720_v14 = vmax.f32 %v3592_v35, 0.0  ;;  %v3594_v27 = vadd.f32 %v3593_v16, %v3401_v50  ;;  %v3429_v39 = vadd.f32 %v5927_v26, %v5921_v49 }
 0x327   :  { %v3595_v24 = vpop.f32.mrf.mxu1 }
 0x328   :  { %3784 = vst [vmem:[#allocation9 + $0xa0] sm:$0xff] %v3720_v14  ;;  %v3721_v59 = vmax.f32 %v3594_v27, 0.0  ;;  %v3596_v18 = vadd.f32 %v3595_v24, %v3403_v41  ;;  %v3431_v41 = vadd.f32 %v5931_v22, %v5925_v3  ;;  %v6027_v22 = vpop.f32.mrf.mxu0 }
 0x329   :  { %v3597_v23 = vpop.f32.mrf.mxu1 }
 0x32a   :  { %3785 = vst [vmem:[#allocation9 + $0xa8] sm:$0xff] %v3721_v59  ;;  %v3722_v38 = vmax.f32 %v3596_v18, 0.0  ;;  %v3598_v13 = vadd.f32 %v3597_v23, %v3405_v42  ;;  %v3433_v42 = vadd.f32 %v5935_v36, %v5921_v49  ;;  %v3435_v23 = vadd.f32 %v5939_v54, %v5925_v3  ;;  %v6033_v54 = vpop.f32.mrf.mxu0 }
 0x32b   :  { %v3601_v12 = vpop.f32.mrf.mxu1 }
 0x32c   :  { %3786 = vst [vmem:[#allocation9 + $0xb0] sm:$0xff] %v3722_v38  ;;  %v3723_v30 = vmax.f32 %v3598_v13, 0.0  ;;  %v3602_v56 = vadd.f32 %v3601_v12, %v3409_v48  ;;  %v3439_v12 = vadd.f32 %v5943_v43, %v5921_v49 }
 0x32d   :  { %v3603_v44 = vpop.f32.mrf.mxu1 }
 0x32e   :  { %3787 = vst [vmem:[#allocation9 + $0xb8] sm:$0xff] %v3723_v30  ;;  %v3724_v4 = vmax.f32 %v3602_v56, 0.0  ;;  %v3604_v45 = vadd.f32 %v3603_v44, %v3411_v52  ;;  %v3441_v56 = vadd.f32 %v5949_v25, %v5925_v3  ;;  %v6039_v25 = vpop.f32.mrf.mxu0 }
 0x32f   :  { %v3605_v47 = vpop.f32.mrf.mxu1 }
 0x330   :  { %3788 = vst [vmem:[#allocation9 + $0xc0] sm:$0xff] %v3724_v4  ;;  %v3725_v21 = vmax.f32 %v3604_v45, 0.0  ;;  %v3606_v29 = vadd.f32 %v3605_v47, %v3413_v37  ;;  %v3443_v45 = vadd.f32 %v5955_v55, %v5921_v49 }
 0x331   :  { %v3607_v19 = vpop.f32.mrf.mxu1 }
 0x332   :  { %3789 = vst [vmem:[#allocation9 + $0xc8] sm:$0xff] %v3725_v21  ;;  %v3726_v17 = vmax.f32 %v3606_v29, 0.0  ;;  %v3608_v61 = vadd.f32 %v3607_v19, %v3415_v8  ;;  %v3445_v21 = vadd.f32 %v5961_v40, %v5925_v3  ;;  %v3480_v40 = vpop.f32.mrf.mxu0 }
 0x333   :  { %v3611_v57 = vpop.f32.mrf.mxu1 }
 0x334   :  { %3790 = vst [vmem:[#allocation9 + $0xd0] sm:$0xff] %v3726_v17  ;;  %v3727_v7 = vmax.f32 %v3608_v61, 0.0  ;;  %v3612_v31 = vadd.f32 %v3611_v57, %v3419_v32  ;;  %v3449_v17 = vadd.f32 %v5967_v5, %v5921_v49  ;;  %v3455_v5 = vadd.f32 %v5985_v46, %v5925_v3 }
 0x335   :  { %v3613_v33 = vpop.f32.mrf.mxu1 }
 0x336   :  { %3791 = vst [vmem:[#allocation9 + $0xd8] sm:$0xff] %v3727_v7  ;;  %v3728_v53 = vmax.f32 %v3612_v31, 0.0  ;;  %v3614_v11 = vadd.f32 %v3613_v33, %v3421_v10  ;;  %v3451_v10 = vadd.f32 %v5973_v51, %v5925_v3 }
 0x337   :  { %v3615_v58 = vpop.f32.mrf.mxu1 }
 0x338   :  { %3792 = vst [vmem:[#allocation9 + $0xe0] sm:$0xff] %v3728_v53  ;;  %v3729_v34 = vmax.f32 %v3614_v11, 0.0  ;;  %v3616_v60 = vadd.f32 %v3615_v58, %v3423_v9  ;;  %v3453_v9 = vadd.f32 %v5979_v63, %v5921_v49  ;;  %v3461_v63 = vadd.f32 %v5997_v6, %v5925_v3 }
 0x339   :  { %v3617_v50 = vpop.f32.mrf.mxu1 }
 0x33a   :  { %3793 = vst [vmem:[#allocation9 + $0xe8] sm:$0xff] %v3729_v34  ;;  %v3730_v35 = vmax.f32 %v3616_v60, 0.0  ;;  %v3618_v16 = vadd.f32 %v3617_v50, %v3425_v2  ;;  %v3482_v60 = vpop.f32.mrf.mxu0  ;;  %v3459_v50 = vadd.f32 %v5991_v1, %v5921_v49  ;;  %v3465_v1 = vadd.f32 %v6009_v0, %v5925_v3 }
 0x33b   :  { %v3621_v15 = vpop.f32.mrf.mxu1 }
 0x33c   :  { %3794 = vst [vmem:[#allocation9 + $0xf0] sm:$0xff] %v3730_v35  ;;  %v3731_v14 = vmax.f32 %v3618_v16, 0.0  ;;  %v3622_v27 = vadd.f32 %v3621_v15, %v3429_v39 }
 0x33d   :  { %v3623_v24 = vpop.f32.mrf.mxu1 }
 0x33e   :  { %3795 = vst [vmem:[#allocation9 + $0xf8] sm:$0xff] %v3731_v14  ;;  %v3732_v59 = vmax.f32 %v3622_v27, 0.0  ;;  %v3624_v18 = vadd.f32 %v3623_v24, %v3431_v41  ;;  %v3484_v14 = vpop.f32.mrf.mxu0  ;;  %v3463_v27 = vadd.f32 %v6003_v28, %v5921_v49  ;;  %v3471_v28 = vadd.f32 %v6021_v62, %v5925_v3 }
 0x33f   :  { %v3625_v26 = vpop.f32.mrf.mxu1 }
 0x340   :  { %3796 = vst [vmem:[#allocation9 + $0x100] sm:$0xff] %v3732_v59  ;;  %v3733_v48 = vmax.f32 %v3624_v18, 0.0  ;;  %v3626_v38 = vadd.f32 %v3625_v26, %v3433_v42 }
 0x341   :  { %v3627_v13 = vpop.f32.mrf.mxu1 }
 0x342   :  { %3797 = vst [vmem:[#allocation9 + $0x108] sm:$0xff] %v3733_v48  ;;  %v3734_v52 = vmax.f32 %v3626_v38, 0.0  ;;  %v3628_v30 = vadd.f32 %v3627_v13, %v3435_v23  ;;  %v3488_v23 = vpop.f32.mrf.mxu0  ;;  %v3469_v48 = vadd.f32 %v6015_v20, %v5921_v49  ;;  %v3475_v20 = vadd.f32 %v6033_v54, %v5925_v3 }
 0x343   :  { %v3631_v36 = vpop.f32.mrf.mxu1  ;;  %v3483_v54 = vadd.f32 %v3482_v60, %v5921_v49 }
 0x344   :  { %3798 = vst [vmem:[#allocation9 + $0x110] sm:$0xff] %v3734_v52  ;;  %v3735_v44 = vmax.f32 %v3628_v30, 0.0  ;;  %v3632_v37 = vadd.f32 %v3631_v36, %v3439_v12  ;;  %v3490_v36 = vpop.f32.mrf.mxu0 }
 0x345   :  { %v3633_v4 = vpop.f32.mrf.mxu1 }
 0x346   :  { %3799 = vst [vmem:[#allocation9 + $0x118] sm:$0xff] %v3735_v44  ;;  %v3736_v47 = vmax.f32 %v3632_v37, 0.0  ;;  %v3634_v8 = vadd.f32 %v3633_v4, %v3441_v56  ;;  %v3473_v56 = vadd.f32 %v6027_v22, %v5921_v49  ;;  %v3481_v22 = vadd.f32 %v3480_v40, %v5925_v3 }
 0x347   :  { %v3635_v43 = vpop.f32.mrf.mxu1  ;;  %v3489_v40 = vadd.f32 %v3488_v23, %v5921_v49 }
 0x348   :  { %3800 = vst [vmem:[#allocation9 + $0x120] sm:$0xff] %v3736_v47  ;;  %v3737_v29 = vmax.f32 %v3634_v8, 0.0  ;;  %v3636_v19 = vadd.f32 %v3635_v43, %v3443_v45  ;;  %v3492_v8 = vpop.f32.mrf.mxu0  ;;  %v3479_v43 = vadd.f32 %v6039_v25, %v5921_v49 }
 0x349   :  { %v3637_v32 = vpop.f32.mrf.mxu1 }
 0x34a   :  { %3801 = vst [vmem:[#allocation9 + $0x128] sm:$0xff] %v3737_v29  ;;  %v3738_v61 = vmax.f32 %v3636_v19, 0.0  ;;  %v3638_v57 = vadd.f32 %v3637_v32, %v3445_v21 }
 0x34b   :  { %v3641_v55 = vpop.f32.mrf.mxu1 }
 0x34c   :  { %3802 = vst [vmem:[#allocation9 + $0x130] sm:$0xff] %v3738_v61  ;;  %v3739_v7 = vmax.f32 %v3638_v57, 0.0  ;;  %v3642_v31 = vadd.f32 %v3641_v55, %v3449_v17  ;;  %v3494_v61 = vpop.f32.mrf.mxu0 }
 0x34d   :  { %v3643_v33 = vpop.f32.mrf.mxu1 }
 0x34e   :  { %3803 = vst [vmem:[#allocation9 + $0x138] sm:$0xff] %v3739_v7  ;;  %v3740_v53 = vmax.f32 %v3642_v31, 0.0  ;;  %v3644_v11 = vadd.f32 %v3643_v33, %v3451_v10  ;;  %v3485_v31 = vadd.f32 %v3484_v14, %v5925_v3 }
 0x34f   :  { %v3645_v58 = vpop.f32.mrf.mxu1 }
 0x350   :  { %3804 = vst [vmem:[#allocation9 + $0x140] sm:$0xff] %v3740_v53  ;;  %v3741_v2 = vmax.f32 %v3644_v11, 0.0  ;;  %v3646_v34 = vadd.f32 %v3645_v58, %v3453_v9  ;;  %v3498_v9 = vpop.f32.mrf.mxu0 }
 0x351   :  { %v3647_v51 = vpop.f32.mrf.mxu1 }
 0x352   :  { %3805 = vst [vmem:[#allocation9 + $0x148] sm:$0xff] %v3741_v2  ;;  %v3742_v39 = vmax.f32 %v3646_v34, 0.0  ;;  %v3648_v35 = vadd.f32 %v3647_v51, %v3455_v5  ;;  %v3491_v2 = vadd.f32 %v3490_v36, %v5925_v3  ;;  %v3500_v51 = vpop.f32.mrf.mxu0 }
 0x353   :  { %v3651_v16 = vpop.f32.mrf.mxu1 }
 0x354   :  { %3806 = vst [vmem:[#allocation9 + $0x150] sm:$0xff] %v3742_v39  ;;  %v3743_v15 = vmax.f32 %v3648_v35, 0.0  ;;  %v3652_v41 = vadd.f32 %v3651_v16, %v3459_v50  ;;  %v3493_v39 = vadd.f32 %v3492_v8, %v5921_v49 }
 0x355   :  { %v3653_v46 = vpop.f32.mrf.mxu1 }
 0x356   :  { %3807 = vst [vmem:[#allocation9 + $0x158] sm:$0xff] %v3743_v15  ;;  %v3744_v24 = vmax.f32 %v3652_v41, 0.0  ;;  %v3654_v42 = vadd.f32 %v3653_v46, %v3461_v63  ;;  %v3495_v15 = vadd.f32 %v3494_v61, %v5925_v3  ;;  %v3502_v46 = vpop.f32.mrf.mxu0 }
 0x357   :  { %v3655_v59 = vpop.f32.mrf.mxu1 }
 0x358   :  { %3808 = vst [vmem:[#allocation9 + $0x160] sm:$0xff] %v3744_v24  ;;  %v3745_v18 = vmax.f32 %v3654_v42, 0.0  ;;  %v3656_v26 = vadd.f32 %v3655_v59, %v3463_v27  ;;  %v3499_v24 = vadd.f32 %v3498_v9, %v5921_v49 }
 0x359   :  { %v3657_v6 = vpop.f32.mrf.mxu1 }
 0x35a   :  { %3809 = vst [vmem:[#allocation9 + $0x168] sm:$0xff] %v3745_v18  ;;  %v3746_v38 = vmax.f32 %v3656_v26, 0.0  ;;  %v3658_v13 = vadd.f32 %v3657_v6, %v3465_v1  ;;  %v3501_v18 = vadd.f32 %v3500_v51, %v5925_v3  ;;  %v3504_v6 = vpop.f32.mrf.mxu0 }
 0x35b   :  { %v3661_v12 = vpop.f32.mrf.mxu1 }
 0x35c   :  { %3810 = vst [vmem:[#allocation9 + $0x170] sm:$0xff] %v3746_v38  ;;  %v3747_v52 = vmax.f32 %v3658_v13, 0.0  ;;  %v3662_v30 = vadd.f32 %v3661_v12, %v3469_v48  ;;  %v3503_v38 = vadd.f32 %v3502_v46, %v5921_v49 }
 0x35d   :  { %v3663_v0 = vpop.f32.mrf.mxu1 }
 0x35e   :  { %3811 = vst [vmem:[#allocation9 + $0x178] sm:$0xff] %v3747_v52  ;;  %v3748_v44 = vmax.f32 %v3662_v30, 0.0  ;;  %v3664_v37 = vadd.f32 %v3663_v0, %v3471_v28  ;;  %v3505_v52 = vadd.f32 %v3504_v6, %v5925_v3 }
 0x35f   :  { %v3665_v4 = vpop.f32.mrf.mxu1 }
 0x360   :  { %3812 = vst [vmem:[#allocation9 + $0x180] sm:$0xff] %v3748_v44  ;;  %v3749_v45 = vmax.f32 %v3664_v37, 0.0  ;;  %v3666_v47 = vadd.f32 %v3665_v4, %v3473_v56 }
 0x361   :  { %v3667_v62 = vpop.f32.mrf.mxu1 }
 0x362   :  { %3813 = vst [vmem:[#allocation9 + $0x188] sm:$0xff] %v3749_v45  ;;  %v3750_v21 = vmax.f32 %v3666_v47, 0.0  ;;  %v3668_v29 = vadd.f32 %v3667_v62, %v3475_v20 }
 0x363   :  { %v3671_v19 = vpop.f32.mrf.mxu1 }
 0x364   :  { %3814 = vst [vmem:[#allocation9 + $0x190] sm:$0xff] %v3750_v21  ;;  %v3751_v32 = vmax.f32 %v3668_v29, 0.0  ;;  %v3672_v17 = vadd.f32 %v3671_v19, %v3479_v43 }
 0x365   :  { %v3673_v57 = vpop.f32.mrf.mxu1 }
 0x366   :  { %3815 = vst [vmem:[#allocation9 + $0x198] sm:$0xff] %v3751_v32  ;;  %v3752_v55 = vmax.f32 %v3672_v17, 0.0  ;;  %v3674_v10 = vadd.f32 %v3673_v57, %v3481_v22 }
 0x367   :  { %v3675_v7 = vpop.f32.mrf.mxu1 }
 0x368   :  { %3816 = vst [vmem:[#allocation9 + $0x1a0] sm:$0xff] %v3752_v55  ;;  %v3753_v25 = vmax.f32 %v3674_v10, 0.0  ;;  %v3676_v33 = vadd.f32 %v3675_v7, %v3483_v54 }
 0x369   :  { %v3677_v53 = vpop.f32.mrf.mxu1 }
 0x36a   :  { %3817 = vst [vmem:[#allocation9 + $0x1a8] sm:$0xff] %v3753_v25  ;;  %v3754_v11 = vmax.f32 %v3676_v33, 0.0  ;;  %v3678_v58 = vadd.f32 %v3677_v53, %v3485_v31 }
 0x36b   :  { %v3681_v5 = vpop.f32.mrf.mxu1 }
 0x36c   :  { %3818 = vst [vmem:[#allocation9 + $0x1b0] sm:$0xff] %v3754_v11  ;;  %v3755_v34 = vmax.f32 %v3678_v58, 0.0  ;;  %v3682_v60 = vadd.f32 %v3681_v5, %v3489_v40 }
 0x36d   :  { %v3683_v50 = vpop.f32.mrf.mxu1 }
 0x36e   :  { %3819 = vst [vmem:[#allocation9 + $0x1b8] sm:$0xff] %v3755_v34  ;;  %v3756_v35 = vmax.f32 %v3682_v60, 0.0  ;;  %v3684_v16 = vadd.f32 %v3683_v50, %v3491_v2 }
 0x36f   :  { %v3685_v63 = vpop.f32.mrf.mxu1 }
 0x370   :  { %3820 = vst [vmem:[#allocation9 + $0x1c0] sm:$0xff] %v3756_v35  ;;  %v3757_v41 = vmax.f32 %v3684_v16, 0.0  ;;  %v3686_v14 = vadd.f32 %v3685_v63, %v3493_v39 }
 0x371   :  { %v3687_v27 = vpop.f32.mrf.mxu1 }
 0x372   :  { %3821 = vst [vmem:[#allocation9 + $0x1c8] sm:$0xff] %v3757_v41  ;;  %v3758_v42 = vmax.f32 %v3686_v14, 0.0  ;;  %v3688_v59 = vadd.f32 %v3687_v27, %v3495_v15 }
 0x373   :  { %v3691_v1 = vpop.f32.mrf.mxu1 }
 0x374   :  { %3822 = vst [vmem:[#allocation9 + $0x1d0] sm:$0xff] %v3758_v42  ;;  %v3759_v26 = vmax.f32 %v3688_v59, 0.0  ;;  %v3692_v23 = vadd.f32 %v3691_v1, %v3499_v24 }
 0x375   :  { %v3693_v48 = vpop.f32.mrf.mxu1 }
 0x376   :  { %3823 = vst [vmem:[#allocation9 + $0x1d8] sm:$0xff] %v3759_v26  ;;  %v3760_v13 = vmax.f32 %v3692_v23, 0.0  ;;  %v3694_v12 = vadd.f32 %v3693_v48, %v3501_v18 }
 0x377   :  { %v3695_v28 = vpop.f32.mrf.mxu1 }
 0x378   :  { %3824 = vst [vmem:[#allocation9 + $0x1e0] sm:$0xff] %v3760_v13  ;;  %v3761_v30 = vmax.f32 %v3694_v12, 0.0  ;;  %v3696_v36 = vadd.f32 %v3695_v28, %v3503_v38 }
 0x379   :  { %v3697_v0 = vpop.f32.mrf.mxu1 }
 0x37a   :  { %3825 = vst [vmem:[#allocation9 + $0x1e8] sm:$0xff] %v3761_v30  ;;  %v3762_v56 = vmax.f32 %v3696_v36, 0.0  ;;  %v3698_v44 = vadd.f32 %v3697_v0, %v3505_v52 }
 0x37c   :  { %3826 = vst [vmem:[#allocation9 + $0x1f0] sm:$0xff] %v3762_v56  ;;  %v3763_v37 = vmax.f32 %v3698_v44, 0.0 }
 0x37e   :  { %3827 = vst [vmem:[#allocation9 + $0x1f8] sm:$0xff] %v3763_v37 }
 0x37f   :  { %4996 = shalt.err (!%p4993_p5)
}
 0x380   :  { %s5022_s18 = smov 256   ;;  %s5023_s19 = smov 16  }
 0x381   :  { %3839 = dma.vmem_to_hbm [thread:$0]  %s3834_s16, 8192, %s6086_s5, [#allocation5], %s5022_s18, %s5022_s18, %s5023_s19  }
 0x382   :  { %5009 = dma.done.wait [#allocation5], 8192  }
 0x383   :  { %5010 = vsyncadd [#allocation5], 4294959104 }
 0x384   :  { %3843 = vsyncpa [#allocation4], 1 }
 0x385   :  { %3844 = vsyncpa [#allocation7], 1 }
 0x386   :  { %3845 = vsyncpa [#allocation5], 1 }

</bundles_post_ra>
